<compile_context>
chip_gen: v7x
topology: tpu7x:2x2x1
jax: 0.10.0
libtpu: 0.0.40
codegen_flags: <defaults>
</compile_context>

<pallas_src>
import functools

import numpy as np
import jax
import jax.numpy as jnp
from jax import lax
from jax.experimental import pallas as pl
from jax.experimental.pallas import tpu as pltpu


_LANE = 128  # TPU lane width; spatial dim is padded to a multiple of this.


def _vmem_capacity_bytes():
    """Per-core VMEM capacity; conservative 64 MiB (v7x) if query fails."""
    try:
        info = pltpu.get_tpu_info()
        for name in ("vmem_capacity_bytes", "vmem_size_bytes"):
            cap = getattr(info, name, None)
            if cap:
                return int(cap)
    except Exception:
        pass
    return 64 << 20


# ---------------------------------------------------------------------------
# Gauss (3-multiply) helpers -- used when Np % 256 == 0 (or on v5e).
# ---------------------------------------------------------------------------
def _gauss_left(m_ref, xr, xi, mdtype):
    """(Mr + i*Mi) @ (xr + i*xi); m_ref holds [Mr, Mi, Mr+Mi]."""
    p = jnp.dot(m_ref[0], xr.astype(mdtype), preferred_element_type=jnp.float32)
    q = jnp.dot(m_ref[1], xi.astype(mdtype), preferred_element_type=jnp.float32)
    r = jnp.dot(m_ref[2], (xr + xi).astype(mdtype),
                preferred_element_type=jnp.float32)
    return p - q, r - p - q


def _gauss_right(xr, xi, m_ref, mdtype):
    """(xr + i*xi) @ (Mr + i*Mi); m_ref holds [Mr, Mi, Mr+Mi]."""
    p = jnp.dot(xr.astype(mdtype), m_ref[0], preferred_element_type=jnp.float32)
    q = jnp.dot(xi.astype(mdtype), m_ref[1], preferred_element_type=jnp.float32)
    r = jnp.dot((xr + xi).astype(mdtype), m_ref[2],
                preferred_element_type=jnp.float32)
    return p - q, r - p - q


# ---------------------------------------------------------------------------
# Kernel bodies.  I/O layout: lane-concat [real | imag] slab (bt*n, 2n).
# ---------------------------------------------------------------------------
def diff_kernel_packed(x_ref, rfst_ref, rgt_ref, lfs_ref, lg_ref, h_ref,
                       o_ref, t_ref, *, bt, n):
    """4-multiply, block-packed complex form (best MXU fill for Np%256==128).

    Right-multiplies: [yr|yi] @ [[Mr,Mi],[-Mi,Mr]]  -> one matmul, K = 2n.
    Left-multiplies:  Mr@[yr|yi], Mi@[yr|yi] + 128-aligned lane-slice combine.
    """
    md = t_ref.dtype
    hr = h_ref[0]
    hi = h_ref[1]

    # T = X @ Fs^T for all bt images at once (right-multiplies act row-wise).
    t_ref[...] = jnp.dot(x_ref[...], rfst_ref[...],
                         preferred_element_type=jnp.float32).astype(md)

    def per_image(b, carry):
        r0 = pl.multiple_of(b * n, n)
        tb = t_ref[pl.ds(r0, n), :]                       # (n, 2n), mm dtype
        # A = Fs @ T_b                == fftshift(fft2(x_b))
        p0 = jnp.dot(lfs_ref[0], tb, preferred_element_type=jnp.float32)
        p1 = jnp.dot(lfs_ref[1], tb, preferred_element_type=jnp.float32)
        ar = p0[:, :n] - p1[:, n:]
        ai = p0[:, n:] + p1[:, :n]
        # C = A * H_z                 (elementwise complex multiply, VPU, f32)
        cr = ar * hr - ai * hi
        ci = ar * hi + ai * hr
        c_cat = jnp.concatenate([cr, ci], axis=1).astype(md)
        # D = C @ G^T                 (one MXU matmul, K = 2n)
        d_cat = jnp.dot(c_cat, rgt_ref[...],
                        preferred_element_type=jnp.float32).astype(md)
        # out_b = G @ D               == ifft2(ifftshift(C))
        q0 = jnp.dot(lg_ref[0], d_cat, preferred_element_type=jnp.float32)
        q1 = jnp.dot(lg_ref[1], d_cat, preferred_element_type=jnp.float32)
        our = q0[:, :n] - q1[:, n:]
        oui = q0[:, n:] + q1[:, :n]
        o_ref[pl.ds(r0, n), :] = jnp.concatenate(
            [our, oui], axis=1).astype(o_ref.dtype)
        return carry

    lax.fori_loop(0, bt, per_image, 0)


def diff_kernel_gauss(x_ref, fs_ref, fst_ref, g_ref, gt_ref, h_ref,
                      o_ref, t_ref, *, bt, n):
    """Gauss 3-multiply form (fewest MXU FLOPs; best when Np % 256 == 0)."""
    md = t_ref.dtype
    hr = h_ref[0]
    hi = h_ref[1]

    xr = x_ref[:, :n]
    xi = x_ref[:, n:]
    # T = X @ Fs^T for all bt images at once.
    tr, ti = _gauss_right(xr, xi, fst_ref, md)
    t_ref[...] = jnp.concatenate([tr, ti], axis=1).astype(md)

    def per_image(b, carry):
        r0 = pl.multiple_of(b * n, n)
        tr_b = t_ref[pl.ds(r0, n), :n]
        ti_b = t_ref[pl.ds(r0, n), n:]
        ar, ai = _gauss_left(fs_ref, tr_b, ti_b, md)
        cr = ar * hr - ai * hi
        ci = ar * hi + ai * hr
        dr, di = _gauss_right(cr, ci, gt_ref, md)
        our, oui = _gauss_left(g_ref, dr, di, md)
        o_ref[pl.ds(r0, n), :] = jnp.concatenate(
            [our, oui], axis=1).astype(o_ref.dtype)
        return carry

    lax.fori_loop(0, bt, per_image, 0)


# ---------------------------------------------------------------------------
# Layer wrapper.
# ---------------------------------------------------------------------------
class DiffLayer:
    def __init__(self, pixelNum, pixelSize, diffDist, waveLength,
                 matmul_dtype=jnp.bfloat16, complex_form="auto"):
        self.size = pixelNum
        self.dL = self.size * pixelSize
        self.df = 1.0 / self.dL
        self.dist = diffDist
        self.lmb = waveLength
        self.k = np.pi * 2.0 / self.lmb
        self.matmul_dtype = np.dtype(matmul_dtype)
        # Lane-dense padded size (multiple of 128). Zero-padding the DFT
        # matrices / H is mathematically exact; output is sliced back to NxN.
        self.padded = max(_LANE, ((self.size + _LANE - 1) // _LANE) * _LANE)
        if complex_form == "auto":
            # Packed 4-multiply fills a 256-wide MXU when Np % 256 == 128;
            # Gauss (25% fewer FLOPs) when matmuls already fill the array.
            # TODO(synk): on v5e (128-wide MXU) "gauss" is preferable always.
            self.form = "packed" if (self.padded % 256 == 128) else "gauss"
        else:
            assert complex_form in ("packed", "gauss")
            self.form = complex_form
        self.H_z = self._init_H()
        self.const_packs = self._init_const_packs()

    # -- host-side constant construction ------------------------------------
    def _init_H(self):
        # Identical to the PyTorch module's InitH.
        N = self.size
        df, k, d, lmb = self.df, self.k, self.dist, self.lmb

        def phase(i, j):
            i = i - N // 2
            j = j - N // 2
            return i * df * (i * df) + j * df * (j * df)

        ph = np.fromfunction(phase, shape=(N, N), dtype=np.float32)
        H = np.exp(1j * k * d) * np.exp(-1j * lmb * np.pi * d * ph)
        return H

    def _init_const_packs(self):
        N, Np = self.size, self.padded
        I = np.eye(N)
        F = np.fft.fft(I, axis=0)            # DFT matrix
        Finv = np.fft.ifft(I, axis=0)        # inverse DFT matrix
        P = np.fft.fftshift(I, axes=0)       # P  @ a == fftshift(a)
        Pi = np.fft.ifftshift(I, axes=0)     # Pi @ a == ifftshift(a)
        Fs = P @ F                           # fftshift(fft2(x))   == Fs@x@Fs^T
        G = Finv @ Pi                        # ifft2(ifftshift(y)) == G @y@G^T

        def pad(M):
            out = np.zeros((Np, Np), dtype=np.complex128)
            out[:N, :N] = M
            return out

        md = self.matmul_dtype
        Fsp, Gp = pad(Fs), pad(G)
        Hp = pad(self.H_z)
        h_pack = jnp.asarray(np.stack([Hp.real, Hp.imag]), dtype=jnp.float32)

        if self.form == "packed":
            def rpack(M):       # (2Np, 2Np) block pack [[Mr, Mi], [-Mi, Mr]]
                Mr, Mi = M.real, M.imag
                top = np.concatenate([Mr, Mi], axis=1)
                bot = np.concatenate([-Mi, Mr], axis=1)
                return jnp.asarray(np.concatenate([top, bot], axis=0), dtype=md)

            def lpack(M):       # (2, Np, Np) = [Mr, Mi]
                return jnp.asarray(np.stack([M.real, M.imag]), dtype=md)

            return (rpack(Fsp.T), rpack(Gp.T), lpack(Fsp), lpack(Gp), h_pack)

        def gpack(M):           # (3, Np, Np) = [Mr, Mi, Mr+Mi] (Gauss planes)
            return jnp.asarray(np.stack([M.real, M.imag, M.real + M.imag]),
                               dtype=md)

        return (gpack(Fsp), gpack(Fsp.T), gpack(Gp), gpack(Gp.T), h_pack)

    # -- tiling / VMEM policy -------------------------------------------------
    def _pick_batch_tile(self, B):
        """Images per grid step.

        Np >= 256: compute dwarfs the ~0.35us/step overhead and the f32
        temporaries are large -> bt = 1.  Np == 128: batch up to 4 images per
        step, but keep >= 2 grid steps so a 2-TC chip (v7x) can split the
        'parallel' batch axis.
        """
        if self.padded >= 256:
            return 1
        for bt in range(min(B, 4), 0, -1):
            if B % bt == 0 and B // bt >= 2:
                return bt
        return 1

    def _vmem_limit_bytes(self, bt):
        Np = self.padded
        esz = self.matmul_dtype.itemsize
        plane_m = Np * Np * esz              # matmul-dtype plane
        plane_f = Np * Np * 4                # f32 plane
        if self.form == "packed":
            const = 12 * plane_m + 2 * plane_f     # RFST+RGT (8) + LFS+LG (4) + H
        else:
            const = 12 * plane_m + 2 * plane_f     # 4x Gauss packs (3 planes) + H
        # constants single-buffered; x / out double-buffered; + T scratch.
        io = 2 * (2 * bt * plane_m) + 2 * (2 * bt * plane_f)
        scratch = 2 * bt * plane_m
        live = 16 * plane_f                        # in-flight f32 temporaries
        est = int(1.5 * (const + io + scratch + live)) + (4 << 20)
        cap = _vmem_capacity_bytes() - (2 << 20)   # hardware-aware ceiling
        return int(min(max(est, 32 << 20), cap))

    # -- pallas_call construction --------------------------------------------
    def _pallas_forward(self, x_cat, B, bt, buffered_consts):
        Np = self.padded
        md = self.matmul_dtype
        grid = (B // bt,)

        def const_spec(shape):
            idx = lambda *s: (0,) * len(shape)
            if buffered_consts:
                try:
                    # constant index_map -> never a "next" block to prefetch.
                    return pl.BlockSpec(shape, idx, pipeline_mode=pl.Buffered(1))
                except Exception:
                    pass
            return pl.BlockSpec(shape, idx)

        io_spec = pl.BlockSpec((bt * Np, 2 * Np), lambda s: (s, 0))

        if self.form == "packed":
            kernel = functools.partial(diff_kernel_packed, bt=bt, n=Np)
            const_specs = [const_spec((2 * Np, 2 * Np)),
                           const_spec((2 * Np, 2 * Np)),
                           const_spec((2, Np, Np)),
                           const_spec((2, Np, Np)),
                           const_spec((2, Np, Np))]
        else:
            kernel = functools.partial(diff_kernel_gauss, bt=bt, n=Np)
            const_specs = [const_spec((3, Np, Np)) for _ in range(4)] \
                        + [const_spec((2, Np, Np))]

        call = pl.pallas_call(
            kernel,
            out_shape=jax.ShapeDtypeStruct((B * Np, 2 * Np), jnp.float32),
            grid=grid,
            in_specs=[io_spec] + const_specs,
            out_specs=io_spec,
            scratch_shapes=[pltpu.VMEM((bt * Np, 2 * Np), md)],
            compiler_params=pltpu.CompilerParams(
                dimension_semantics=("parallel",),
                vmem_limit_bytes=self._vmem_limit_bytes(bt)),
        )
        return call(x_cat, *self.const_packs)

    # -- forward --------------------------------------------------------------
    def forward(self, x):
        # x: (B, N, N) complex
        B, N, _ = x.shape
        Np = self.padded
        md = self.matmul_dtype

        xr = jnp.real(x).astype(jnp.float32)
        xi = jnp.imag(x).astype(jnp.float32)
        if Np != N:
            pad_w = ((0, 0), (0, Np - N), (0, Np - N))
            xr = jnp.pad(xr, pad_w)
            xi = jnp.pad(xi, pad_w)
        # Rows-stacked, lane-concat [real | imag] slab: (B*Np, 2*Np).
        x_cat = jnp.concatenate([xr, xi], axis=-1).reshape(B * Np, 2 * Np)
        x_cat = x_cat.astype(md)

        bt = self._pick_batch_tile(B)
        try:
            out_cat = self._pallas_forward(x_cat, B, bt, buffered_consts=True)
        except Exception:
            # TODO(synk): fallback for jax versions without BlockSpec
            # pipeline_mode / pl.Buffered support.
            out_cat = self._pallas_forward(x_cat, B, bt, buffered_consts=False)

        out = out_cat.reshape(B, Np, 2 * Np)
        out_c = (out[..., :Np] + 1j * out[..., Np:]).astype(jnp.complex64)
        return out_c[:, :N, :N]


if __name__ == "__main__":
    B, N = 2, 16
    key = jax.random.PRNGKey(0)
    kr, ki = jax.random.split(key)
    x = (jax.random.normal(kr, (B, N, N), jnp.float32)
         + 1j * jax.random.normal(ki, (B, N, N), jnp.float32))
    x = x.astype(jnp.complex64)

    # FFT reference (per-image semantics of the PyTorch module).
    layer_f32 = DiffLayer(pixelNum=N, pixelSize=8e-6, diffDist=0.05,
                          waveLength=532e-9, matmul_dtype=jnp.float32)
    H = jnp.asarray(layer_f32.H_z)
    x11 = jnp.fft.fftshift(jnp.fft.fft2(x), axes=(-2, -1))
    ref = jnp.fft.ifft2(jnp.fft.ifftshift(x11 * H, axes=(-2, -1)))

    # f32 DFT matrices, lane-packed 4-multiply path (Np == 128): strict check.
    y = jax.block_until_ready(layer_f32.forward(x))
    err = float(jnp.max(jnp.abs(y - ref)))
    assert err < 1e-3, f"f32 packed mismatch vs FFT reference: {err}"

    # f32 DFT matrices, forced Gauss 3-multiply path (Np%256==0 / v5e path).
    layer_g = DiffLayer(pixelNum=N, pixelSize=8e-6, diffDist=0.05,
                        waveLength=532e-9, matmul_dtype=jnp.float32,
                        complex_form="gauss")
    yg = jax.block_until_ready(layer_g.forward(x))
    errg = float(jnp.max(jnp.abs(yg - ref)))
    assert errg < 1e-3, f"f32 gauss mismatch vs FFT reference: {errg}"

    # Default bf16 DFT matrices (f32 accumulation): MXU fast path on all gens.
    layer_bf16 = DiffLayer(pixelNum=N, pixelSize=8e-6, diffDist=0.05,
                           waveLength=532e-9)
    y16 = jax.block_until_ready(layer_bf16.forward(x))
    rel = float(jnp.max(jnp.abs(y16 - ref)) / jnp.max(jnp.abs(ref)))
    assert rel < 5e-2, f"bf16 relative mismatch vs FFT reference: {rel}"

    print("KERNEL_OK")
</pallas_src>

<mosaic_0001>
module attributes {stable_mosaic.version = 11 : i64} {
  func.func @diff_kernel_packed(%arg0: i32, %arg1: memref<128x256xf32, #tpu.memory_space<vmem>>, %arg2: memref<256x256xf32, #tpu.memory_space<vmem>>, %arg3: memref<256x256xf32, #tpu.memory_space<vmem>>, %arg4: memref<2x128x128xf32, #tpu.memory_space<vmem>>, %arg5: memref<2x128x128xf32, #tpu.memory_space<vmem>>, %arg6: memref<2x128x128xf32, #tpu.memory_space<vmem>>, %arg7: memref<128x256xf32, #tpu.memory_space<vmem>>, %arg8: memref<128x256xf32, #tpu.memory_space<vmem>>) attributes {dimension_semantics = [#tpu.dimension_semantics<parallel>], iteration_bounds = array<i64: 2>, scalar_prefetch = 0 : i64, scratch_operands = 1 : i64, tpu.core_type = #tpu.core_type<tc>, window_params = [{transform_indices = @transform_0, window_bounds = array<i64: 128, 256>}, {pipeline_mode = #tpu.pipeline_mode<synchronous>, transform_indices = @transform_1, window_bounds = array<i64: 256, 256>}, {pipeline_mode = #tpu.pipeline_mode<synchronous>, transform_indices = @transform_2, window_bounds = array<i64: 256, 256>}, {pipeline_mode = #tpu.pipeline_mode<synchronous>, transform_indices = @transform_3, window_bounds = array<i64: 2, 128, 128>}, {pipeline_mode = #tpu.pipeline_mode<synchronous>, transform_indices = @transform_4, window_bounds = array<i64: 2, 128, 128>}, {pipeline_mode = #tpu.pipeline_mode<synchronous>, transform_indices = @transform_5, window_bounds = array<i64: 2, 128, 128>}, {transform_indices = @transform_6, window_bounds = array<i64: 128, 256>}]} {
    %c0 = arith.constant 0 : index
    %c0_0 = arith.constant 0 : index
    %c0_1 = arith.constant 0 : index
    %0 = vector.load %arg6[%c0, %c0_0, %c0_1] : memref<2x128x128xf32, #tpu.memory_space<vmem>>, vector<1x128x128xf32>
    %1 = vector.shape_cast %0 : vector<1x128x128xf32> to vector<128x128xf32>
    %c1 = arith.constant 1 : index
    %c0_2 = arith.constant 0 : index
    %c0_3 = arith.constant 0 : index
    %2 = vector.load %arg6[%c1, %c0_2, %c0_3] : memref<2x128x128xf32, #tpu.memory_space<vmem>>, vector<1x128x128xf32>
    %3 = vector.shape_cast %2 : vector<1x128x128xf32> to vector<128x128xf32>
    %c0_4 = arith.constant 0 : index
    %c0_5 = arith.constant 0 : index
    %4 = vector.load %arg1[%c0_4, %c0_5] : memref<128x256xf32, #tpu.memory_space<vmem>>, vector<128x256xf32>
    %c0_6 = arith.constant 0 : index
    %c0_7 = arith.constant 0 : index
    %5 = vector.load %arg2[%c0_6, %c0_7] : memref<256x256xf32, #tpu.memory_space<vmem>>, vector<256x256xf32>
    %cst = arith.constant dense<0.000000e+00> : vector<128x256xf32>
    %6 = tpu.matmul %4, %5, %cst {dimension_numbers = #tpu.dot_dimension_numbers<[1], [0], [0], [1], [0, 0, 1, 1], [], []>} : vector<128x256xf32>, vector<256x256xf32>, vector<128x256xf32> -> vector<128x256xf32>
    %c0_8 = arith.constant 0 : index
    %c0_9 = arith.constant 0 : index
    %7 = vector.load %arg8[%c0_8, %c0_9] : memref<128x256xf32, #tpu.memory_space<vmem>>, vector<128x256xf32>
    tpu.vector_store %arg8[%c0_8, %c0_9], %6 {strides = array<i32>} : memref<128x256xf32, #tpu.memory_space<vmem>>, vector<128x256xf32>,
    %c0_i32 = arith.constant 0 : i32
    %c128_i32 = arith.constant 128 : i32
    %8 = arith.muli %c0_i32, %c128_i32 : i32
    %9 = tpu.assume_multiple %8, 128 : i32
    %10 = arith.index_cast %9 : i32 to index
    %c0_10 = arith.constant 0 : index
    %11 = vector.load %arg8[%10, %c0_10] : memref<128x256xf32, #tpu.memory_space<vmem>>, vector<128x256xf32>
    %c0_11 = arith.constant 0 : index
    %c0_12 = arith.constant 0 : index
    %c0_13 = arith.constant 0 : index
    %12 = vector.load %arg4[%c0_11, %c0_12, %c0_13] : memref<2x128x128xf32, #tpu.memory_space<vmem>>, vector<1x128x128xf32>
    %13 = vector.shape_cast %12 : vector<1x128x128xf32> to vector<128x128xf32>
    %cst_14 = arith.constant dense<0.000000e+00> : vector<128x256xf32>
    %14 = tpu.matmul %13, %11, %cst_14 {dimension_numbers = #tpu.dot_dimension_numbers<[1], [0], [0], [1], [0, 0, 1, 1], [], []>} : vector<128x128xf32>, vector<128x256xf32>, vector<128x256xf32> -> vector<128x256xf32>
    %c1_15 = arith.constant 1 : index
    %c0_16 = arith.constant 0 : index
    %c0_17 = arith.constant 0 : index
    %15 = vector.load %arg4[%c1_15, %c0_16, %c0_17] : memref<2x128x128xf32, #tpu.memory_space<vmem>>, vector<1x128x128xf32>
    %16 = vector.shape_cast %15 : vector<1x128x128xf32> to vector<128x128xf32>
    %cst_18 = arith.constant dense<0.000000e+00> : vector<128x256xf32>
    %17 = tpu.matmul %16, %11, %cst_18 {dimension_numbers = #tpu.dot_dimension_numbers<[1], [0], [0], [1], [0, 0, 1, 1], [], []>} : vector<128x128xf32>, vector<128x256xf32>, vector<128x256xf32> -> vector<128x256xf32>
    %18 = vector.extract_strided_slice %14 {offsets = [0, 0], sizes = [128, 128], strides = [1, 1]} : vector<128x256xf32> to vector<128x128xf32>
    %19 = vector.extract_strided_slice %17 {offsets = [0, 128], sizes = [128, 128], strides = [1, 1]} : vector<128x256xf32> to vector<128x128xf32>
    %20 = arith.subf %18, %19 : vector<128x128xf32>
    %21 = vector.extract_strided_slice %14 {offsets = [0, 128], sizes = [128, 128], strides = [1, 1]} : vector<128x256xf32> to vector<128x128xf32>
    %22 = vector.extract_strided_slice %17 {offsets = [0, 0], sizes = [128, 128], strides = [1, 1]} : vector<128x256xf32> to vector<128x128xf32>
    %23 = arith.addf %21, %22 : vector<128x128xf32>
    %24 = arith.mulf %20, %1 : vector<128x128xf32>
    %25 = arith.mulf %23, %3 : vector<128x128xf32>
    %26 = arith.subf %24, %25 : vector<128x128xf32>
    %27 = arith.mulf %20, %3 : vector<128x128xf32>
    %28 = arith.mulf %23, %1 : vector<128x128xf32>
    %29 = arith.addf %27, %28 : vector<128x128xf32>
    %30 = tpu.concatenate %26, %29 in 1 : vector<128x128xf32>, vector<128x128xf32> -> vector<128x256xf32>
    %c0_19 = arith.constant 0 : index
    %c0_20 = arith.constant 0 : index
    %31 = vector.load %arg3[%c0_19, %c0_20] : memref<256x256xf32, #tpu.memory_space<vmem>>, vector<256x256xf32>
    %cst_21 = arith.constant dense<0.000000e+00> : vector<128x256xf32>
    %32 = tpu.matmul %30, %31, %cst_21 {dimension_numbers = #tpu.dot_dimension_numbers<[1], [0], [0], [1], [0, 0, 1, 1], [], []>} : vector<128x256xf32>, vector<256x256xf32>, vector<128x256xf32> -> vector<128x256xf32>
    %c0_22 = arith.constant 0 : index
    %c0_23 = arith.constant 0 : index
    %c0_24 = arith.constant 0 : index
    %33 = vector.load %arg5[%c0_22, %c0_23, %c0_24] : memref<2x128x128xf32, #tpu.memory_space<vmem>>, vector<1x128x128xf32>
    %34 = vector.shape_cast %33 : vector<1x128x128xf32> to vector<128x128xf32>
    %cst_25 = arith.constant dense<0.000000e+00> : vector<128x256xf32>
    %35 = tpu.matmul %34, %32, %cst_25 {dimension_numbers = #tpu.dot_dimension_numbers<[1], [0], [0], [1], [0, 0, 1, 1], [], []>} : vector<128x128xf32>, vector<128x256xf32>, vector<128x256xf32> -> vector<128x256xf32>
    %c1_26 = arith.constant 1 : index
    %c0_27 = arith.constant 0 : index
    %c0_28 = arith.constant 0 : index
    %36 = vector.load %arg5[%c1_26, %c0_27, %c0_28] : memref<2x128x128xf32, #tpu.memory_space<vmem>>, vector<1x128x128xf32>
    %37 = vector.shape_cast %36 : vector<1x128x128xf32> to vector<128x128xf32>
    %cst_29 = arith.constant dense<0.000000e+00> : vector<128x256xf32>
    %38 = tpu.matmul %37, %32, %cst_29 {dimension_numbers = #tpu.dot_dimension_numbers<[1], [0], [0], [1], [0, 0, 1, 1], [], []>} : vector<128x128xf32>, vector<128x256xf32>, vector<128x256xf32> -> vector<128x256xf32>
    %39 = vector.extract_strided_slice %35 {offsets = [0, 0], sizes = [128, 128], strides = [1, 1]} : vector<128x256xf32> to vector<128x128xf32>
    %40 = vector.extract_strided_slice %38 {offsets = [0, 128], sizes = [128, 128], strides = [1, 1]} : vector<128x256xf32> to vector<128x128xf32>
    %41 = arith.subf %39, %40 : vector<128x128xf32>
    %42 = vector.extract_strided_slice %35 {offsets = [0, 128], sizes = [128, 128], strides = [1, 1]} : vector<128x256xf32> to vector<128x128xf32>
    %43 = vector.extract_strided_slice %38 {offsets = [0, 0], sizes = [128, 128], strides = [1, 1]} : vector<128x256xf32> to vector<128x128xf32>
    %44 = arith.addf %42, %43 : vector<128x128xf32>
    %45 = tpu.concatenate %41, %44 in 1 : vector<128x128xf32>, vector<128x128xf32> -> vector<128x256xf32>
    %46 = arith.index_cast %9 : i32 to index
    %c0_30 = arith.constant 0 : index
    %47 = vector.load %arg7[%46, %c0_30] : memref<128x256xf32, #tpu.memory_space<vmem>>, vector<128x256xf32>
    tpu.vector_store %arg7[%46, %c0_30], %45 {strides = array<i32>} : memref<128x256xf32, #tpu.memory_space<vmem>>, vector<128x256xf32>,
    %c1_i32 = arith.constant 1 : i32
    return
  }
  func.func @transform_0(%arg0: i32) -> (i32, i32) {
    %c0_i32 = arith.constant 0 : i32
    %c0_i32_0 = arith.constant 0 : i32
    return %arg0, %c0_i32 : i32, i32
  }
  func.func @transform_1(%arg0: i32) -> (i32, i32) {
    %c0_i32 = arith.constant 0 : i32
    %c0_i32_0 = arith.constant 0 : i32
    %c0_i32_1 = arith.constant 0 : i32
    return %c0_i32, %c0_i32_0 : i32, i32
  }
  func.func @transform_2(%arg0: i32) -> (i32, i32) {
    %c0_i32 = arith.constant 0 : i32
    %c0_i32_0 = arith.constant 0 : i32
    %c0_i32_1 = arith.constant 0 : i32
    return %c0_i32, %c0_i32_0 : i32, i32
  }
  func.func @transform_3(%arg0: i32) -> (i32, i32, i32) {
    %c0_i32 = arith.constant 0 : i32
    %c0_i32_0 = arith.constant 0 : i32
    %c0_i32_1 = arith.constant 0 : i32
    %c0_i32_2 = arith.constant 0 : i32
    return %c0_i32, %c0_i32_0, %c0_i32_1 : i32, i32, i32
  }
  func.func @transform_4(%arg0: i32) -> (i32, i32, i32) {
    %c0_i32 = arith.constant 0 : i32
    %c0_i32_0 = arith.constant 0 : i32
    %c0_i32_1 = arith.constant 0 : i32
    %c0_i32_2 = arith.constant 0 : i32
    return %c0_i32, %c0_i32_0, %c0_i32_1 : i32, i32, i32
  }
  func.func @transform_5(%arg0: i32) -> (i32, i32, i32) {
    %c0_i32 = arith.constant 0 : i32
    %c0_i32_0 = arith.constant 0 : i32
    %c0_i32_1 = arith.constant 0 : i32
    %c0_i32_2 = arith.constant 0 : i32
    return %c0_i32, %c0_i32_0, %c0_i32_1 : i32, i32, i32
  }
  func.func @transform_6(%arg0: i32) -> (i32, i32) {
    %c0_i32 = arith.constant 0 : i32
    %c0_i32_0 = arith.constant 0 : i32
    return %arg0, %c0_i32 : i32, i32
  }
}

module attributes {stable_mosaic.version = 11 : i64} {
  func.func @diff_kernel_packed(%arg0: i32, %arg1: memref<128x256xf32, #tpu.memory_space<vmem>>, %arg2: memref<256x256xf32, #tpu.memory_space<vmem>>, %arg3: memref<256x256xf32, #tpu.memory_space<vmem>>, %arg4: memref<2x128x128xf32, #tpu.memory_space<vmem>>, %arg5: memref<2x128x128xf32, #tpu.memory_space<vmem>>, %arg6: memref<2x128x128xf32, #tpu.memory_space<vmem>>, %arg7: memref<128x256xf32, #tpu.memory_space<vmem>>, %arg8: memref<128x256xf32, #tpu.memory_space<vmem>>) attributes {dimension_semantics = [#tpu.dimension_semantics<parallel>], iteration_bounds = array<i64: 2>, scalar_prefetch = 0 : i64, scratch_operands = 1 : i64, tpu.core_type = #tpu.core_type<tc>, window_params = [{transform_indices = @transform_0, window_bounds = array<i64: 128, 256>}, {pipeline_mode = #tpu.pipeline_mode<synchronous>, transform_indices = @transform_1, window_bounds = array<i64: 256, 256>}, {pipeline_mode = #tpu.pipeline_mode<synchronous>, transform_indices = @transform_2, window_bounds = array<i64: 256, 256>}, {pipeline_mode = #tpu.pipeline_mode<synchronous>, transform_indices = @transform_3, window_bounds = array<i64: 2, 128, 128>}, {pipeline_mode = #tpu.pipeline_mode<synchronous>, transform_indices = @transform_4, window_bounds = array<i64: 2, 128, 128>}, {pipeline_mode = #tpu.pipeline_mode<synchronous>, transform_indices = @transform_5, window_bounds = array<i64: 2, 128, 128>}, {transform_indices = @transform_6, window_bounds = array<i64: 128, 256>}]} {
    %c0 = arith.constant 0 : index
    %c0_0 = arith.constant 0 : index
    %c0_1 = arith.constant 0 : index
    %0 = vector.load %arg6[%c0, %c0_0, %c0_1] : memref<2x128x128xf32, #tpu.memory_space<vmem>>, vector<1x128x128xf32>
    %1 = vector.shape_cast %0 : vector<1x128x128xf32> to vector<128x128xf32>
    %c1 = arith.constant 1 : index
    %c0_2 = arith.constant 0 : index
    %c0_3 = arith.constant 0 : index
    %2 = vector.load %arg6[%c1, %c0_2, %c0_3] : memref<2x128x128xf32, #tpu.memory_space<vmem>>, vector<1x128x128xf32>
    %3 = vector.shape_cast %2 : vector<1x128x128xf32> to vector<128x128xf32>
    %c0_4 = arith.constant 0 : index
    %c0_5 = arith.constant 0 : index
    %4 = vector.load %arg1[%c0_4, %c0_5] : memref<128x256xf32, #tpu.memory_space<vmem>>, vector<128x256xf32>
    %c0_6 = arith.constant 0 : index
    %c0_7 = arith.constant 0 : index
    %5 = vector.load %arg2[%c0_6, %c0_7] : memref<256x256xf32, #tpu.memory_space<vmem>>, vector<256x256xf32>
    %cst = arith.constant dense<0.000000e+00> : vector<128x256xf32>
    %6 = tpu.matmul %4, %5, %cst {dimension_numbers = #tpu.dot_dimension_numbers<[1], [0], [0], [1], [0, 0, 1, 1], [], []>} : vector<128x256xf32>, vector<256x256xf32>, vector<128x256xf32> -> vector<128x256xf32>
    %c0_8 = arith.constant 0 : index
    %c0_9 = arith.constant 0 : index
    %7 = vector.load %arg8[%c0_8, %c0_9] : memref<128x256xf32, #tpu.memory_space<vmem>>, vector<128x256xf32>
    tpu.vector_store %arg8[%c0_8, %c0_9], %6 {strides = array<i32>} : memref<128x256xf32, #tpu.memory_space<vmem>>, vector<128x256xf32>,
    %c0_i32 = arith.constant 0 : i32
    %c128_i32 = arith.constant 128 : i32
    %8 = arith.muli %c0_i32, %c128_i32 : i32
    %9 = tpu.assume_multiple %8, 128 : i32
    %10 = arith.index_cast %9 : i32 to index
    %c0_10 = arith.constant 0 : index
    %11 = vector.load %arg8[%10, %c0_10] : memref<128x256xf32, #tpu.memory_space<vmem>>, vector<128x256xf32>
    %c0_11 = arith.constant 0 : index
    %c0_12 = arith.constant 0 : index
    %c0_13 = arith.constant 0 : index
    %12 = vector.load %arg4[%c0_11, %c0_12, %c0_13] : memref<2x128x128xf32, #tpu.memory_space<vmem>>, vector<1x128x128xf32>
    %13 = vector.shape_cast %12 : vector<1x128x128xf32> to vector<128x128xf32>
    %cst_14 = arith.constant dense<0.000000e+00> : vector<128x256xf32>
    %14 = tpu.matmul %13, %11, %cst_14 {dimension_numbers = #tpu.dot_dimension_numbers<[1], [0], [0], [1], [0, 0, 1, 1], [], []>} : vector<128x128xf32>, vector<128x256xf32>, vector<128x256xf32> -> vector<128x256xf32>
    %c1_15 = arith.constant 1 : index
    %c0_16 = arith.constant 0 : index
    %c0_17 = arith.constant 0 : index
    %15 = vector.load %arg4[%c1_15, %c0_16, %c0_17] : memref<2x128x128xf32, #tpu.memory_space<vmem>>, vector<1x128x128xf32>
    %16 = vector.shape_cast %15 : vector<1x128x128xf32> to vector<128x128xf32>
    %cst_18 = arith.constant dense<0.000000e+00> : vector<128x256xf32>
    %17 = tpu.matmul %16, %11, %cst_18 {dimension_numbers = #tpu.dot_dimension_numbers<[1], [0], [0], [1], [0, 0, 1, 1], [], []>} : vector<128x128xf32>, vector<128x256xf32>, vector<128x256xf32> -> vector<128x256xf32>
    %18 = vector.extract_strided_slice %14 {offsets = [0, 0], sizes = [128, 128], strides = [1, 1]} : vector<128x256xf32> to vector<128x128xf32>
    %19 = vector.extract_strided_slice %17 {offsets = [0, 128], sizes = [128, 128], strides = [1, 1]} : vector<128x256xf32> to vector<128x128xf32>
    %20 = arith.subf %18, %19 : vector<128x128xf32>
    %21 = vector.extract_strided_slice %14 {offsets = [0, 128], sizes = [128, 128], strides = [1, 1]} : vector<128x256xf32> to vector<128x128xf32>
    %22 = vector.extract_strided_slice %17 {offsets = [0, 0], sizes = [128, 128], strides = [1, 1]} : vector<128x256xf32> to vector<128x128xf32>
    %23 = arith.addf %21, %22 : vector<128x128xf32>
    %24 = arith.mulf %20, %1 : vector<128x128xf32>
    %25 = arith.mulf %23, %3 : vector<128x128xf32>
    %26 = arith.subf %24, %25 : vector<128x128xf32>
    %27 = arith.mulf %20, %3 : vector<128x128xf32>
    %28 = arith.mulf %23, %1 : vector<128x128xf32>
    %29 = arith.addf %27, %28 : vector<128x128xf32>
    %30 = tpu.concatenate %26, %29 in 1 : vector<128x128xf32>, vector<128x128xf32> -> vector<128x256xf32>
    %c0_19 = arith.constant 0 : index
    %c0_20 = arith.constant 0 : index
    %31 = vector.load %arg3[%c0_19, %c0_20] : memref<256x256xf32, #tpu.memory_space<vmem>>, vector<256x256xf32>
    %cst_21 = arith.constant dense<0.000000e+00> : vector<128x256xf32>
    %32 = tpu.matmul %30, %31, %cst_21 {dimension_numbers = #tpu.dot_dimension_numbers<[1], [0], [0], [1], [0, 0, 1, 1], [], []>} : vector<128x256xf32>, vector<256x256xf32>, vector<128x256xf32> -> vector<128x256xf32>
    %c0_22 = arith.constant 0 : index
    %c0_23 = arith.constant 0 : index
    %c0_24 = arith.constant 0 : index
    %33 = vector.load %arg5[%c0_22, %c0_23, %c0_24] : memref<2x128x128xf32, #tpu.memory_space<vmem>>, vector<1x128x128xf32>
    %34 = vector.shape_cast %33 : vector<1x128x128xf32> to vector<128x128xf32>
    %cst_25 = arith.constant dense<0.000000e+00> : vector<128x256xf32>
    %35 = tpu.matmul %34, %32, %cst_25 {dimension_numbers = #tpu.dot_dimension_numbers<[1], [0], [0], [1], [0, 0, 1, 1], [], []>} : vector<128x128xf32>, vector<128x256xf32>, vector<128x256xf32> -> vector<128x256xf32>
    %c1_26 = arith.constant 1 : index
    %c0_27 = arith.constant 0 : index
    %c0_28 = arith.constant 0 : index
    %36 = vector.load %arg5[%c1_26, %c0_27, %c0_28] : memref<2x128x128xf32, #tpu.memory_space<vmem>>, vector<1x128x128xf32>
    %37 = vector.shape_cast %36 : vector<1x128x128xf32> to vector<128x128xf32>
    %cst_29 = arith.constant dense<0.000000e+00> : vector<128x256xf32>
    %38 = tpu.matmul %37, %32, %cst_29 {dimension_numbers = #tpu.dot_dimension_numbers<[1], [0], [0], [1], [0, 0, 1, 1], [], []>} : vector<128x128xf32>, vector<128x256xf32>, vector<128x256xf32> -> vector<128x256xf32>
    %39 = vector.extract_strided_slice %35 {offsets = [0, 0], sizes = [128, 128], strides = [1, 1]} : vector<128x256xf32> to vector<128x128xf32>
    %40 = vector.extract_strided_slice %38 {offsets = [0, 128], sizes = [128, 128], strides = [1, 1]} : vector<128x256xf32> to vector<128x128xf32>
    %41 = arith.subf %39, %40 : vector<128x128xf32>
    %42 = vector.extract_strided_slice %35 {offsets = [0, 128], sizes = [128, 128], strides = [1, 1]} : vector<128x256xf32> to vector<128x128xf32>
    %43 = vector.extract_strided_slice %38 {offsets = [0, 0], sizes = [128, 128], strides = [1, 1]} : vector<128x256xf32> to vector<128x128xf32>
    %44 = arith.addf %42, %43 : vector<128x128xf32>
    %45 = tpu.concatenate %41, %44 in 1 : vector<128x128xf32>, vector<128x128xf32> -> vector<128x256xf32>
    %46 = arith.index_cast %9 : i32 to index
    %c0_30 = arith.constant 0 : index
    %47 = vector.load %arg7[%46, %c0_30] : memref<128x256xf32, #tpu.memory_space<vmem>>, vector<128x256xf32>
    tpu.vector_store %arg7[%46, %c0_30], %45 {strides = array<i32>} : memref<128x256xf32, #tpu.memory_space<vmem>>, vector<128x256xf32>,
    %c1_i32 = arith.constant 1 : i32
    return
  }
  func.func @transform_0(%arg0: i32) -> (i32, i32) {
    %c0_i32 = arith.constant 0 : i32
    %c0_i32_0 = arith.constant 0 : i32
    return %arg0, %c0_i32 : i32, i32
  }
  func.func @transform_1(%arg0: i32) -> (i32, i32) {
    %c0_i32 = arith.constant 0 : i32
    %c0_i32_0 = arith.constant 0 : i32
    %c0_i32_1 = arith.constant 0 : i32
    return %c0_i32, %c0_i32_0 : i32, i32
  }
  func.func @transform_2(%arg0: i32) -> (i32, i32) {
    %c0_i32 = arith.constant 0 : i32
    %c0_i32_0 = arith.constant 0 : i32
    %c0_i32_1 = arith.constant 0 : i32
    return %c0_i32, %c0_i32_0 : i32, i32
  }
  func.func @transform_3(%arg0: i32) -> (i32, i32, i32) {
    %c0_i32 = arith.constant 0 : i32
    %c0_i32_0 = arith.constant 0 : i32
    %c0_i32_1 = arith.constant 0 : i32
    %c0_i32_2 = arith.constant 0 : i32
    return %c0_i32, %c0_i32_0, %c0_i32_1 : i32, i32, i32
  }
  func.func @transform_4(%arg0: i32) -> (i32, i32, i32) {
    %c0_i32 = arith.constant 0 : i32
    %c0_i32_0 = arith.constant 0 : i32
    %c0_i32_1 = arith.constant 0 : i32
    %c0_i32_2 = arith.constant 0 : i32
    return %c0_i32, %c0_i32_0, %c0_i32_1 : i32, i32, i32
  }
  func.func @transform_5(%arg0: i32) -> (i32, i32, i32) {
    %c0_i32 = arith.constant 0 : i32
    %c0_i32_0 = arith.constant 0 : i32
    %c0_i32_1 = arith.constant 0 : i32
    %c0_i32_2 = arith.constant 0 : i32
    return %c0_i32, %c0_i32_0, %c0_i32_1 : i32, i32, i32
  }
  func.func @transform_6(%arg0: i32) -> (i32, i32) {
    %c0_i32 = arith.constant 0 : i32
    %c0_i32_0 = arith.constant 0 : i32
    return %arg0, %c0_i32 : i32, i32
  }
}

</mosaic_0001>

<bundles_post_ra>
// kernel: tpu_custom_call.1
= control target key start
LH: loop header
LB: loop body
LE: loop exit
PB: predicated region body
PF: predicated region fallthrough
CT: control target
= control target key end

     0   :  { %11 = vsyncpa [#allocation4], 0  ;;  %s3282_s0 = inlined_call_operand.hbm [shape: f32[256,256], index: 0, kind: input, shape index: {}]   ;;  %s3283_s1 = inlined_call_operand.hbm [shape: f32[256,256], index: 1, kind: input, shape index: {}]   ;;  %s3284_s2 = inlined_call_operand.hbm [shape: f32[256,256], index: 2, kind: input, shape index: {}]   ;;  %s3285_s3 = inlined_call_operand.hbm [shape: f32[2,128,128], index: 3, kind: input, shape index: {}]   ;;  %s3286_s4 = inlined_call_operand.hbm [shape: f32[2,128,128], index: 4, kind: input, shape index: {}]   ;;  %s3287_s5 = inlined_call_operand.hbm [shape: f32[2,128,128], index: 5, kind: input, shape index: {}]   ;;  %s3288_s6 = inlined_call_operand.hbm [shape: f32[256,256], index: 6, kind: output, shape index: {}]  }
   0x1   :  { %13 = vsyncpa [#allocation4 + $0x1], 0 }
   0x2   :  { %14 = vsyncpa [#allocation7], 0 }
   0x3   :  { %15 = vsyncpa [#allocation10], 0 }
   0x4   :  { %16 = vsyncpa [#allocation13], 0 }
   0x5   :  { %17 = vsyncpa [#allocation5], 0 }
   0x6   :  { %19 = vsyncpa [#allocation5 + $0x1], 0  ;;  %s2673_s21 = smov 0   ;;  %s2675_s22 = smov 0  }
   0x7   :  { %s2677_s23 = smov 0   ;;  %s2679_s24 = smov 0  }
   0x8 LB: > { %s2624_s25 = smov [#allocation6]   ;;  %s2694_s27 = sadd.s32 4294967295, %s2622_s24   ;;  %s2622_s24 = sphi %s2679_s24, %s3316_s24   ;;  %s2618_s23 = sphi %s2677_s23, %s3315_s23   ;;  %s2614_s22 = sphi %s2675_s22, %s3314_s22   ;;  %s2610_s21 = sphi %s2673_s21, %s3313_s21  }
   0x9   : > { %s199_s26 = sshll.u32 %s2624_s25, 4  ;;  %p1969_p0 = scmp.ge.s32.totalorder %s2622_s24, 1  ;;  %s2699_s26 = int_to_ptr.vmem [resolvable:$true] %s199_s26 }
   0xa   : > { %p3289_p1 = scmp.eq.s32.totalorder %s2694_s27, 0  ;;  %p187_p2 = scmp.lt.s32.totalorder %s2622_s24, 3 }
   0xb   : > { %s2625_s29 = smov [#allocation9]   ;;  %s2626_s8 = smov [#allocation8]  }
   0xc   : > { %p2701_p3 = pnand %p1969_p0, %p187_p2  ;;  %s225_s30 = sshll.u32 %s2625_s29, 4  ;;  %s2714_s30 = int_to_ptr.vmem [resolvable:$true] %s225_s30 }
   0xd   : > { %s2716_s9 = sshll.u32 %s2626_s8, 4  ;;  %s2374_s12 = scalar_lea.hbm %s3283_s1, 8192  ;;  %s213_s9 = int_to_ptr.vmem [resolvable:$true] %s2716_s9 }
   0xe   : > { %s3294_s28 = scalar_select %p2701_p3, 1, 0 }
   0xf   : > { %p2294_p5 = pneg %p2701_p3  ;;  %p2375_p7 = scmp.ne.s32.totalorder %s3283_s1, %s2374_s12 }
  0x10   : > { %p2381_p11 = scmp.lt.u32.totalorder %s2374_s12, %s3283_s1 }
  0x11   : > { %p2710_p6 = pnand %p2294_p5, %p3289_p1 }
  0x13   : > { %p2726_p8 = pneg %p2710_p6 }
  0x15   : > { %p2377_p9 = pnand %p2726_p8, %p2375_p7 }
  0x17   : > { %p2378_p10 = pneg %p2377_p9 }
  0x19   : > { %p2383_p12 = pnand %p2381_p11, %p2378_p10 }
  0x1b   : > { %2386 = shalt.err (!%p2383_p12)
}
  0x1c   : > { %s2387_s18 = scalar_lea.vmem %s2699_s26, 8192  ;;  %p2395_p5 = scmp.lt.s32.totalorder %s2699_s26, %s2699_s26 }
  0x1d   : > { %p2388_p13 = scmp.ne.s32.totalorder %s2699_s26, %s2387_s18  ;;  %p2396_p4 = scmp.lt.s32.totalorder %s2387_s18, %s2387_s18 }
  0x1f   : > { %p2390_p0 = pnand %p2388_p13, %p2726_p8  ;;  %p2397_p7 = por %p2396_p4, %p2395_p5 }
  0x21   : > { %p2391_p2 = pneg %p2390_p0 }
  0x23   : > { %p2398_p9 = pnand %p2397_p7, %p2391_p2 }
  0x25   : > { %2401 = shalt.err (!%p2398_p9)
}
  0x26   : > { %s2627_s19 = smov 256   ;;  %s2628_s20 = smov 16  }
  0x27   : > { %2297 = dma.hbm_to_vmem [thread:$0]  (!%p2710_p6), %s3283_s1, 8192, %s2699_s26, [#allocation7], %s2627_s19, %s2627_s19, %s2628_s20  }
  0x28   : > { %s2402_s11 = scalar_lea.hbm %s3285_s3, 4096 }
  0x29   : > { %p2403_p4 = scmp.ne.s32.totalorder %s3285_s3, %s2402_s11  ;;  %p2409_p12 = scmp.lt.u32.totalorder %s2402_s11, %s3285_s3 }
  0x2b   : > { %p2405_p10 = pnand %p2403_p4, %p2726_p8 }
  0x2d   : > { %p2406_p11 = pneg %p2405_p10 }
  0x2f   : > { %p2411_p13 = pnand %p2409_p12, %p2406_p11 }
  0x31   : > { %2414 = shalt.err (!%p2411_p13)
}
  0x32   : > { %s2415_s26 = scalar_lea.vmem %s2714_s30, 4096  ;;  %p2423_p7 = scmp.lt.s32.totalorder %s2714_s30, %s2714_s30 }
  0x33   : > { %p2416_p0 = scmp.ne.s32.totalorder %s2714_s30, %s2415_s26  ;;  %p2424_p9 = scmp.lt.s32.totalorder %s2415_s26, %s2415_s26 }
  0x35   : > { %p2418_p2 = pnand %p2416_p0, %p2726_p8  ;;  %p2425_p4 = por %p2424_p9, %p2423_p7 }
  0x37   : > { %p2419_p5 = pneg %p2418_p2 }
  0x39   : > { %p2426_p10 = pnand %p2425_p4, %p2419_p5 }
  0x3b   : > { %2429 = shalt.err (!%p2426_p10)
}
  0x3c   : > { %s3291_s17 = smov 128   ;;  %s2630_s18 = smov 8  }
  0x3d   : > { %2303 = dma.hbm_to_vmem [thread:$0]  (!%p2710_p6), %s3285_s3, 4096, %s2714_s30, [#allocation10], %s3291_s17, %s3291_s17, %s2630_s18  }
  0x3e   : > { %s2430_s11 = scalar_lea.hbm %s3284_s2, 8192 }
  0x3f   : > { %p2431_p11 = scmp.ne.s32.totalorder %s3284_s2, %s2430_s11  ;;  %p2437_p0 = scmp.lt.u32.totalorder %s2430_s11, %s3284_s2 }
  0x41   : > { %p2433_p12 = pnand %p2431_p11, %p2726_p8 }
  0x43   : > { %p2434_p13 = pneg %p2433_p12 }
  0x45   : > { %p2439_p2 = pnand %p2437_p0, %p2434_p13 }
  0x47   : > { %2442 = shalt.err (!%p2439_p2)
}
  0x48   : > { %s2443_s26 = scalar_lea.vmem %s213_s9, 8192  ;;  %p2451_p4 = scmp.lt.s32.totalorder %s213_s9, %s213_s9 }
  0x49   : > { %p2444_p5 = scmp.ne.s32.totalorder %s213_s9, %s2443_s26  ;;  %p2452_p10 = scmp.lt.s32.totalorder %s2443_s26, %s2443_s26 }
  0x4b   : > { %p2446_p7 = pnand %p2444_p5, %p2726_p8  ;;  %p2453_p1 = por %p2452_p10, %p2451_p4 }
  0x4d   : > { %p2447_p9 = pneg %p2446_p7 }
  0x4f   : > { %p2454_p3 = pnand %p2453_p1, %p2447_p9 }
  0x51   : > { %2457 = shalt.err (!%p2454_p3)
}
  0x52   : > { %2300 = dma.hbm_to_vmem [thread:$0]  (!%p2710_p6), %s3284_s2, 8192, %s213_s9, [#allocation7], %s2627_s19, %s2627_s19, %s2628_s20  }
  0x53   : > { %s2631_s29 = smov [#allocation11]   ;;  %s2632_s10 = smov [#allocation12]  }
  0x54   : > { %s238_s8 = sshll.u32 %s2631_s29, 4  ;;  %s251_s11 = sshll.u32 %s2632_s10, 4  ;;  %s239_s8 = int_to_ptr.vmem [resolvable:$true] %s238_s8  ;;  %s252_s11 = int_to_ptr.vmem [resolvable:$true] %s251_s11 }
  0x55   : > { %s2458_s14 = scalar_lea.hbm %s3286_s4, 4096 }
  0x56   : > { %p2459_p1 = scmp.ne.s32.totalorder %s3286_s4, %s2458_s14  ;;  %p2465_p12 = scmp.lt.u32.totalorder %s2458_s14, %s3286_s4 }
  0x58   : > { %p2461_p3 = pnand %p2459_p1, %p2726_p8 }
  0x5a   : > { %p2462_p11 = pneg %p2461_p3 }
  0x5c   : > { %p2467_p13 = pnand %p2465_p12, %p2462_p11 }
  0x5e   : > { %2470 = shalt.err (!%p2467_p13)
}
  0x5f   : > { %s2471_s9 = scalar_lea.vmem %s239_s8, 4096  ;;  %p2479_p7 = scmp.lt.s32.totalorder %s239_s8, %s239_s8 }
  0x60   : > { %p2472_p0 = scmp.ne.s32.totalorder %s239_s8, %s2471_s9  ;;  %p2480_p9 = scmp.lt.s32.totalorder %s2471_s9, %s2471_s9 }
  0x62   : > { %p2474_p2 = pnand %p2472_p0, %p2726_p8  ;;  %p2481_p4 = por %p2480_p9, %p2479_p7 }
  0x64   : > { %p2475_p5 = pneg %p2474_p2 }
  0x66   : > { %p2482_p10 = pnand %p2481_p4, %p2475_p5 }
  0x68   : > { %2485 = shalt.err (!%p2482_p10)
}
  0x69   : > { %s3297_s25 = smov 128   ;;  %s2486_s13 = scalar_lea.hbm %s3287_s5, 4096 }
  0x6a   : > { %2306 = dma.hbm_to_vmem [thread:$0]  (!%p2710_p6), %s3286_s4, 4096, %s239_s8, [#allocation10], %s3297_s25, %s3297_s25, %s2630_s18  }
  0x6b   : > { %p2487_p1 = scmp.ne.s32.totalorder %s3287_s5, %s2486_s13  ;;  %p2493_p12 = scmp.lt.u32.totalorder %s2486_s13, %s3287_s5 }
  0x6d   : > { %p2489_p3 = pnand %p2487_p1, %p2726_p8 }
  0x6f   : > { %p2490_p11 = pneg %p2489_p3 }
  0x71   : > { %p2495_p13 = pnand %p2493_p12, %p2490_p11 }
  0x73   : > { %2498 = shalt.err (!%p2495_p13)
}
  0x74   : > { %s2499_s9 = scalar_lea.vmem %s252_s11, 4096  ;;  %p2507_p7 = scmp.lt.s32.totalorder %s252_s11, %s252_s11 }
  0x75   : > { %p2500_p0 = scmp.ne.s32.totalorder %s252_s11, %s2499_s9  ;;  %p2508_p9 = scmp.lt.s32.totalorder %s2499_s9, %s2499_s9 }
  0x77   : > { %p2502_p2 = pnand %p2500_p0, %p2726_p8  ;;  %p2509_p4 = por %p2508_p9, %p2507_p7 }
  0x79   : > { %p2503_p5 = pneg %p2502_p2 }
  0x7b   : > { %p2510_p10 = pnand %p2509_p4, %p2503_p5 }
  0x7d   : > { %2513 = shalt.err (!%p2510_p10)
}
  0x7e   : > { %2309 = dma.hbm_to_vmem [thread:$0]  (!%p2710_p6), %s3287_s5, 4096, %s252_s11, [#allocation13], %s3297_s25, %s3297_s25, %s2630_s18  }
  0x7f   : > { %s1968_s7 = sadd.s32 4294967294, %s2622_s24   ;;  %s2842_s15 = sadd.s32 1, %s2622_s24  }
  0x80   : > { %s32_s29 = sadd.s32 1, %s2618_s23  ;;  %s29_s10 = ssub.s32 %s2622_s24, %s2842_s15 }
  0x81   : > { %p39_p8 = scmp.ne.s32.totalorder %s2618_s23, %s2614_s22  ;;  %p30_p1 = scmp.eq.s32.totalorder %s29_s10, 0 }
  0x82   : > { %p40_p3 = scmp.eq.s32.totalorder %s2622_s24, 0  ;;  %p45_p11 = scmp.ne.s32.totalorder %s2614_s22, %s2610_s21 }
  0x83   : > { %p174_p12 = scmp.eq.s32.totalorder %s2694_s27, 1  ;;  %p3298_p0 = scmp.eq.s32.totalorder %s2694_s27, 0 }
  0x84   : > { %s2854_s12 = scalar_select %p30_p1, %s2618_s23, %s32_s29  }
  0x85   : > { %p41_p13 = por %p40_p3, %p39_p8  ;;  %p2858_p2 = por %p3298_p0, %p45_p11 }
  0x86   : > { %p2862_p6 = por %p174_p12, %p39_p8  ;;  %p180_p5 = scmp.eq.s32.totalorder %s1968_s7, 1 }
  0x87   : > { %p2323_p7 = scmp.lt.s32.totalorder %s2622_s24, 2  ;;  %s265_s11 = sand.u32 1, %s2618_s23  }
  0x88   : > { %s3300_s18 = scalar_select %p2862_p6, 1, 0 }
  0x89   : > { %p2868_p9 = por %p180_p5, %p45_p11  ;;  %s1976_s14 = sshll.u32 %s265_s11, 8 }
  0x8a   : > { %s1995_s16 = sshll.u32 %s2622_s24, 12  ;;  %s269_s8 = scalar_lea.vmem [#allocation3], %s1976_s14 }
  0x8b   : > { %s3301_s25 = scalar_select %p2868_p9, 1, 0 }
  0x8c   : > { %s2876_s9 = scalar_lea.hbm %s3282_s0, %s1995_s16  ;;  %s277_s17 = sshll.u32 %s269_s8, 4  ;;  %s2882_s17 = int_to_ptr.vmem [resolvable:$true] %s277_s17 }
  0x8d   : > { %p2878_p4 = pnand %p2323_p7, %p41_p13  ;;  %s2884_s29 = scalar_lea.sflag [#allocation4], %s265_s11 }
  0x8e   : > { %s2514_s10 = scalar_lea.hbm %s2876_s9, 4096  ;;  %s2519_s26 = scalar_lea.hbm %s3282_s0, 8192 }
  0x8f   : > { %p2515_p10 = scmp.ne.s32.totalorder %s2876_s9, %s2514_s10  ;;  %p2516_p8 = pneg %p2878_p4 }
  0x90   : > { %p2520_p11 = scmp.lt.u32.totalorder %s2876_s9, %s3282_s0  ;;  %p2521_p12 = scmp.lt.u32.totalorder %s2519_s26, %s2514_s10 }
  0x91   : > { %p2517_p1 = pnand %p2516_p8, %p2515_p10  ;;  %p2523_p0 = scmp.lt.u32.totalorder %s2514_s10, %s2876_s9 }
  0x92   : > { %p2522_p13 = por %p2521_p12, %p2520_p11 }
  0x93   : > { %p2518_p3 = pneg %p2517_p1 }
  0x94   : > { %p2524_p5 = por %p2523_p0, %p2522_p13 }
  0x96   : > { %p2525_p7 = pnand %p2524_p5, %p2518_p3 }
  0x98   : > { %2528 = shalt.err (!%p2525_p7)
}
  0x99   : > { %s2529_s11 = scalar_lea.vmem %s2882_s17, 4096  ;;  %s2633_s14 = smov [#allocation3]  }
  0x9a   : > { %p2530_p10 = scmp.ne.s32.totalorder %s2882_s17, %s2529_s11  ;;  %s2534_s16 = sshll.u32 %s2633_s14, 4  ;;  %s2535_s16 = int_to_ptr.vmem [resolvable:$false] %s2534_s16 }
  0x9b   : > { %s2536_s30 = scalar_lea.vmem %s2535_s16, 8192  ;;  %p2537_p6 = scmp.lt.s32.totalorder %s2882_s17, %s2535_s16 }
  0x9c   : > { %p2532_p1 = pnand %p2530_p10, %p2516_p8  ;;  %p2538_p11 = scmp.lt.s32.totalorder %s2536_s30, %s2529_s11 }
  0x9e   : > { %p2533_p9 = pneg %p2532_p1  ;;  %p2539_p12 = por %p2538_p11, %p2537_p6 }
  0xa0   : > { %p2540_p13 = pnand %p2539_p12, %p2533_p9 }
  0xa2   : > { %2543 = shalt.err (!%p2540_p13)
}
  0xa3   : > { %2313 = dma.hbm_to_vmem [thread:$0]  (!%p2878_p4), %s2876_s9, 4096, %s2882_s17, %s2884_s29, %s2627_s19, %s2627_s19, %s2628_s20  }
  0xa4   : > { %p3303_p8 = scmp.ne.s32.totalorder %s3294_s28, 0 }
  0xa5   : > { %s2918_s10 = sand.u32 (!%p3303_p8), 1, %s2614_s22  }
  0xa6   : > { %289 = sbr.rel (%p3303_p8) target bundleno = 1399 (0x577), region = 44  ;;  %s1981_s26 = sshll.u32 (!%p3303_p8), %s2918_s10, 8 }
  0xa7   : > { %s292_s8 = scalar_lea.sflag (!%p3303_p8), [#allocation4], %s2918_s10  ;;  %s2924_s7 = scalar_lea.vmem (!%p3303_p8), [#allocation3], %s1981_s26 }
  0xad   : > { %2589 = dma.done.wait (%p2858_p2), %s292_s8, 4096  }
  0xae   : > { %2591 = vsyncadd (%p2858_p2), %s292_s8, 4294963200  ;;  %p3304_p6 = scmp.eq.s32.totalorder %s2694_s27, 0 }
  0xb0   : > { %2593 = dma.done.wait (%p3304_p6), [#allocation7], 16384   ;;  %p3305_p9 = pmov %p3304_p6 }
  0xb1   : > { %p3306_p4 = pmov %p3304_p6 }
  0xb2   : > { %2595 = vsyncadd (%p3305_p9), [#allocation7], 4294950912 }
  0xb3   : > { %2597 = dma.done.wait (%p3306_p4), [#allocation10], 8192   ;;  %p3307_p3 = pmov %p3306_p4 }
  0xb5   : > { %2599 = vsyncadd (%p3307_p3), [#allocation10], 4294959104  ;;  %p3308_p0 = pmov %p3307_p3 }
  0xb7   : > { %2601 = dma.done.wait (%p3308_p0), [#allocation13], 4096   ;;  %p3309_p5 = pmov %p3308_p0 }
  0xb8   : > { %v412_v0 = vld [vmem:[#allocation6 + $0x8] sm:$0xff]  ;;  %v414_v1 = vld [vmem:[#allocation6 + $0x18] sm:$0xff]  ;;  %v411_v2 = vld [vmem:[#allocation6] sm:$0xff]  ;;  %s3197_s28 = scalar_lea.vmem [#allocation14], %s1981_s26  ;;  %s1997_s19 = sshll.u32 %s2694_s27, 12 }
  0xb9   : > { %2603 = vsyncadd (%p3309_p5), [#allocation13], 4294963200  ;;  %v1998_v3 = vpack.c.bf16 %v414_v1, %v412_v0  ;;  %v413_v4 = vld [vmem:[#allocation6 + $0x10] sm:$0xff]  ;;  %v416_v5 = vld [vmem:[#allocation6 + $0x28] sm:$0xff]  ;;  %s1847_s20 = sshll.u32 %s3197_s28, 4  ;;  %s3234_s17 = scalar_lea.hbm %s3288_s6, %s1997_s19  ;;  %s3236_s20 = int_to_ptr.vmem [resolvable:$true] %s1847_s20 }
  0xba   : > { %v418_v6 = vld [vmem:[#allocation6 + $0x38] sm:$0xff]  ;;  %v2000_v7 = vpack.c.bf16 %v413_v4, %v411_v2  ;;  %v415_v9 = vld [vmem:[#allocation6 + $0x20] sm:$0xff]  ;;  %v417_v10 = vld [vmem:[#allocation6 + $0x30] sm:$0xff]  ;;  %s1833_s27 = scalar_lea.sflag [#allocation5], %s2918_s10  ;;  %s2544_s29 = scalar_lea.vmem %s3236_s20, 4096 }
  0xbb   : > { %v2002_v8 = vpack.c.bf16 %v418_v6, %v416_v5  ;;  %v420_v11 = vld [vmem:[#allocation6 + $0x48] sm:$0xff]  ;;  %1999 = vmatprep.subr.bf16.mxu0 %v1998_v3  ;;  %v422_v12 = vld [vmem:[#allocation6 + $0x58] sm:$0xff]  ;;  %v2004_v13 = vpack.c.bf16 %v417_v10, %v415_v9  ;;  %v419_v15 = vld [vmem:[#allocation6 + $0x40] sm:$0xff]  ;;  %p2545_p2 = scmp.ne.s32.totalorder %s3236_s20, %s2544_s29  ;;  %p3310_p7 = scmp.ne.s32.totalorder %s3300_s18, 0 }
  0xbc   : > { %2001 = vmatpush1.bf16.msra.mxu0 %v2000_v7  ;;  %v2006_v14 = vpack.c.bf16 %v422_v12, %v420_v11  ;;  %v421_v16 = vld [vmem:[#allocation6 + $0x50] sm:$0xff]  ;;  %v424_v17 = vld [vmem:[#allocation6 + $0x68] sm:$0xff]  ;;  %v426_v18 = vld [vmem:[#allocation6 + $0x78] sm:$0xff]  ;;  %s2635_s11 = smov [#allocation14]  }
  0xbd   : > { %2003 = vmatprep.subr.bf16.mxu0 %v2002_v8  ;;  %v2008_v19 = vpack.c.bf16 %v421_v16, %v419_v15  ;;  %v2010_v20 = vpack.c.bf16 %v426_v18, %v424_v17  ;;  %v423_v21 = vld [vmem:[#allocation6 + $0x60] sm:$0xff]  ;;  %v425_v22 = vld [vmem:[#allocation6 + $0x70] sm:$0xff]  ;;  %v428_v23 = vld [vmem:[#allocation6 + $0x88] sm:$0xff]  ;;  %p2546_p10 = pnand %p2545_p2, %p3310_p7  ;;  %s2548_s14 = sshll.u32 %s2635_s11, 4  ;;  %s2549_s14 = int_to_ptr.vmem [resolvable:$false] %s2548_s14 }
  0xbe   : > { %v430_v24 = vld [vmem:[#allocation6 + $0x98] sm:$0xff]  ;;  %v2012_v25 = vpack.c.bf16 %v425_v22, %v423_v21  ;;  %v427_v27 = vld [vmem:[#allocation6 + $0x80] sm:$0xff]  ;;  %v429_v28 = vld [vmem:[#allocation6 + $0x90] sm:$0xff]  ;;  %s2550_s16 = scalar_lea.vmem %s2549_s14, 8192  ;;  %p2551_p11 = scmp.lt.s32.totalorder %s3236_s20, %s2549_s14 }
  0xbf   : > { %v2014_v26 = vpack.c.bf16 %v430_v24, %v428_v23  ;;  %v432_v29 = vld [vmem:[#allocation6 + $0xa8] sm:$0xff]  ;;  %v434_v30 = vld [vmem:[#allocation6 + $0xb8] sm:$0xff]  ;;  %v2016_v31 = vpack.c.bf16 %v429_v28, %v427_v27  ;;  %v431_v33 = vld [vmem:[#allocation6 + $0xa0] sm:$0xff]  ;;  %p2547_p1 = pneg %p2546_p10  ;;  %p2552_p12 = scmp.lt.s32.totalorder %s2550_s16, %s2544_s29 }
  0xc0   : > { %2005 = vmatpush1.bf16.msra.mxu0 %v2004_v13  ;;  %v2018_v32 = vpack.c.bf16 %v434_v30, %v432_v29  ;;  %v433_v34 = vld [vmem:[#allocation6 + $0xb0] sm:$0xff]  ;;  %v436_v35 = vld [vmem:[#allocation6 + $0xc8] sm:$0xff]  ;;  %v438_v36 = vld [vmem:[#allocation6 + $0xd8] sm:$0xff] }
  0xc1   : > { %2007 = vmatprep.subr.bf16.mxu0 %v2006_v14  ;;  %v2020_v37 = vpack.c.bf16 %v433_v34, %v431_v33  ;;  %v2022_v38 = vpack.c.bf16 %v438_v36, %v436_v35  ;;  %v435_v39 = vld [vmem:[#allocation6 + $0xc0] sm:$0xff]  ;;  %v437_v40 = vld [vmem:[#allocation6 + $0xd0] sm:$0xff]  ;;  %v380_v41 = vld [vmem:[%s2924_s7 + $0x8] sm:$0xff]  ;;  %p2553_p13 = por %p2552_p12, %p2551_p11 }
  0xc2   : > { %v440_v42 = vld [vmem:[#allocation6 + $0xe8] sm:$0xff]  ;;  %v442_v43 = vld [vmem:[#allocation6 + $0xf8] sm:$0xff]  ;;  %539 = vmatprep.mubr.f32.mxu0 %v380_v41  ;;  %v2024_v44 = vpack.c.bf16 %v437_v40, %v435_v39  ;;  %v439_v46 = vld [vmem:[#allocation6 + $0xe0] sm:$0xff] }
  0xc3   : > { %v2026_v45 = vpack.c.bf16 %v442_v43, %v440_v42  ;;  %v441_v47 = vld [vmem:[#allocation6 + $0xf0] sm:$0xff]  ;;  %v444_v48 = vld [vmem:[#allocation6 + $0x108] sm:$0xff]  ;;  %v446_v49 = vld [vmem:[#allocation6 + $0x118] sm:$0xff]  ;;  %p2554_p8 = pnand %p2553_p13, %p2547_p1 }
  0xc4   : > { %2009 = vmatpush1.bf16.msra.mxu0 %v2008_v19  ;;  %v2028_v50 = vpack.c.bf16 %v441_v47, %v439_v46  ;;  %v2030_v51 = vpack.c.bf16 %v446_v49, %v444_v48  ;;  %v443_v52 = vld [vmem:[#allocation6 + $0x100] sm:$0xff]  ;;  %v445_v53 = vld [vmem:[#allocation6 + $0x110] sm:$0xff]  ;;  %v448_v54 = vld [vmem:[#allocation6 + $0x128] sm:$0xff] }
  0xc5   : > { %2011 = vmatprep.subr.bf16.mxu0 %v2010_v20  ;;  %v450_v55 = vld [vmem:[#allocation6 + $0x138] sm:$0xff]  ;;  %v2032_v56 = vpack.c.bf16 %v445_v53, %v443_v52  ;;  %v447_v58 = vld [vmem:[#allocation6 + $0x120] sm:$0xff]  ;;  %v449_v59 = vld [vmem:[#allocation6 + $0x130] sm:$0xff] }
  0xc6   : > { %v2034_v57 = vpack.c.bf16 %v450_v55, %v448_v54  ;;  %v452_v60 = vld [vmem:[#allocation6 + $0x148] sm:$0xff]  ;;  %v454_v61 = vld [vmem:[#allocation6 + $0x158] sm:$0xff]  ;;  %v2036_v62 = vpack.c.bf16 %v449_v59, %v447_v58  ;;  %v451_v0 = vld [vmem:[#allocation6 + $0x140] sm:$0xff] }
  0xc7   : > { %v2038_v63 = vpack.c.bf16 %v454_v61, %v452_v60  ;;  %v453_v1 = vld [vmem:[#allocation6 + $0x150] sm:$0xff]  ;;  %v456_v2 = vld [vmem:[#allocation6 + $0x168] sm:$0xff]  ;;  %v458_v3 = vld [vmem:[#allocation6 + $0x178] sm:$0xff] }
  0xc8   : > { %2013 = vmatpush1.bf16.msra.mxu0 %v2012_v25  ;;  %v2040_v4 = vpack.c.bf16 %v453_v1, %v451_v0  ;;  %v2042_v5 = vpack.c.bf16 %v458_v3, %v456_v2  ;;  %v455_v6 = vld [vmem:[#allocation6 + $0x160] sm:$0xff]  ;;  %v457_v7 = vld [vmem:[#allocation6 + $0x170] sm:$0xff]  ;;  %v460_v8 = vld [vmem:[#allocation6 + $0x188] sm:$0xff]  ;;  %v2634_v0 = vmov 0.0  }
  0xc9   : > { %2015 = vmatprep.subr.bf16.mxu0 %v2014_v26  ;;  %v462_v9 = vld [vmem:[#allocation6 + $0x198] sm:$0xff]  ;;  %v2044_v10 = vpack.c.bf16 %v457_v7, %v455_v6  ;;  %v459_v12 = vld [vmem:[#allocation6 + $0x180] sm:$0xff]  ;;  %v461_v13 = vld [vmem:[#allocation6 + $0x190] sm:$0xff]  ;;  %783 = vmatprep.mubr.f32.mxu1 %v2634_v0 }
  0xca   : > { %v2046_v11 = vpack.c.bf16 %v462_v9, %v460_v8  ;;  %v464_v14 = vld [vmem:[#allocation6 + $0x1a8] sm:$0xff]  ;;  %v466_v15 = vld [vmem:[#allocation6 + $0x1b8] sm:$0xff]  ;;  %v2048_v16 = vpack.c.bf16 %v461_v13, %v459_v12  ;;  %v463_v18 = vld [vmem:[#allocation6 + $0x1a0] sm:$0xff] }
  0xcb   : > { %v2050_v17 = vpack.c.bf16 %v466_v15, %v464_v14  ;;  %v465_v19 = vld [vmem:[#allocation6 + $0x1b0] sm:$0xff]  ;;  %v468_v20 = vld [vmem:[#allocation6 + $0x1c8] sm:$0xff]  ;;  %v470_v21 = vld [vmem:[#allocation6 + $0x1d8] sm:$0xff] }
  0xcc   : > { %2017 = vmatpush1.bf16.msra.mxu0 %v2016_v31  ;;  %v2052_v22 = vpack.c.bf16 %v465_v19, %v463_v18  ;;  %v2054_v23 = vpack.c.bf16 %v470_v21, %v468_v20  ;;  %v467_v24 = vld [vmem:[#allocation6 + $0x1c0] sm:$0xff]  ;;  %v469_v25 = vld [vmem:[#allocation6 + $0x1d0] sm:$0xff]  ;;  %v472_v26 = vld [vmem:[#allocation6 + $0x1e8] sm:$0xff] }
  0xcd   : > { %2019 = vmatprep.subr.bf16.mxu0 %v2018_v32  ;;  %v474_v27 = vld [vmem:[#allocation6 + $0x1f8] sm:$0xff]  ;;  %v2056_v28 = vpack.c.bf16 %v469_v25, %v467_v24  ;;  %v471_v30 = vld [vmem:[#allocation6 + $0x1e0] sm:$0xff]  ;;  %v473_v31 = vld [vmem:[#allocation6 + $0x1f0] sm:$0xff] }
  0xce   : > { %v2058_v29 = vpack.c.bf16 %v474_v27, %v472_v26  ;;  %v2060_v32 = vpack.c.bf16 %v473_v31, %v471_v30  ;;  %v379_v33 = vld [vmem:[%s2924_s7] sm:$0xff]  ;;  %v382_v34 = vld [vmem:[%s2924_s7 + $0x18] sm:$0xff]  ;;  %v381_v35 = vld [vmem:[%s2924_s7 + $0x10] sm:$0xff] }
  0xcf   : > { %v384_v36 = vld [vmem:[%s2924_s7 + $0x28] sm:$0xff]  ;;  %v385_v39 = vld [vmem:[%s2924_s7 + $0x30] sm:$0xff]  ;;  %v387_v41 = vld [vmem:[%s2924_s7 + $0x40] sm:$0xff] }
  0xd0   : > { %2021 = vmatpush1.bf16.msra.mxu0 %v2020_v37  ;;  %v383_v37 = vld [vmem:[%s2924_s7 + $0x20] sm:$0xff]  ;;  %v388_v40 = vld [vmem:[%s2924_s7 + $0x48] sm:$0xff]  ;;  %v390_v42 = vld [vmem:[%s2924_s7 + $0x58] sm:$0xff] }
  0xd1   : > { %2023 = vmatprep.subr.bf16.mxu0 %v2022_v38  ;;  %v386_v38 = vld [vmem:[%s2924_s7 + $0x38] sm:$0xff]  ;;  %v389_v43 = vld [vmem:[%s2924_s7 + $0x50] sm:$0xff]  ;;  %v396_v48 = vld [vmem:[%s2924_s7 + $0x88] sm:$0xff] }
  0xd2   : > { %v394_v46 = vld [vmem:[%s2924_s7 + $0x78] sm:$0xff]  ;;  %v393_v47 = vld [vmem:[%s2924_s7 + $0x70] sm:$0xff]  ;;  %v395_v49 = vld [vmem:[%s2924_s7 + $0x80] sm:$0xff] }
  0xd3   : > { %v400_v52 = vld [vmem:[%s2924_s7 + $0xa8] sm:$0xff]  ;;  %v399_v53 = vld [vmem:[%s2924_s7 + $0xa0] sm:$0xff]  ;;  %v402_v54 = vld [vmem:[%s2924_s7 + $0xb8] sm:$0xff] }
  0xd4   : > { %2025 = vmatpush1.bf16.msra.mxu0 %v2024_v44  ;;  %v392_v44 = vld [vmem:[%s2924_s7 + $0x68] sm:$0xff]  ;;  %v401_v55 = vld [vmem:[%s2924_s7 + $0xb0] sm:$0xff]  ;;  %v406_v58 = vld [vmem:[%s2924_s7 + $0xd8] sm:$0xff] }
  0xd5   : > { %2027 = vmatprep.subr.bf16.mxu0 %v2026_v45  ;;  %v391_v45 = vld [vmem:[%s2924_s7 + $0x60] sm:$0xff]  ;;  %v405_v59 = vld [vmem:[%s2924_s7 + $0xd0] sm:$0xff]  ;;  %v408_v60 = vld [vmem:[%s2924_s7 + $0xe8] sm:$0xff] }
  0xd6   : > { %v407_v61 = vld [vmem:[%s2924_s7 + $0xe0] sm:$0xff] }
  0xd8   : > { %2029 = vmatpush1.bf16.msra.mxu0 %v2028_v50  ;;  %v398_v50 = vld [vmem:[%s2924_s7 + $0x98] sm:$0xff] }
  0xd9   : > { %2031 = vmatprep.subr.bf16.mxu0 %v2030_v51  ;;  %v397_v51 = vld [vmem:[%s2924_s7 + $0x90] sm:$0xff] }
  0xdc   : > { %2033 = vmatpush1.bf16.msra.mxu0 %v2032_v56  ;;  %v404_v56 = vld [vmem:[%s2924_s7 + $0xc8] sm:$0xff] }
  0xdd   : > { %2035 = vmatprep.subr.bf16.mxu0 %v2034_v57  ;;  %v403_v57 = vld [vmem:[%s2924_s7 + $0xc0] sm:$0xff] }
  0xe0   : > { %2037 = vmatpush1.bf16.msra.mxu0 %v2036_v62  ;;  %v410_v62 = vld [vmem:[%s2924_s7 + $0xf8] sm:$0xff] }
  0xe1   : > { %2039 = vmatprep.subr.bf16.mxu0 %v2038_v63  ;;  %v409_v63 = vld [vmem:[%s2924_s7 + $0xf0] sm:$0xff] }
  0xe4   : > { %2041 = vmatpush1.bf16.msra.mxu0 %v2040_v4 }
  0xe5   : > { %2043 = vmatprep.subr.bf16.mxu0 %v2042_v5 }
  0xe8   : > { %2045 = vmatpush1.bf16.msra.mxu0 %v2044_v10 }
  0xe9   : > { %2047 = vmatprep.subr.bf16.mxu0 %v2046_v11 }
  0xec   : > { %2049 = vmatpush1.bf16.msra.mxu0 %v2048_v16 }
  0xed   : > { %2051 = vmatprep.subr.bf16.mxu0 %v2050_v17 }
  0xf0   : > { %2053 = vmatpush1.bf16.msra.mxu0 %v2052_v22 }
  0xf1   : > { %2055 = vmatprep.subr.bf16.mxu0 %v2054_v23 }
  0xf4   : > { %2057 = vmatpush1.bf16.msra.mxu0 %v2056_v28 }
  0xf5   : > { %2059 = vmatprep.subr.bf16.mxu0 %v2058_v29 }
  0xf8   : > { %2061 = vmatpush1.bf16.msra.mxu0 %v2060_v32 }
  0xfb   : > { %540 = vmatmul.mubr.f32.vlgmr.msra.gmra.mrb[0].mxu0 %v379_v33 }
  0xfc   : > { %545 = vmatprep.mubr.f32.mxu0 %v382_v34 }
  0xff   : > { %546 = vmatmul.mubr.f32.gmra.mrb[2].mxu0 %v381_v35 }
 0x100   : > { %551 = vmatprep.mubr.f32.mxu0 %v384_v36 }
 0x103   : > { %552 = vmatmul.mubr.f32.gmra.mrb[4].mxu0 %v383_v37 }
 0x104   : > { %557 = vmatprep.mubr.f32.mxu0 %v386_v38 }
 0x107   : > { %558 = vmatmul.mubr.f32.gmra.mrb[6].mxu0 %v385_v39 }
 0x108   : > { %563 = vmatprep.mubr.f32.mxu0 %v388_v40 }
 0x10b   : > { %564 = vmatmul.mubr.f32.gmra.mrb[8].mxu0 %v387_v41 }
 0x10c   : > { %569 = vmatprep.mubr.f32.mxu0 %v390_v42 }
 0x10f   : > { %570 = vmatmul.mubr.f32.gmra.mrb[10].mxu0 %v389_v43 }
 0x110   : > { %575 = vmatprep.mubr.f32.mxu0 %v392_v44 }
 0x113   : > { %576 = vmatmul.mubr.f32.gmra.mrb[12].mxu0 %v391_v45 }
 0x114   : > { %581 = vmatprep.mubr.f32.mxu0 %v394_v46 }
 0x117   : > { %582 = vmatmul.mubr.f32.gmra.mrb[14].mxu0 %v393_v47 }
 0x118   : > { %587 = vmatprep.mubr.f32.mxu0 %v396_v48 }
 0x11b   : > { %588 = vmatmul.mubr.f32.gmra.mrb[16].mxu0 %v395_v49  ;;  %v703_v49 = vld [vmem:[#allocation9] sm:$0xff] }
 0x11c   : > { %593 = vmatprep.mubr.f32.mxu0 %v398_v50  ;;  %v704_v50 = vld [vmem:[#allocation9 + $0x8] sm:$0xff] }
 0x11f   : > { %594 = vmatmul.mubr.f32.gmra.mrb[18].mxu0 %v397_v51  ;;  %v705_v51 = vld [vmem:[#allocation9 + $0x10] sm:$0xff] }
 0x120   : > { %599 = vmatprep.mubr.f32.mxu0 %v400_v52  ;;  %v706_v52 = vld [vmem:[#allocation9 + $0x18] sm:$0xff] }
 0x123   : > { %600 = vmatmul.mubr.f32.gmra.mrb[20].mxu0 %v399_v53  ;;  %v707_v53 = vld [vmem:[#allocation9 + $0x20] sm:$0xff] }
 0x124   : > { %605 = vmatprep.mubr.f32.mxu0 %v402_v54  ;;  %v708_v54 = vld [vmem:[#allocation9 + $0x28] sm:$0xff] }
 0x127   : > { %606 = vmatmul.mubr.f32.gmra.mrb[22].mxu0 %v401_v55  ;;  %v709_v55 = vld [vmem:[#allocation9 + $0x30] sm:$0xff] }
 0x128   : > { %611 = vmatprep.mubr.f32.mxu0 %v404_v56  ;;  %v710_v56 = vld [vmem:[#allocation9 + $0x38] sm:$0xff] }
 0x12b   : > { %612 = vmatmul.mubr.f32.gmra.mrb[24].mxu0 %v403_v57  ;;  %v711_v57 = vld [vmem:[#allocation9 + $0x40] sm:$0xff] }
 0x12c   : > { %617 = vmatprep.mubr.f32.mxu0 %v406_v58  ;;  %v712_v58 = vld [vmem:[#allocation9 + $0x48] sm:$0xff] }
 0x12f   : > { %618 = vmatmul.mubr.f32.gmra.mrb[26].mxu0 %v405_v59  ;;  %v713_v59 = vld [vmem:[#allocation9 + $0x50] sm:$0xff] }
 0x130   : > { %623 = vmatprep.mubr.f32.mxu0 %v408_v60  ;;  %v714_v60 = vld [vmem:[#allocation9 + $0x58] sm:$0xff] }
 0x133   : > { %624 = vmatmul.mubr.f32.gmra.mrb[28].mxu0 %v407_v61  ;;  %v715_v61 = vld [vmem:[#allocation9 + $0x60] sm:$0xff] }
 0x134   : > { %629 = vmatprep.mubr.f32.mxu0 %v410_v62  ;;  %v716_v62 = vld [vmem:[#allocation9 + $0x68] sm:$0xff] }
 0x137   : > { %630 = vmatmul.mubr.f32.gmra.mrb[30].mxu0 %v409_v63  ;;  %v717_v63 = vld [vmem:[#allocation9 + $0x70] sm:$0xff] }
 0x1ce   : > { %v541_v1 = vpop.f32.mrb[0].mxu0 }
 0x1cf   : > { %v543_v2 = vpop.f32.mrb[1].mxu0 }
 0x1d2   : > { %v547_v3 = vpop.f32.mrb[2].mxu0 }
 0x1d3   : > { %v2975_v4 = vpack.c.bf16 %v547_v3, %v541_v1  ;;  %v549_v5 = vpop.f32.mrb[3].mxu0  ;;  %v718_v1 = vld [vmem:[#allocation9 + $0x78] sm:$0xff]  ;;  %v882_v3 = vld [vmem:[#allocation9 + $0x88] sm:$0xff] }
 0x1d4   : > { %v2062_v6 = vpack.c.bf16 %v549_v5, %v543_v2  ;;  %v881_v2 = vld [vmem:[#allocation9 + $0x80] sm:$0xff]  ;;  %v884_v5 = vld [vmem:[#allocation9 + $0x98] sm:$0xff] }
 0x1d6   : > { %v553_v7 = vpop.f32.mrb[4].mxu0  ;;  %2063 = vmatprep.subr.bf16.mxu1 %v2062_v6 }
 0x1d7   : > { %v555_v8 = vpop.f32.mrb[5].mxu0  ;;  %2065 = vmatpush1.bf16.msra.mxu1 %v2975_v4 }
 0x1da   : > { %v559_v9 = vpop.f32.mrb[6].mxu0 }
 0x1db   : > { %v2068_v10 = vpack.c.bf16 %v559_v9, %v553_v7  ;;  %v561_v11 = vpop.f32.mrb[7].mxu0  ;;  %v886_v7 = vld [vmem:[#allocation9 + $0xa8] sm:$0xff]  ;;  %v888_v9 = vld [vmem:[#allocation9 + $0xb8] sm:$0xff] }
 0x1dc   : > { %v2066_v12 = vpack.c.bf16 %v561_v11, %v555_v8  ;;  %v887_v8 = vld [vmem:[#allocation9 + $0xb0] sm:$0xff]  ;;  %v1189_v11 = vld [vmem:[#allocation8 + $0x18] sm:$0xff] }
 0x1de   : > { %v565_v13 = vpop.f32.mrb[8].mxu0  ;;  %2067 = vmatprep.subr.bf16.mxu1 %v2066_v12 }
 0x1df   : > { %v567_v14 = vpop.f32.mrb[9].mxu0  ;;  %2069 = vmatpush1.bf16.msra.mxu1 %v2068_v10 }
 0x1e2   : > { %v571_v15 = vpop.f32.mrb[10].mxu0 }
 0x1e3   : > { %v2072_v16 = vpack.c.bf16 %v571_v15, %v565_v13  ;;  %v573_v17 = vpop.f32.mrb[11].mxu0  ;;  %v1186_v13 = vld [vmem:[#allocation8] sm:$0xff] }
 0x1e4   : > { %v2070_v18 = vpack.c.bf16 %v573_v17, %v567_v14  ;;  %v1188_v14 = vld [vmem:[#allocation8 + $0x10] sm:$0xff]  ;;  %v1191_v17 = vld [vmem:[#allocation8 + $0x28] sm:$0xff] }
 0x1e5   : > { %v2128_v15 = vpack.c.bf16 %v1188_v14, %v1186_v13  ;;  %v1224_v13 = vld [vmem:[#allocation8 + $0x130] sm:$0xff] }
 0x1e6   : > { %v577_v19 = vpop.f32.mrb[12].mxu0  ;;  %2071 = vmatprep.subr.bf16.mxu1 %v2070_v18 }
 0x1e7   : > { %v579_v20 = vpop.f32.mrb[13].mxu0  ;;  %2073 = vmatpush1.bf16.msra.mxu1 %v2072_v16 }
 0x1ea   : > { %v583_v21 = vpop.f32.mrb[14].mxu0 }
 0x1eb   : > { %v2076_v22 = vpack.c.bf16 %v583_v21, %v577_v19  ;;  %v585_v23 = vpop.f32.mrb[15].mxu0  ;;  %v1192_v21 = vld [vmem:[#allocation8 + $0x30] sm:$0xff] }
 0x1ec   : > { %v2074_v24 = vpack.c.bf16 %v585_v23, %v579_v20  ;;  %v1190_v20 = vld [vmem:[#allocation8 + $0x20] sm:$0xff]  ;;  %v890_v23 = vld [vmem:[#allocation9 + $0xc8] sm:$0xff] }
 0x1ee   : > { %v589_v25 = vpop.f32.mrb[16].mxu0  ;;  %2075 = vmatprep.subr.bf16.mxu1 %v2074_v24 }
 0x1ef   : > { %v591_v26 = vpop.f32.mrb[17].mxu0  ;;  %2077 = vmatpush1.bf16.msra.mxu1 %v2076_v22 }
 0x1f2   : > { %v595_v27 = vpop.f32.mrb[18].mxu0 }
 0x1f3   : > { %v2080_v28 = vpack.c.bf16 %v595_v27, %v589_v25  ;;  %v597_v29 = vpop.f32.mrb[19].mxu0  ;;  %v1197_v25 = vld [vmem:[#allocation8 + $0x58] sm:$0xff]  ;;  %v1194_v27 = vld [vmem:[#allocation8 + $0x40] sm:$0xff] }
 0x1f4   : > { %v2078_v30 = vpack.c.bf16 %v597_v29, %v591_v26 }
 0x1f6   : > { %v601_v31 = vpop.f32.mrb[20].mxu0  ;;  %2079 = vmatprep.subr.bf16.mxu1 %v2078_v30 }
 0x1f7   : > { %v603_v32 = vpop.f32.mrb[21].mxu0  ;;  %2081 = vmatpush1.bf16.msra.mxu1 %v2080_v28 }
 0x1fa   : > { %v607_v33 = vpop.f32.mrb[22].mxu0 }
 0x1fb   : > { %v2084_v34 = vpack.c.bf16 %v607_v33, %v601_v31  ;;  %v609_v35 = vpop.f32.mrb[23].mxu0  ;;  %v1199_v31 = vld [vmem:[#allocation8 + $0x68] sm:$0xff] }
 0x1fc   : > { %v2082_v36 = vpack.c.bf16 %v609_v35, %v603_v32  ;;  %v1201_v32 = vld [vmem:[#allocation8 + $0x78] sm:$0xff]  ;;  %v1200_v35 = vld [vmem:[#allocation8 + $0x70] sm:$0xff] }
 0x1fd   : > { %v2138_v33 = vpack.c.bf16 %v1201_v32, %v1199_v31  ;;  %v1236_v31 = vld [vmem:[#allocation8 + $0x190] sm:$0xff] }
 0x1fe   : > { %v613_v37 = vpop.f32.mrb[24].mxu0  ;;  %2083 = vmatprep.subr.bf16.mxu1 %v2082_v36 }
 0x1ff   : > { %v615_v38 = vpop.f32.mrb[25].mxu0  ;;  %2085 = vmatpush1.bf16.msra.mxu1 %v2084_v34 }
 0x202   : > { %v619_v39 = vpop.f32.mrb[26].mxu0 }
 0x203   : > { %v2088_v40 = vpack.c.bf16 %v619_v39, %v613_v37  ;;  %v621_v41 = vpop.f32.mrb[27].mxu0  ;;  %v892_v37 = vld [vmem:[#allocation9 + $0xd8] sm:$0xff] }
 0x204   : > { %v2086_v42 = vpack.c.bf16 %v621_v41, %v615_v38  ;;  %v1203_v38 = vld [vmem:[#allocation8 + $0x88] sm:$0xff]  ;;  %v1205_v39 = vld [vmem:[#allocation8 + $0x98] sm:$0xff]  ;;  %v1202_v41 = vld [vmem:[#allocation8 + $0x80] sm:$0xff] }
 0x206   : > { %v625_v43 = vpop.f32.mrb[28].mxu0  ;;  %2087 = vmatprep.subr.bf16.mxu1 %v2086_v42 }
 0x207   : > { %v627_v44 = vpop.f32.mrb[29].mxu0  ;;  %2089 = vmatpush1.bf16.msra.mxu1 %v2088_v40 }
 0x20a   : > { %v631_v45 = vpop.f32.mrb[30].mxu0 }
 0x20b   : > { %v2092_v46 = vpack.c.bf16 %v631_v45, %v625_v43  ;;  %v633_v47 = vpop.f32.mrb[31].mxu0  ;;  %v1207_v45 = vld [vmem:[#allocation8 + $0xa8] sm:$0xff] }
 0x20c   : > { %v2090_v48 = vpack.c.bf16 %v633_v47, %v627_v44  ;;  %v893_v44 = vld [vmem:[#allocation9 + $0xe0] sm:$0xff] }
 0x20e   : > { %2091 = vmatprep.subr.bf16.mxu1 %v2090_v48 }
 0x20f   : > { %2093 = vmatpush1.bf16.msra.mxu1 %v2092_v46 }
 0x210   : > { %2095 = vmatprep.subr.bf16.mxu1 %v2062_v6  ;;  %v885_v6 = vld [vmem:[#allocation9 + $0xa0] sm:$0xff] }
 0x212   : > { %784 = vmatmul.mubr.f32.vlgmr.msra.gmra.mrb[0].mxu1 %v703_v49  ;;  %v1208_v49 = vld [vmem:[#allocation8 + $0xb0] sm:$0xff] }
 0x213   : > { %2097 = vmatpush1.bf16.msra.mxu1 %v2975_v4  ;;  %789 = vmatprep.mubr.f32.mxu1 %v2634_v0  ;;  %v883_v4 = vld [vmem:[#allocation9 + $0x90] sm:$0xff] }
 0x214   : > { %2099 = vmatprep.subr.bf16.mxu1 %v2066_v12 }
 0x216   : > { %790 = vmatmul.mubr.f32.gmra.mrb[2].mxu1 %v704_v50 }
 0x217   : > { %2101 = vmatpush1.bf16.msra.mxu1 %v2068_v10  ;;  %795 = vmatprep.mubr.f32.mxu1 %v2634_v0  ;;  %v1187_v10 = vld [vmem:[#allocation8 + $0x8] sm:$0xff] }
 0x218   : > { %2103 = vmatprep.subr.bf16.mxu1 %v2070_v18  ;;  %v2126_v12 = vpack.c.bf16 %v1189_v11, %v1187_v10  ;;  %v1193_v18 = vld [vmem:[#allocation8 + $0x38] sm:$0xff] }
 0x219   : > { %v2130_v19 = vpack.c.bf16 %v1193_v18, %v1191_v17  ;;  %v1225_v10 = vld [vmem:[#allocation8 + $0x138] sm:$0xff]  ;;  %v1226_v18 = vld [vmem:[#allocation8 + $0x140] sm:$0xff] }
 0x21a   : > { %796 = vmatmul.mubr.f32.gmra.mrb[4].mxu1 %v705_v51  ;;  %2127 = vmatprep.subr.bf16.mxu0 %v2126_v12  ;;  %v894_v51 = vld [vmem:[#allocation9 + $0xe8] sm:$0xff]  ;;  %v1222_v12 = vld [vmem:[#allocation8 + $0x120] sm:$0xff] }
 0x21b   : > { %2105 = vmatpush1.bf16.msra.mxu1 %v2072_v16  ;;  %801 = vmatprep.mubr.f32.mxu1 %v2634_v0  ;;  %v889_v16 = vld [vmem:[#allocation9 + $0xc0] sm:$0xff]  ;;  %v2164_v14 = vpack.c.bf16 %v1224_v13, %v1222_v12 }
 0x21c   : > { %2107 = vmatprep.subr.bf16.mxu1 %v2074_v24  ;;  %2129 = vmatpush1.bf16.msra.mxu0 %v2128_v15  ;;  %v1195_v24 = vld [vmem:[#allocation8 + $0x48] sm:$0xff] }
 0x21d   : > { %2131 = vmatprep.subr.bf16.mxu0 %v2130_v19  ;;  %v2134_v26 = vpack.c.bf16 %v1197_v25, %v1195_v24  ;;  %v1227_v15 = vld [vmem:[#allocation8 + $0x148] sm:$0xff]  ;;  %v1228_v19 = vld [vmem:[#allocation8 + $0x150] sm:$0xff]  ;;  %v1230_v24 = vld [vmem:[#allocation8 + $0x160] sm:$0xff] }
 0x21e   : > { %802 = vmatmul.mubr.f32.gmra.mrb[6].mxu1 %v706_v52  ;;  %v1211_v52 = vld [vmem:[#allocation8 + $0xc8] sm:$0xff]  ;;  %v1232_v25 = vld [vmem:[#allocation8 + $0x170] sm:$0xff] }
 0x21f   : > { %2109 = vmatpush1.bf16.msra.mxu1 %v2076_v22  ;;  %807 = vmatprep.mubr.f32.mxu1 %v2634_v0  ;;  %v2132_v22 = vpack.c.bf16 %v1192_v21, %v1190_v20  ;;  %v2168_v20 = vpack.c.bf16 %v1228_v19, %v1226_v18  ;;  %v1231_v21 = vld [vmem:[#allocation8 + $0x168] sm:$0xff] }
 0x220   : > { %2111 = vmatprep.subr.bf16.mxu1 %v2078_v30  ;;  %v891_v30 = vld [vmem:[#allocation9 + $0xd0] sm:$0xff] }
 0x221   : > { %2133 = vmatpush1.bf16.msra.mxu0 %v2132_v22  ;;  %v1233_v22 = vld [vmem:[#allocation8 + $0x178] sm:$0xff] }
 0x222   : > { %808 = vmatmul.mubr.f32.gmra.mrb[8].mxu1 %v707_v53  ;;  %2135 = vmatprep.subr.bf16.mxu0 %v2134_v26  ;;  %v1213_v53 = vld [vmem:[#allocation8 + $0xd8] sm:$0xff]  ;;  %v2172_v26 = vpack.c.bf16 %v1232_v25, %v1230_v24 }
 0x223   : > { %2113 = vmatpush1.bf16.msra.mxu1 %v2080_v28  ;;  %813 = vmatprep.mubr.f32.mxu1 %v2634_v0  ;;  %v1196_v28 = vld [vmem:[#allocation8 + $0x50] sm:$0xff] }
 0x224   : > { %2115 = vmatprep.subr.bf16.mxu1 %v2082_v36  ;;  %v2136_v29 = vpack.c.bf16 %v1196_v28, %v1194_v27  ;;  %v1235_v27 = vld [vmem:[#allocation8 + $0x188] sm:$0xff]  ;;  %v1237_v28 = vld [vmem:[#allocation8 + $0x198] sm:$0xff] }
 0x226   : > { %814 = vmatmul.mubr.f32.gmra.mrb[10].mxu1 %v708_v54  ;;  %2137 = vmatpush1.bf16.msra.mxu0 %v2136_v29  ;;  %v2150_v54 = vpack.c.bf16 %v1213_v53, %v1211_v52  ;;  %v2174_v29 = vpack.c.bf16 %v1237_v28, %v1235_v27 }
 0x227   : > { %2117 = vmatpush1.bf16.msra.mxu1 %v2084_v34  ;;  %819 = vmatprep.mubr.f32.mxu1 %v2634_v0  ;;  %v1198_v34 = vld [vmem:[#allocation8 + $0x60] sm:$0xff] }
 0x228   : > { %2119 = vmatprep.subr.bf16.mxu1 %v2086_v42  ;;  %v2140_v36 = vpack.c.bf16 %v1200_v35, %v1198_v34  ;;  %2139 = vmatprep.subr.bf16.mxu0 %v2138_v33  ;;  %v1204_v42 = vld [vmem:[#allocation8 + $0x90] sm:$0xff]  ;;  %v1239_v33 = vld [vmem:[#allocation8 + $0x1a8] sm:$0xff]  ;;  %v1241_v34 = vld [vmem:[#allocation8 + $0x1b8] sm:$0xff] }
 0x229   : > { %v2144_v43 = vpack.c.bf16 %v1204_v42, %v1202_v41  ;;  %v2178_v35 = vpack.c.bf16 %v1241_v34, %v1239_v33  ;;  %v1242_v42 = vld [vmem:[#allocation8 + $0x1c0] sm:$0xff] }
 0x22a   : > { %820 = vmatmul.mubr.f32.gmra.mrb[12].mxu1 %v709_v55  ;;  %2141 = vmatpush1.bf16.msra.mxu0 %v2140_v36  ;;  %v1210_v55 = vld [vmem:[#allocation8 + $0xc0] sm:$0xff] }
 0x22b   : > { %2121 = vmatpush1.bf16.msra.mxu1 %v2088_v40  ;;  %825 = vmatprep.mubr.f32.mxu1 %v2634_v0  ;;  %v2142_v40 = vpack.c.bf16 %v1205_v39, %v1203_v38  ;;  %v1238_v36 = vld [vmem:[#allocation8 + $0x1a0] sm:$0xff]  ;;  %v1243_v39 = vld [vmem:[#allocation8 + $0x1c8] sm:$0xff] }
 0x22c   : > { %2123 = vmatprep.subr.bf16.mxu1 %v2090_v48  ;;  %v1206_v48 = vld [vmem:[#allocation8 + $0xa0] sm:$0xff] }
 0x22d   : > { %2143 = vmatprep.subr.bf16.mxu0 %v2142_v40  ;;  %v2148_v50 = vpack.c.bf16 %v1208_v49, %v1206_v48  ;;  %v1245_v40 = vld [vmem:[#allocation8 + $0x1d8] sm:$0xff]  ;;  %v1246_v48 = vld [vmem:[#allocation8 + $0x1e0] sm:$0xff]  ;;  %v1248_v49 = vld [vmem:[#allocation8 + $0x1f0] sm:$0xff] }
 0x22e   : > { %826 = vmatmul.mubr.f32.gmra.mrb[14].mxu1 %v710_v56  ;;  %2145 = vmatpush1.bf16.msra.mxu0 %v2144_v43  ;;  %v1212_v56 = vld [vmem:[#allocation8 + $0xd0] sm:$0xff]  ;;  %v2182_v41 = vpack.c.bf16 %v1245_v40, %v1243_v39 }
 0x22f   : > { %2125 = vmatpush1.bf16.msra.mxu1 %v2092_v46  ;;  %831 = vmatprep.mubr.f32.mxu1 %v2634_v0  ;;  %v1209_v46 = vld [vmem:[#allocation8 + $0xb8] sm:$0xff]  ;;  %v1244_v43 = vld [vmem:[#allocation8 + $0x1d0] sm:$0xff] }
 0x230   : > { %v2146_v47 = vpack.c.bf16 %v1209_v46, %v1207_v45  ;;  %v1247_v45 = vld [vmem:[#allocation8 + $0x1e8] sm:$0xff]  ;;  %v1249_v46 = vld [vmem:[#allocation8 + $0x1f8] sm:$0xff] }
 0x232   : > { %832 = vmatmul.mubr.f32.gmra.mrb[16].mxu1 %v711_v57  ;;  %2147 = vmatprep.subr.bf16.mxu0 %v2146_v47  ;;  %v2152_v57 = vpack.c.bf16 %v1212_v56, %v1210_v55  ;;  %v2186_v47 = vpack.c.bf16 %v1249_v46, %v1247_v45 }
 0x233   : > { %837 = vmatprep.mubr.f32.mxu1 %v2634_v0  ;;  %2149 = vmatpush1.bf16.msra.mxu0 %v2148_v50  ;;  %v2188_v50 = vpack.c.bf16 %v1248_v49, %v1246_v48 }
 0x234   : > { %2151 = vmatprep.subr.bf16.mxu0 %v2150_v54 }
 0x236   : > { %838 = vmatmul.mubr.f32.gmra.mrb[18].mxu1 %v712_v58  ;;  %v895_v58 = vld [vmem:[#allocation9 + $0xf0] sm:$0xff] }
 0x237   : > { %843 = vmatprep.mubr.f32.mxu1 %v2634_v0  ;;  %2153 = vmatpush1.bf16.msra.mxu0 %v2152_v57 }
 0x23a   : > { %844 = vmatmul.mubr.f32.gmra.mrb[20].mxu1 %v713_v59  ;;  %v1215_v59 = vld [vmem:[#allocation8 + $0xe8] sm:$0xff] }
 0x23b   : > { %849 = vmatprep.mubr.f32.mxu1 %v2634_v0 }
 0x23e   : > { %850 = vmatmul.mubr.f32.gmra.mrb[22].mxu1 %v714_v60  ;;  %v1217_v60 = vld [vmem:[#allocation8 + $0xf8] sm:$0xff] }
 0x23f   : > { %855 = vmatprep.mubr.f32.mxu1 %v2634_v0 }
 0x242   : > { %856 = vmatmul.mubr.f32.gmra.mrb[24].mxu1 %v715_v61  ;;  %v2154_v61 = vpack.c.bf16 %v1217_v60, %v1215_v59 }
 0x243   : > { %861 = vmatprep.mubr.f32.mxu1 %v2634_v0 }
 0x244   : > { %2155 = vmatprep.subr.bf16.mxu0 %v2154_v61 }
 0x246   : > { %862 = vmatmul.mubr.f32.gmra.mrb[26].mxu1 %v716_v62  ;;  %v1214_v62 = vld [vmem:[#allocation8 + $0xe0] sm:$0xff] }
 0x247   : > { %867 = vmatprep.mubr.f32.mxu1 %v2634_v0 }
 0x24a   : > { %868 = vmatmul.mubr.f32.gmra.mrb[28].mxu1 %v717_v63  ;;  %v1216_v63 = vld [vmem:[#allocation8 + $0xf0] sm:$0xff] }
 0x24b   : > { %873 = vmatprep.mubr.f32.mxu1 %v2634_v0 }
 0x24e   : > { %874 = vmatmul.mubr.f32.gmra.mrb[30].mxu1 %v718_v1  ;;  %v2156_v1 = vpack.c.bf16 %v1216_v63, %v1214_v62 }
 0x24f   : > { %961 = vmatprep.mubr.f32.mxu1 %v2634_v0 }
 0x250   : > { %2157 = vmatpush1.bf16.msra.mxu0 %v2156_v1 }
 0x252   : > { %962 = vmatmul.mubr.f32.vlgmr.msra.gmra.mrb[32].mxu1 %v881_v2  ;;  %v896_v2 = vld [vmem:[#allocation9 + $0xf8] sm:$0xff] }
 0x253   : > { %967 = vmatprep.mubr.f32.mxu1 %v2634_v0 }
 0x256   : > { %968 = vmatmul.mubr.f32.gmra.mrb[34].mxu1 %v882_v3  ;;  %v1219_v3 = vld [vmem:[#allocation8 + $0x108] sm:$0xff] }
 0x257   : > { %973 = vmatprep.mubr.f32.mxu1 %v2634_v0 }
 0x25a   : > { %974 = vmatmul.mubr.f32.gmra.mrb[36].mxu1 %v883_v4  ;;  %v1221_v4 = vld [vmem:[#allocation8 + $0x118] sm:$0xff] }
 0x25b   : > { %979 = vmatprep.mubr.f32.mxu1 %v2634_v0 }
 0x25e   : > { %980 = vmatmul.mubr.f32.gmra.mrb[38].mxu1 %v884_v5  ;;  %v2158_v5 = vpack.c.bf16 %v1221_v4, %v1219_v3 }
 0x25f   : > { %985 = vmatprep.mubr.f32.mxu1 %v2634_v0 }
 0x260   : > { %2159 = vmatprep.subr.bf16.mxu0 %v2158_v5 }
 0x262   : > { %986 = vmatmul.mubr.f32.gmra.mrb[40].mxu1 %v885_v6  ;;  %v1218_v6 = vld [vmem:[#allocation8 + $0x100] sm:$0xff] }
 0x263   : > { %991 = vmatprep.mubr.f32.mxu1 %v2634_v0 }
 0x266   : > { %992 = vmatmul.mubr.f32.gmra.mrb[42].mxu1 %v886_v7  ;;  %v1220_v7 = vld [vmem:[#allocation8 + $0x110] sm:$0xff] }
 0x267   : > { %997 = vmatprep.mubr.f32.mxu1 %v2634_v0 }
 0x26a   : > { %998 = vmatmul.mubr.f32.gmra.mrb[44].mxu1 %v887_v8  ;;  %v2160_v8 = vpack.c.bf16 %v1220_v7, %v1218_v6 }
 0x26b   : > { %1003 = vmatprep.mubr.f32.mxu1 %v2634_v0 }
 0x26c   : > { %2161 = vmatpush1.bf16.msra.mxu0 %v2160_v8 }
 0x26e   : > { %1004 = vmatmul.mubr.f32.gmra.mrb[46].mxu1 %v888_v9  ;;  %v1223_v9 = vld [vmem:[#allocation8 + $0x128] sm:$0xff] }
 0x26f   : > { %1009 = vmatprep.mubr.f32.mxu1 %v2634_v0  ;;  %v2162_v11 = vpack.c.bf16 %v1225_v10, %v1223_v9 }
 0x271   : > { %2163 = vmatprep.subr.bf16.mxu0 %v2162_v11 }
 0x272   : > { %1010 = vmatmul.mubr.f32.gmra.mrb[48].mxu1 %v889_v16  ;;  %2165 = vmatpush1.bf16.msra.mxu0 %v2164_v14  ;;  %v1229_v16 = vld [vmem:[#allocation8 + $0x158] sm:$0xff] }
 0x273   : > { %1015 = vmatprep.mubr.f32.mxu1 %v2634_v0  ;;  %v2166_v17 = vpack.c.bf16 %v1229_v16, %v1227_v15 }
 0x275   : > { %2167 = vmatprep.subr.bf16.mxu0 %v2166_v17 }
 0x276   : > { %1016 = vmatmul.mubr.f32.gmra.mrb[50].mxu1 %v890_v23  ;;  %2169 = vmatpush1.bf16.msra.mxu0 %v2168_v20  ;;  %v2170_v23 = vpack.c.bf16 %v1233_v22, %v1231_v21  ;;  %v346_v20 = vld [vmem:[#allocation12] sm:$0xff] }
 0x277   : > { %1021 = vmatprep.mubr.f32.mxu1 %v2634_v0  ;;  %v363_v21 = vld [vmem:[#allocation12 + $0x80] sm:$0xff] }
 0x278   : > { %2171 = vmatprep.subr.bf16.mxu0 %v2170_v23 }
 0x27a   : > { %1022 = vmatmul.mubr.f32.gmra.mrb[52].mxu1 %v891_v30  ;;  %2173 = vmatpush1.bf16.msra.mxu0 %v2172_v26  ;;  %v1234_v30 = vld [vmem:[#allocation8 + $0x180] sm:$0xff] }
 0x27b   : > { %1027 = vmatprep.mubr.f32.mxu1 %v2634_v0  ;;  %v2176_v32 = vpack.c.bf16 %v1236_v31, %v1234_v30  ;;  %2175 = vmatprep.subr.bf16.mxu0 %v2174_v29  ;;  %v347_v30 = vld [vmem:[#allocation12 + $0x8] sm:$0xff] }
 0x27c   : > { %v364_v31 = vld [vmem:[#allocation12 + $0x88] sm:$0xff] }
 0x27e   : > { %1028 = vmatmul.mubr.f32.gmra.mrb[54].mxu1 %v892_v37  ;;  %2177 = vmatpush1.bf16.msra.mxu0 %v2176_v32  ;;  %v1240_v37 = vld [vmem:[#allocation8 + $0x1b0] sm:$0xff] }
 0x27f   : > { %1033 = vmatprep.mubr.f32.mxu1 %v2634_v0  ;;  %v2180_v38 = vpack.c.bf16 %v1240_v37, %v1238_v36  ;;  %2179 = vmatprep.subr.bf16.mxu0 %v2178_v35 }
 0x282   : > { %1034 = vmatmul.mubr.f32.gmra.mrb[56].mxu1 %v893_v44  ;;  %2181 = vmatpush1.bf16.msra.mxu0 %v2180_v38  ;;  %v2184_v44 = vpack.c.bf16 %v1244_v43, %v1242_v42  ;;  %v348_v42 = vld [vmem:[#allocation12 + $0x10] sm:$0xff] }
 0x283   : > { %1039 = vmatprep.mubr.f32.mxu1 %v2634_v0  ;;  %2183 = vmatprep.subr.bf16.mxu0 %v2182_v41  ;;  %v365_v43 = vld [vmem:[#allocation12 + $0x90] sm:$0xff] }
 0x286   : > { %1040 = vmatmul.mubr.f32.gmra.mrb[58].mxu1 %v894_v51  ;;  %2185 = vmatpush1.bf16.msra.mxu0 %v2184_v44 }
 0x287   : > { %1045 = vmatprep.mubr.f32.mxu1 %v2634_v0  ;;  %2187 = vmatprep.subr.bf16.mxu0 %v2186_v47 }
 0x28a   : > { %1046 = vmatmul.mubr.f32.gmra.mrb[60].mxu1 %v895_v58  ;;  %2189 = vmatpush1.bf16.msra.mxu0 %v2188_v50 }
 0x28b   : > { %1051 = vmatprep.mubr.f32.mxu1 %v2634_v0 }
 0x28e   : > { %1052 = vmatmul.mubr.f32.gmra.mrb[62].mxu1 %v896_v2 }
 0x28f   : > { %1491 = vmatprep.mubr.f32.mxu1 %v2634_v0 }
 0x2e5   : > { %v785_v51 = vpop.f32.mrb[0].mxu1 }
 0x2e6   : > { %v787_v52 = vpop.f32.mrb[1].mxu1 }
 0x2e9   : > { %v791_v53 = vpop.f32.mrb[2].mxu1 }
 0x2ea   : > { %v793_v54 = vpop.f32.mrb[3].mxu1 }
 0x2ed   : > { %v797_v55 = vpop.f32.mrb[4].mxu1 }
 0x2ee   : > { %v799_v56 = vpop.f32.mrb[5].mxu1 }
 0x2f1   : > { %v3011_v57 = vpop.f32.mrb[6].mxu1 }
 0x2f2   : > { %v3013_v58 = vpop.f32.mrb[7].mxu1 }
 0x2f5   : > { %v3015_v59 = vpop.f32.mrb[8].mxu1 }
 0x2f6   : > { %v3017_v60 = vpop.f32.mrb[9].mxu1 }
 0x2f9   : > { %v3019_v61 = vpop.f32.mrb[10].mxu1 }
 0x2fa   : > { %v3021_v62 = vpop.f32.mrb[11].mxu1 }
 0x2fd   : > { %v3023_v63 = vpop.f32.mrb[12].mxu1 }
 0x2fe   : > { %v3025_v1 = vpop.f32.mrb[13].mxu1 }
 0x301   : > { %v3027_v2 = vpop.f32.mrb[14].mxu1 }
 0x302   : > { %v3029_v3 = vpop.f32.mrb[15].mxu1 }
 0x305   : > { %v3031_v4 = vpop.f32.mrb[16].mxu1 }
 0x306   : > { %v3033_v5 = vpop.f32.mrb[17].mxu1 }
 0x309   : > { %v3035_v6 = vpop.f32.mrb[18].mxu1 }
 0x30a   : > { %v3037_v7 = vpop.f32.mrb[19].mxu1 }
 0x30d   : > { %v3039_v8 = vpop.f32.mrb[20].mxu1 }
 0x30e   : > { %v3041_v9 = vpop.f32.mrb[21].mxu1 }
 0x311   : > { %v3043_v10 = vpop.f32.mrb[22].mxu1 }
 0x312   : > { %v3045_v11 = vpop.f32.mrb[23].mxu1 }
 0x315   : > { %v3047_v12 = vpop.f32.mrb[24].mxu1 }
 0x316   : > { %v3049_v13 = vpop.f32.mrb[25].mxu1 }
 0x319   : > { %v3051_v14 = vpop.f32.mrb[26].mxu1 }
 0x31a   : > { %v3053_v15 = vpop.f32.mrb[27].mxu1 }
 0x31d   : > { %v3055_v16 = vpop.f32.mrb[28].mxu1 }
 0x31e   : > { %v3057_v17 = vpop.f32.mrb[29].mxu1 }
 0x321   : > { %v3059_v18 = vpop.f32.mrb[30].mxu1 }
 0x322   : > { %v3061_v19 = vpop.f32.mrb[31].mxu1 }
 0x325   : > { %v963_v22 = vpop.f32.mrb[32].mxu1 }
 0x326   : > { %v1074_v23 = vadd.f32 %v963_v22, %v787_v52  ;;  %v965_v24 = vpop.f32.mrb[33].mxu1 }
 0x327   : > { %v1058_v25 = vsub.f32 %v785_v51, %v965_v24 }
 0x328   : > { %v1106_v26 = vmul.f32 %v1074_v23, %v363_v21  ;;  %v1154_v27 = vmul.f32 %v1074_v23, %v346_v20 }
 0x329   : > { %v1090_v28 = vmul.f32 %v1058_v25, %v346_v20  ;;  %v1138_v29 = vmul.f32 %v1058_v25, %v363_v21  ;;  %v969_v32 = vpop.f32.mrb[34].mxu1  ;;  %v366_v20 = vld [vmem:[#allocation12 + $0x98] sm:$0xff] }
 0x32a   : > { %v1075_v33 = vadd.f32 %v969_v32, %v793_v54  ;;  %v971_v34 = vpop.f32.mrb[35].mxu1 }
 0x32b   : > { %v1122_v35 = vsub.f32 %v1090_v28, %v1106_v26  ;;  %v1059_v36 = vsub.f32 %v791_v53, %v971_v34  ;;  %v1170_v37 = vadd.f32 %v1154_v27, %v1138_v29  ;;  %v349_v53 = vld [vmem:[#allocation12 + $0x18] sm:$0xff]  ;;  %v350_v29 = vld [vmem:[#allocation12 + $0x20] sm:$0xff] }
 0x32c   : > { %v1107_v38 = vmul.f32 %v1075_v33, %v364_v31  ;;  %v1155_v39 = vmul.f32 %v1075_v33, %v347_v30 }
 0x32d   : > { %v1091_v40 = vmul.f32 %v1059_v36, %v347_v30  ;;  %v1139_v41 = vmul.f32 %v1059_v36, %v364_v31  ;;  %v975_v44 = vpop.f32.mrb[36].mxu1  ;;  %1314 = vmatprep.mubr.f32.mxu0 %v1170_v37  ;;  %v367_v30 = vld [vmem:[#allocation12 + $0xa0] sm:$0xff] }
 0x32e   : > { %v1076_v45 = vadd.f32 %v975_v44, %v799_v56  ;;  %v977_v46 = vpop.f32.mrb[37].mxu1  ;;  %1315 = vmatmul.mubr.f32.vlgmr.msra.gmra.mrb[32].mxu0 %v1122_v35 }
 0x32f   : > { %v1060_v47 = vsub.f32 %v797_v55, %v977_v46  ;;  %v1171_v48 = vadd.f32 %v1155_v39, %v1139_v41  ;;  %v1123_v49 = vsub.f32 %v1091_v40, %v1107_v38  ;;  %v351_v39 = vld [vmem:[#allocation12 + $0x28] sm:$0xff] }
 0x330   : > { %v1108_v50 = vmul.f32 %v1076_v45, %v365_v43  ;;  %v1156_v51 = vmul.f32 %v1076_v45, %v348_v42  ;;  %v368_v40 = vld [vmem:[#allocation12 + $0xa8] sm:$0xff] }
 0x331   : > { %v1092_v52 = vmul.f32 %v1060_v47, %v348_v42  ;;  %v1140_v54 = vmul.f32 %v1060_v47, %v365_v43  ;;  %v981_v21 = vpop.f32.mrb[38].mxu1  ;;  %1320 = vmatprep.mubr.f32.mxu0 %v1171_v48 }
 0x332   : > { %v1077_v22 = vadd.f32 %v981_v21, %v3013_v58  ;;  %v983_v23 = vpop.f32.mrb[39].mxu1  ;;  %1321 = vmatmul.mubr.f32.gmra.mrb[34].mxu0 %v1123_v49  ;;  %v352_v49 = vld [vmem:[#allocation12 + $0x30] sm:$0xff] }
 0x333   : > { %v1061_v24 = vsub.f32 %v3011_v57, %v983_v23  ;;  %v1172_v56 = vadd.f32 %v1156_v51, %v1140_v54  ;;  %v1124_v25 = vsub.f32 %v1092_v52, %v1108_v50  ;;  %v369_v50 = vld [vmem:[#allocation12 + $0xb0] sm:$0xff] }
 0x334   : > { %v1109_v26 = vmul.f32 %v1077_v22, %v366_v20  ;;  %v1157_v55 = vmul.f32 %v1077_v22, %v349_v53 }
 0x335   : > { %v1093_v27 = vmul.f32 %v1061_v24, %v349_v53  ;;  %v1141_v28 = vmul.f32 %v1061_v24, %v366_v20  ;;  %v987_v31 = vpop.f32.mrb[40].mxu1  ;;  %1326 = vmatprep.mubr.f32.mxu0 %v1172_v56  ;;  %v353_v24 = vld [vmem:[#allocation12 + $0x38] sm:$0xff] }
 0x336   : > { %v1078_v32 = vadd.f32 %v987_v31, %v3017_v60  ;;  %v989_v33 = vpop.f32.mrb[41].mxu1  ;;  %1327 = vmatmul.mubr.f32.gmra.mrb[36].mxu0 %v1124_v25  ;;  %v370_v56 = vld [vmem:[#allocation12 + $0xb8] sm:$0xff] }
 0x337   : > { %v1062_v58 = vsub.f32 %v3015_v59, %v989_v33  ;;  %v1173_v34 = vadd.f32 %v1157_v55, %v1141_v28  ;;  %v1125_v35 = vsub.f32 %v1093_v27, %v1109_v26  ;;  %v371_v33 = vld [vmem:[#allocation12 + $0xc0] sm:$0xff] }
 0x338   : > { %v1110_v36 = vmul.f32 %v1078_v32, %v367_v30  ;;  %v1158_v57 = vmul.f32 %v1078_v32, %v350_v29  ;;  %v354_v32 = vld [vmem:[#allocation12 + $0x40] sm:$0xff] }
 0x339   : > { %v1094_v37 = vmul.f32 %v1062_v58, %v350_v29  ;;  %v1142_v38 = vmul.f32 %v1062_v58, %v367_v30  ;;  %v993_v41 = vpop.f32.mrb[42].mxu1  ;;  %1332 = vmatprep.mubr.f32.mxu0 %v1173_v34 }
 0x33a   : > { %v1079_v42 = vadd.f32 %v993_v41, %v3021_v62  ;;  %v995_v43 = vpop.f32.mrb[43].mxu1  ;;  %1333 = vmatmul.mubr.f32.gmra.mrb[38].mxu0 %v1125_v35  ;;  %v372_v41 = vld [vmem:[#allocation12 + $0xc8] sm:$0xff] }
 0x33b   : > { %v1063_v60 = vsub.f32 %v3019_v61, %v995_v43  ;;  %v1174_v44 = vadd.f32 %v1158_v57, %v1142_v38  ;;  %v1126_v45 = vsub.f32 %v1094_v37, %v1110_v36 }
 0x33c   : > { %v1111_v46 = vmul.f32 %v1079_v42, %v368_v40  ;;  %v1159_v59 = vmul.f32 %v1079_v42, %v351_v39 }
 0x33d   : > { %v1095_v47 = vmul.f32 %v1063_v60, %v351_v39  ;;  %v1143_v48 = vmul.f32 %v1063_v60, %v368_v40  ;;  %v999_v51 = vpop.f32.mrb[44].mxu1  ;;  %1338 = vmatprep.mubr.f32.mxu0 %v1174_v44  ;;  %v355_v40 = vld [vmem:[#allocation12 + $0x48] sm:$0xff] }
 0x33e   : > { %v1080_v52 = vadd.f32 %v999_v51, %v3025_v1  ;;  %v1001_v54 = vpop.f32.mrb[45].mxu1  ;;  %1339 = vmatmul.mubr.f32.gmra.mrb[40].mxu0 %v1126_v45 }
 0x33f   : > { %v1064_v62 = vsub.f32 %v3023_v63, %v1001_v54  ;;  %v1175_v53 = vadd.f32 %v1159_v59, %v1143_v48  ;;  %v1127_v20 = vsub.f32 %v1095_v47, %v1111_v46  ;;  %v356_v48 = vld [vmem:[#allocation12 + $0x50] sm:$0xff] }
 0x340   : > { %v1112_v21 = vmul.f32 %v1080_v52, %v369_v50  ;;  %v1160_v61 = vmul.f32 %v1080_v52, %v352_v49 }
 0x341   : > { %v1096_v22 = vmul.f32 %v1064_v62, %v352_v49  ;;  %v1144_v23 = vmul.f32 %v1064_v62, %v369_v50  ;;  %v1005_v25 = vpop.f32.mrb[46].mxu1  ;;  %1344 = vmatprep.mubr.f32.mxu0 %v1175_v53  ;;  %v373_v49 = vld [vmem:[#allocation12 + $0xd0] sm:$0xff] }
 0x342   : > { %v1081_v26 = vadd.f32 %v1005_v25, %v3029_v3  ;;  %v1007_v55 = vpop.f32.mrb[47].mxu1  ;;  %1345 = vmatmul.mubr.f32.gmra.mrb[42].mxu0 %v1127_v20 }
 0x343   : > { %v1065_v1 = vsub.f32 %v3027_v2, %v1007_v55  ;;  %v1176_v27 = vadd.f32 %v1160_v61, %v1144_v23  ;;  %v1128_v28 = vsub.f32 %v1096_v22, %v1112_v21  ;;  %v357_v61 = vld [vmem:[#allocation12 + $0x58] sm:$0xff] }
 0x344   : > { %v1113_v29 = vmul.f32 %v1081_v26, %v370_v56  ;;  %v1161_v63 = vmul.f32 %v1081_v26, %v353_v24  ;;  %v374_v22 = vld [vmem:[#allocation12 + $0xd8] sm:$0xff] }
 0x345   : > { %v1097_v30 = vmul.f32 %v1065_v1, %v353_v24  ;;  %v1145_v31 = vmul.f32 %v1065_v1, %v370_v56  ;;  %v1011_v58 = vpop.f32.mrb[48].mxu1  ;;  %1350 = vmatprep.mubr.f32.mxu0 %v1176_v27 }
 0x346   : > { %v1082_v34 = vadd.f32 %v1011_v58, %v3033_v5  ;;  %v1013_v35 = vpop.f32.mrb[49].mxu1  ;;  %1351 = vmatmul.mubr.f32.gmra.mrb[44].mxu0 %v1128_v28  ;;  %v358_v28 = vld [vmem:[#allocation12 + $0x60] sm:$0xff] }
 0x347   : > { %v1066_v3 = vsub.f32 %v3031_v4, %v1013_v35  ;;  %v1177_v36 = vadd.f32 %v1161_v63, %v1145_v31  ;;  %v1129_v57 = vsub.f32 %v1097_v30, %v1113_v29  ;;  %v375_v29 = vld [vmem:[#allocation12 + $0xe0] sm:$0xff] }
 0x348   : > { %v1114_v37 = vmul.f32 %v1082_v34, %v371_v33  ;;  %v1162_v2 = vmul.f32 %v1082_v34, %v354_v32 }
 0x349   : > { %v1098_v38 = vmul.f32 %v1066_v3, %v354_v32  ;;  %v1146_v39 = vmul.f32 %v1066_v3, %v371_v33  ;;  %v1017_v42 = vpop.f32.mrb[50].mxu1  ;;  %1356 = vmatprep.mubr.f32.mxu0 %v1177_v36  ;;  %v359_v3 = vld [vmem:[#allocation12 + $0x68] sm:$0xff] }
 0x34a   : > { %v1083_v43 = vadd.f32 %v1017_v42, %v3037_v7  ;;  %v1019_v60 = vpop.f32.mrb[51].mxu1  ;;  %1357 = vmatmul.mubr.f32.gmra.mrb[46].mxu0 %v1129_v57  ;;  %v376_v36 = vld [vmem:[#allocation12 + $0xe8] sm:$0xff] }
 0x34b   : > { %v1067_v5 = vsub.f32 %v3035_v6, %v1019_v60  ;;  %v1178_v44 = vadd.f32 %v1162_v2, %v1146_v39  ;;  %v1130_v45 = vsub.f32 %v1098_v38, %v1114_v37  ;;  %v377_v60 = vld [vmem:[#allocation12 + $0xf0] sm:$0xff] }
 0x34c   : > { %v1115_v46 = vmul.f32 %v1083_v43, %v372_v41  ;;  %v1163_v4 = vmul.f32 %v1083_v43, %v355_v40  ;;  %v360_v43 = vld [vmem:[#allocation12 + $0x70] sm:$0xff] }
 0x34d   : > { %v1099_v59 = vmul.f32 %v1067_v5, %v355_v40  ;;  %v1147_v47 = vmul.f32 %v1067_v5, %v372_v41  ;;  %v1023_v50 = vpop.f32.mrb[52].mxu1  ;;  %1362 = vmatprep.mubr.f32.mxu0 %v1178_v44 }
 0x34e   : > { %v1084_v51 = vadd.f32 %v1023_v50, %v3041_v9  ;;  %v1025_v52 = vpop.f32.mrb[53].mxu1  ;;  %1363 = vmatmul.mubr.f32.gmra.mrb[48].mxu0 %v1130_v45  ;;  %v378_v50 = vld [vmem:[#allocation12 + $0xf8] sm:$0xff] }
 0x34f   : > { %v1068_v7 = vsub.f32 %v3039_v8, %v1025_v52  ;;  %v1179_v54 = vadd.f32 %v1163_v4, %v1147_v47  ;;  %v1131_v62 = vsub.f32 %v1099_v59, %v1115_v46 }
 0x350   : > { %v1116_v53 = vmul.f32 %v1084_v51, %v373_v49  ;;  %v1164_v6 = vmul.f32 %v1084_v51, %v356_v48 }
 0x351   : > { %v1100_v20 = vmul.f32 %v1068_v7, %v356_v48  ;;  %v1148_v21 = vmul.f32 %v1068_v7, %v373_v49  ;;  %v1029_v23 = vpop.f32.mrb[54].mxu1  ;;  %1368 = vmatprep.mubr.f32.mxu0 %v1179_v54  ;;  %v361_v49 = vld [vmem:[#allocation12 + $0x78] sm:$0xff] }
 0x352   : > { %v1085_v24 = vadd.f32 %v1029_v23, %v3045_v11  ;;  %v1031_v56 = vpop.f32.mrb[55].mxu1  ;;  %1369 = vmatmul.mubr.f32.gmra.mrb[50].mxu0 %v1131_v62 }
 0x353   : > { %v1069_v9 = vsub.f32 %v3043_v10, %v1031_v56  ;;  %v1180_v25 = vadd.f32 %v1164_v6, %v1148_v21  ;;  %v1132_v26 = vsub.f32 %v1100_v20, %v1116_v53 }
 0x354   : > { %v1117_v55 = vmul.f32 %v1085_v24, %v374_v22  ;;  %v1165_v8 = vmul.f32 %v1085_v24, %v357_v61 }
 0x355   : > { %v1101_v1 = vmul.f32 %v1069_v9, %v357_v61  ;;  %v1149_v27 = vmul.f32 %v1069_v9, %v374_v22  ;;  %v1035_v63 = vpop.f32.mrb[56].mxu1  ;;  %1374 = vmatprep.mubr.f32.mxu0 %v1180_v25 }
 0x356   : > { %v1086_v30 = vadd.f32 %v1035_v63, %v3049_v13  ;;  %v1037_v31 = vpop.f32.mrb[57].mxu1  ;;  %1375 = vmatmul.mubr.f32.gmra.mrb[52].mxu0 %v1132_v26 }
 0x357   : > { %v1070_v11 = vsub.f32 %v3047_v12, %v1037_v31  ;;  %v1181_v32 = vadd.f32 %v1165_v8, %v1149_v27  ;;  %v1133_v33 = vsub.f32 %v1101_v1, %v1117_v55 }
 0x358   : > { %v1118_v58 = vmul.f32 %v1086_v30, %v375_v29  ;;  %v1166_v10 = vmul.f32 %v1086_v30, %v358_v28 }
 0x359   : > { %v1102_v34 = vmul.f32 %v1070_v11, %v358_v28  ;;  %v1150_v35 = vmul.f32 %v1070_v11, %v375_v29  ;;  %v1041_v57 = vpop.f32.mrb[58].mxu1  ;;  %1380 = vmatprep.mubr.f32.mxu0 %v1181_v32 }
 0x35a   : > { %v1087_v37 = vadd.f32 %v1041_v57, %v3053_v15  ;;  %v1043_v2 = vpop.f32.mrb[59].mxu1  ;;  %1381 = vmatmul.mubr.f32.gmra.mrb[54].mxu0 %v1133_v33 }
 0x35b   : > { %v1071_v13 = vsub.f32 %v3051_v14, %v1043_v2  ;;  %v1182_v38 = vadd.f32 %v1166_v10, %v1150_v35  ;;  %v1134_v39 = vsub.f32 %v1102_v34, %v1118_v58 }
 0x35c   : > { %v1119_v40 = vmul.f32 %v1087_v37, %v376_v36  ;;  %v1167_v12 = vmul.f32 %v1087_v37, %v359_v3 }
 0x35d   : > { %v1103_v41 = vmul.f32 %v1071_v13, %v359_v3  ;;  %v1151_v42 = vmul.f32 %v1071_v13, %v376_v36  ;;  %v1047_v5 = vpop.f32.mrb[60].mxu1  ;;  %1386 = vmatprep.mubr.f32.mxu0 %v1182_v38 }
 0x35e   : > { %v1088_v44 = vadd.f32 %v1047_v5, %v3057_v17  ;;  %v1049_v45 = vpop.f32.mrb[61].mxu1  ;;  %1387 = vmatmul.mubr.f32.gmra.mrb[56].mxu0 %v1134_v39 }
 0x35f   : > { %v1072_v15 = vsub.f32 %v3055_v16, %v1049_v45  ;;  %v1183_v46 = vadd.f32 %v1167_v12, %v1151_v42  ;;  %v1135_v4 = vsub.f32 %v1103_v41, %v1119_v40 }
 0x360   : > { %v1120_v59 = vmul.f32 %v1088_v44, %v377_v60  ;;  %v1168_v14 = vmul.f32 %v1088_v44, %v360_v43 }
 0x361   : > { %v1104_v47 = vmul.f32 %v1072_v15, %v360_v43  ;;  %v1152_v48 = vmul.f32 %v1072_v15, %v377_v60  ;;  %v1053_v51 = vpop.f32.mrb[62].mxu1  ;;  %1392 = vmatprep.mubr.f32.mxu0 %v1183_v46 }
 0x362   : > { %v1089_v52 = vadd.f32 %v1053_v51, %v3061_v19  ;;  %v1055_v7 = vpop.f32.mrb[63].mxu1  ;;  %1393 = vmatmul.mubr.f32.gmra.mrb[58].mxu0 %v1135_v4  ;;  %v1590_v51 = vld [vmem:[#allocation11 + $0x88] sm:$0xff] }
 0x363   : > { %v1073_v17 = vsub.f32 %v3059_v18, %v1055_v7  ;;  %v1184_v54 = vadd.f32 %v1168_v14, %v1152_v48  ;;  %v1136_v62 = vsub.f32 %v1104_v47, %v1120_v59  ;;  %v1411_v48 = vld [vmem:[#allocation11] sm:$0xff]  ;;  %v1591_v7 = vld [vmem:[#allocation11 + $0x90] sm:$0xff] }
 0x364   : > { %v1121_v53 = vmul.f32 %v1089_v52, %v378_v50  ;;  %v1169_v16 = vmul.f32 %v1089_v52, %v361_v49  ;;  %v1413_v52 = vld [vmem:[#allocation11 + $0x10] sm:$0xff] }
 0x365   : > { %v1105_v6 = vmul.f32 %v1073_v17, %v361_v49  ;;  %v1153_v20 = vmul.f32 %v1073_v17, %v378_v50  ;;  %1398 = vmatprep.mubr.f32.mxu0 %v1184_v54  ;;  %v1589_v49 = vld [vmem:[#allocation11 + $0x80] sm:$0xff]  ;;  %v1412_v50 = vld [vmem:[#allocation11 + $0x8] sm:$0xff]  ;;  %v1414_v17 = vld [vmem:[#allocation11 + $0x18] sm:$0xff] }
 0x366   : > { %1399 = vmatmul.mubr.f32.gmra.mrb[60].mxu0 %v1136_v62  ;;  %v1592_v54 = vld [vmem:[#allocation11 + $0x98] sm:$0xff]  ;;  %v1415_v62 = vld [vmem:[#allocation11 + $0x20] sm:$0xff] }
 0x367   : > { %v1185_v21 = vadd.f32 %v1169_v16, %v1153_v20  ;;  %v1137_v61 = vsub.f32 %v1105_v6, %v1121_v53  ;;  %v1593_v53 = vld [vmem:[#allocation11 + $0xa0] sm:$0xff]  ;;  %v1416_v16 = vld [vmem:[#allocation11 + $0x28] sm:$0xff]  ;;  %v1417_v20 = vld [vmem:[#allocation11 + $0x30] sm:$0xff] }
 0x368   : > { %v1594_v6 = vld [vmem:[#allocation11 + $0xa8] sm:$0xff] }
 0x369   : > { %1404 = vmatprep.mubr.f32.mxu0 %v1185_v21  ;;  %v1595_v21 = vld [vmem:[#allocation11 + $0xb0] sm:$0xff] }
 0x36a   : > { %1405 = vmatmul.mubr.f32.gmra.mrb[62].mxu0 %v1137_v61  ;;  %v1418_v61 = vld [vmem:[#allocation11 + $0x38] sm:$0xff] }
 0x36b   : > { %1669 = vmatprep.mubr.f32.mxu0 %v2634_v0 }
 0x401   : > { %v1316_v22 = vpop.f32.mrb[32].mxu0 }
 0x402   : > { %v1318_v19 = vpop.f32.mrb[33].mxu0 }
 0x405   : > { %v1322_v23 = vpop.f32.mrb[34].mxu0 }
 0x406   : > { %v3090_v24 = vpack.c.bf16 %v1322_v23, %v1316_v22  ;;  %v1324_v18 = vpop.f32.mrb[35].mxu0  ;;  %v1596_v22 = vld [vmem:[#allocation11 + $0xb8] sm:$0xff]  ;;  %v1597_v23 = vld [vmem:[#allocation11 + $0xc0] sm:$0xff] }
 0x407   : > { %v3092_v56 = vpack.c.bf16 %v1324_v18, %v1318_v19  ;;  %v1419_v19 = vld [vmem:[#allocation11 + $0x40] sm:$0xff]  ;;  %v1598_v18 = vld [vmem:[#allocation11 + $0xc8] sm:$0xff] }
 0x409   : > { %v1328_v9 = vpop.f32.mrb[36].mxu0  ;;  %2191 = vmatprep.subr.bf16.mxu1 %v3092_v56  ;;  %2223 = vmatprep.subr.bf16.mxu0 %v3092_v56 }
 0x40a   : > { %v1330_v25 = vpop.f32.mrb[37].mxu0  ;;  %2193 = vmatpush1.bf16.msra.mxu1 %v3090_v24  ;;  %2225 = vmatpush1.bf16.msra.mxu0 %v3090_v24 }
 0x40d   : > { %v1334_v26 = vpop.f32.mrb[38].mxu0 }
 0x40e   : > { %v3098_v55 = vpack.c.bf16 %v1334_v26, %v1328_v9  ;;  %v1336_v8 = vpop.f32.mrb[39].mxu0  ;;  %v1599_v9 = vld [vmem:[#allocation11 + $0xd0] sm:$0xff]  ;;  %v1600_v26 = vld [vmem:[#allocation11 + $0xd8] sm:$0xff] }
 0x40f   : > { %v3100_v1 = vpack.c.bf16 %v1336_v8, %v1330_v25  ;;  %v1422_v25 = vld [vmem:[#allocation11 + $0x58] sm:$0xff]  ;;  %v1424_v8 = vld [vmem:[#allocation11 + $0x68] sm:$0xff] }
 0x411   : > { %v1340_v27 = vpop.f32.mrb[40].mxu0  ;;  %2195 = vmatprep.subr.bf16.mxu1 %v3100_v1  ;;  %2227 = vmatprep.subr.bf16.mxu0 %v3100_v1 }
 0x412   : > { %v1342_v28 = vpop.f32.mrb[41].mxu0  ;;  %2197 = vmatpush1.bf16.msra.mxu1 %v3098_v55  ;;  %2229 = vmatpush1.bf16.msra.mxu0 %v3098_v55 }
 0x415   : > { %v1346_v29 = vpop.f32.mrb[42].mxu0 }
 0x416   : > { %v3106_v63 = vpack.c.bf16 %v1346_v29, %v1340_v27  ;;  %v1348_v30 = vpop.f32.mrb[43].mxu0  ;;  %v1426_v27 = vld [vmem:[#allocation11 + $0x78] sm:$0xff]  ;;  %v1602_v29 = vld [vmem:[#allocation11 + $0xe8] sm:$0xff] }
 0x417   : > { %v3108_v31 = vpack.c.bf16 %v1348_v30, %v1342_v28  ;;  %v1601_v28 = vld [vmem:[#allocation11 + $0xe0] sm:$0xff]  ;;  %v1604_v30 = vld [vmem:[#allocation11 + $0xf8] sm:$0xff] }
 0x419   : > { %v1352_v11 = vpop.f32.mrb[44].mxu0  ;;  %2199 = vmatprep.subr.bf16.mxu1 %v3108_v31  ;;  %2231 = vmatprep.subr.bf16.mxu0 %v3108_v31 }
 0x41a   : > { %v1354_v32 = vpop.f32.mrb[45].mxu0  ;;  %2201 = vmatpush1.bf16.msra.mxu1 %v3106_v63  ;;  %2233 = vmatpush1.bf16.msra.mxu0 %v3106_v63 }
 0x41d   : > { %v1358_v33 = vpop.f32.mrb[46].mxu0 }
 0x41e   : > { %v3114_v58 = vpack.c.bf16 %v1358_v33, %v1352_v11  ;;  %v1360_v10 = vpop.f32.mrb[47].mxu0 }
 0x41f   : > { %v3116_v34 = vpack.c.bf16 %v1360_v10, %v1354_v32 }
 0x421   : > { %v1364_v35 = vpop.f32.mrb[48].mxu0  ;;  %2203 = vmatprep.subr.bf16.mxu1 %v3116_v34  ;;  %2235 = vmatprep.subr.bf16.mxu0 %v3116_v34 }
 0x422   : > { %v1366_v3 = vpop.f32.mrb[49].mxu0  ;;  %2205 = vmatpush1.bf16.msra.mxu1 %v3114_v58  ;;  %2237 = vmatpush1.bf16.msra.mxu0 %v3114_v58 }
 0x425   : > { %v1370_v36 = vpop.f32.mrb[50].mxu0 }
 0x426   : > { %v3122_v57 = vpack.c.bf16 %v1370_v36, %v1364_v35  ;;  %v1372_v37 = vpop.f32.mrb[51].mxu0 }
 0x427   : > { %v3124_v2 = vpack.c.bf16 %v1372_v37, %v1366_v3 }
 0x429   : > { %v1376_v13 = vpop.f32.mrb[52].mxu0  ;;  %2207 = vmatprep.subr.bf16.mxu1 %v3124_v2  ;;  %2239 = vmatprep.subr.bf16.mxu0 %v3124_v2 }
 0x42a   : > { %v1378_v38 = vpop.f32.mrb[53].mxu0  ;;  %2209 = vmatpush1.bf16.msra.mxu1 %v3122_v57  ;;  %2241 = vmatpush1.bf16.msra.mxu0 %v3122_v57 }
 0x42d   : > { %v1382_v39 = vpop.f32.mrb[54].mxu0 }
 0x42e   : > { %v3130_v40 = vpack.c.bf16 %v1382_v39, %v1376_v13  ;;  %v1384_v12 = vpop.f32.mrb[55].mxu0 }
 0x42f   : > { %v3132_v41 = vpack.c.bf16 %v1384_v12, %v1378_v38 }
 0x431   : > { %v1388_v42 = vpop.f32.mrb[56].mxu0  ;;  %2211 = vmatprep.subr.bf16.mxu1 %v3132_v41  ;;  %2243 = vmatprep.subr.bf16.mxu0 %v3132_v41 }
 0x432   : > { %v1390_v43 = vpop.f32.mrb[57].mxu0  ;;  %2213 = vmatpush1.bf16.msra.mxu1 %v3130_v40  ;;  %2245 = vmatpush1.bf16.msra.mxu0 %v3130_v40 }
 0x435   : > { %v1394_v60 = vpop.f32.mrb[58].mxu0 }
 0x436   : > { %v3138_v5 = vpack.c.bf16 %v1394_v60, %v1388_v42  ;;  %v1396_v44 = vpop.f32.mrb[59].mxu0 }
 0x437   : > { %v3140_v45 = vpack.c.bf16 %v1396_v44, %v1390_v43 }
 0x439   : > { %v1400_v15 = vpop.f32.mrb[60].mxu0  ;;  %2215 = vmatprep.subr.bf16.mxu1 %v3140_v45  ;;  %2247 = vmatprep.subr.bf16.mxu0 %v3140_v45 }
 0x43a   : > { %v1402_v46 = vpop.f32.mrb[61].mxu0  ;;  %2217 = vmatpush1.bf16.msra.mxu1 %v3138_v5  ;;  %2249 = vmatpush1.bf16.msra.mxu0 %v3138_v5 }
 0x43d   : > { %v1406_v4 = vpop.f32.mrb[62].mxu0 }
 0x43e   : > { %v3146_v59 = vpack.c.bf16 %v1406_v4, %v1400_v15  ;;  %v1408_v14 = vpop.f32.mrb[63].mxu0 }
 0x43f   : > { %v2218_v47 = vpack.c.bf16 %v1408_v14, %v1402_v46 }
 0x441   : > { %2219 = vmatprep.subr.bf16.mxu1 %v2218_v47  ;;  %2251 = vmatprep.subr.bf16.mxu0 %v2218_v47 }
 0x442   : > { %2221 = vmatpush1.bf16.msra.mxu1 %v3146_v59  ;;  %2253 = vmatpush1.bf16.msra.mxu0 %v3146_v59 }
 0x443   : > { %2254 = vmatprep.subr.bf16.mxu1 %v3092_v56  ;;  %v1421_v56 = vld [vmem:[#allocation11 + $0x50] sm:$0xff] }
 0x445   : > { %1492 = vmatmul.mubr.f32.vlgmr.msra.gmra.mrb[64].mxu1 %v1411_v48  ;;  %1670 = vmatmul.mubr.f32.vlgmr.msra.gmra.mrb[64].mxu0 %v1589_v49 }
 0x446   : > { %2262 = vmatpush1.bf16.msra.mxu1 %v3090_v24  ;;  %1497 = vmatprep.mubr.f32.mxu1 %v2634_v0  ;;  %v1420_v24 = vld [vmem:[#allocation11 + $0x48] sm:$0xff] }
 0x447   : > { %2255 = vmatprep.subr.bf16.mxu1 %v3100_v1  ;;  %1675 = vmatprep.mubr.f32.mxu0 %v2634_v0  ;;  %v1425_v1 = vld [vmem:[#allocation11 + $0x70] sm:$0xff] }
 0x449   : > { %1498 = vmatmul.mubr.f32.gmra.mrb[66].mxu1 %v1412_v50  ;;  %1676 = vmatmul.mubr.f32.gmra.mrb[66].mxu0 %v1590_v51 }
 0x44a   : > { %2263 = vmatpush1.bf16.msra.mxu1 %v3098_v55  ;;  %1503 = vmatprep.mubr.f32.mxu1 %v2634_v0  ;;  %v1423_v55 = vld [vmem:[#allocation11 + $0x60] sm:$0xff] }
 0x44b   : > { %2256 = vmatprep.subr.bf16.mxu1 %v3108_v31  ;;  %1681 = vmatprep.mubr.f32.mxu0 %v2634_v0 }
 0x44d   : > { %1504 = vmatmul.mubr.f32.gmra.mrb[68].mxu1 %v1413_v52  ;;  %1682 = vmatmul.mubr.f32.gmra.mrb[68].mxu0 %v1591_v7 }
 0x44e   : > { %2264 = vmatpush1.bf16.msra.mxu1 %v3106_v63  ;;  %1509 = vmatprep.mubr.f32.mxu1 %v2634_v0  ;;  %v1603_v63 = vld [vmem:[#allocation11 + $0xf0] sm:$0xff] }
 0x44f   : > { %2257 = vmatprep.subr.bf16.mxu1 %v3116_v34  ;;  %1687 = vmatprep.mubr.f32.mxu0 %v2634_v0 }
 0x451   : > { %1510 = vmatmul.mubr.f32.gmra.mrb[70].mxu1 %v1414_v17  ;;  %1688 = vmatmul.mubr.f32.gmra.mrb[70].mxu0 %v1592_v54 }
 0x452   : > { %2265 = vmatpush1.bf16.msra.mxu1 %v3114_v58  ;;  %1515 = vmatprep.mubr.f32.mxu1 %v2634_v0 }
 0x453   : > { %2258 = vmatprep.subr.bf16.mxu1 %v3124_v2  ;;  %1693 = vmatprep.mubr.f32.mxu0 %v2634_v0 }
 0x455   : > { %1516 = vmatmul.mubr.f32.gmra.mrb[72].mxu1 %v1415_v62  ;;  %1694 = vmatmul.mubr.f32.gmra.mrb[72].mxu0 %v1593_v53 }
 0x456   : > { %2266 = vmatpush1.bf16.msra.mxu1 %v3122_v57  ;;  %1521 = vmatprep.mubr.f32.mxu1 %v2634_v0 }
 0x457   : > { %2259 = vmatprep.subr.bf16.mxu1 %v3132_v41  ;;  %1699 = vmatprep.mubr.f32.mxu0 %v2634_v0 }
 0x459   : > { %1522 = vmatmul.mubr.f32.gmra.mrb[74].mxu1 %v1416_v16  ;;  %1700 = vmatmul.mubr.f32.gmra.mrb[74].mxu0 %v1594_v6 }
 0x45a   : > { %2267 = vmatpush1.bf16.msra.mxu1 %v3130_v40  ;;  %1527 = vmatprep.mubr.f32.mxu1 %v2634_v0 }
 0x45b   : > { %2260 = vmatprep.subr.bf16.mxu1 %v3140_v45  ;;  %1705 = vmatprep.mubr.f32.mxu0 %v2634_v0 }
 0x45d   : > { %1528 = vmatmul.mubr.f32.gmra.mrb[76].mxu1 %v1417_v20  ;;  %1706 = vmatmul.mubr.f32.gmra.mrb[76].mxu0 %v1595_v21 }
 0x45e   : > { %2268 = vmatpush1.bf16.msra.mxu1 %v3138_v5  ;;  %1533 = vmatprep.mubr.f32.mxu1 %v2634_v0 }
 0x45f   : > { %2261 = vmatprep.subr.bf16.mxu1 %v2218_v47  ;;  %1711 = vmatprep.mubr.f32.mxu0 %v2634_v0 }
 0x461   : > { %1534 = vmatmul.mubr.f32.gmra.mrb[78].mxu1 %v1418_v61  ;;  %1712 = vmatmul.mubr.f32.gmra.mrb[78].mxu0 %v1596_v22 }
 0x462   : > { %2269 = vmatpush1.bf16.msra.mxu1 %v3146_v59  ;;  %1539 = vmatprep.mubr.f32.mxu1 %v2634_v0 }
 0x463   : > { %1717 = vmatprep.mubr.f32.mxu0 %v2634_v0 }
 0x465   : > { %1540 = vmatmul.mubr.f32.gmra.mrb[80].mxu1 %v1419_v19  ;;  %1718 = vmatmul.mubr.f32.gmra.mrb[80].mxu0 %v1597_v23 }
 0x466   : > { %1545 = vmatprep.mubr.f32.mxu1 %v2634_v0  ;;  %1723 = vmatprep.mubr.f32.mxu0 %v2634_v0 }
 0x469   : > { %1546 = vmatmul.mubr.f32.gmra.mrb[82].mxu1 %v1420_v24  ;;  %1724 = vmatmul.mubr.f32.gmra.mrb[82].mxu0 %v1598_v18 }
 0x46a   : > { %1551 = vmatprep.mubr.f32.mxu1 %v2634_v0  ;;  %1729 = vmatprep.mubr.f32.mxu0 %v2634_v0 }
 0x46d   : > { %1552 = vmatmul.mubr.f32.gmra.mrb[84].mxu1 %v1421_v56  ;;  %1730 = vmatmul.mubr.f32.gmra.mrb[84].mxu0 %v1599_v9 }
 0x46e   : > { %1557 = vmatprep.mubr.f32.mxu1 %v2634_v0  ;;  %1735 = vmatprep.mubr.f32.mxu0 %v2634_v0 }
 0x471   : > { %1558 = vmatmul.mubr.f32.gmra.mrb[86].mxu1 %v1422_v25  ;;  %1736 = vmatmul.mubr.f32.gmra.mrb[86].mxu0 %v1600_v26 }
 0x472   : > { %1563 = vmatprep.mubr.f32.mxu1 %v2634_v0 }
 0x475   : > { %1564 = vmatmul.mubr.f32.gmra.mrb[88].mxu1 %v1423_v55 }
 0x476   : > { %1569 = vmatprep.mubr.f32.mxu1 %v2634_v0 }
 0x479   : > { %1570 = vmatmul.mubr.f32.gmra.mrb[90].mxu1 %v1424_v8 }
 0x47a   : > { %1575 = vmatprep.mubr.f32.mxu1 %v2634_v0 }
 0x47d   : > { %1576 = vmatmul.mubr.f32.gmra.mrb[92].mxu1 %v1425_v1 }
 0x47e   : > { %1581 = vmatprep.mubr.f32.mxu1 %v2634_v0 }
 0x481   : > { %1582 = vmatmul.mubr.f32.gmra.mrb[94].mxu1 %v1426_v27 }
 0x482   : > { %1741 = vmatprep.mubr.f32.mxu1 %v2634_v0 }
 0x485   : > { %1742 = vmatmul.mubr.f32.vlgmr.msra.gmra.mrb[96].mxu1 %v1601_v28 }
 0x486   : > { %1747 = vmatprep.mubr.f32.mxu1 %v2634_v0 }
 0x489   : > { %1748 = vmatmul.mubr.f32.gmra.mrb[98].mxu1 %v1602_v29 }
 0x48a   : > { %1753 = vmatprep.mubr.f32.mxu1 %v2634_v0 }
 0x48d   : > { %1754 = vmatmul.mubr.f32.gmra.mrb[100].mxu1 %v1603_v63 }
 0x48e   : > { %1759 = vmatprep.mubr.f32.mxu1 %v2634_v0 }
 0x491   : > { %1760 = vmatmul.mubr.f32.gmra.mrb[102].mxu1 %v1604_v30 }
 0x518   : > { %v1493_v31 = vpop.f32.mrb[64].mxu1  ;;  %v1671_v11 = vpop.f32.mrb[64].mxu0 }
 0x519   : > { %v1495_v32 = vpop.f32.mrb[65].mxu1  ;;  %v1673_v33 = vpop.f32.mrb[65].mxu0 }
 0x51a   : > { %v1782_v58 = vadd.f32 %v1671_v11, %v1495_v32  ;;  %v1766_v10 = vsub.f32 %v1493_v31, %v1673_v33 }
 0x51c   : > { %1801 = vst [vmem:[%s3197_s28 + $0x8] sm:$0xff] %v1782_v58  ;;  %1800 = vst [vmem:[%s3197_s28] sm:$0xff] %v1766_v10  ;;  %v1499_v0 = vpop.f32.mrb[66].mxu1  ;;  %v1677_v34 = vpop.f32.mrb[66].mxu0 }
 0x51d   : > { %v1501_v35 = vpop.f32.mrb[67].mxu1  ;;  %v1679_v3 = vpop.f32.mrb[67].mxu0 }
 0x51e   : > { %v1783_v36 = vadd.f32 %v1677_v34, %v1501_v35  ;;  %v1767_v57 = vsub.f32 %v1499_v0, %v1679_v3 }
 0x520   : > { %1803 = vst [vmem:[%s3197_s28 + $0x18] sm:$0xff] %v1783_v36  ;;  %1802 = vst [vmem:[%s3197_s28 + $0x10] sm:$0xff] %v1767_v57  ;;  %v1505_v37 = vpop.f32.mrb[68].mxu1  ;;  %v1683_v2 = vpop.f32.mrb[68].mxu0 }
 0x521   : > { %v1507_v13 = vpop.f32.mrb[69].mxu1  ;;  %v1685_v38 = vpop.f32.mrb[69].mxu0 }
 0x522   : > { %v1784_v39 = vadd.f32 %v1683_v2, %v1507_v13  ;;  %v1768_v40 = vsub.f32 %v1505_v37, %v1685_v38 }
 0x524   : > { %1805 = vst [vmem:[%s3197_s28 + $0x28] sm:$0xff] %v1784_v39  ;;  %1804 = vst [vmem:[%s3197_s28 + $0x20] sm:$0xff] %v1768_v40  ;;  %v1511_v12 = vpop.f32.mrb[70].mxu1  ;;  %v1689_v41 = vpop.f32.mrb[70].mxu0 }
 0x525   : > { %v1513_v42 = vpop.f32.mrb[71].mxu1  ;;  %v1691_v43 = vpop.f32.mrb[71].mxu0 }
 0x526   : > { %v1785_v60 = vadd.f32 %v1689_v41, %v1513_v42  ;;  %v1769_v5 = vsub.f32 %v1511_v12, %v1691_v43 }
 0x528   : > { %1807 = vst [vmem:[%s3197_s28 + $0x38] sm:$0xff] %v1785_v60  ;;  %1806 = vst [vmem:[%s3197_s28 + $0x30] sm:$0xff] %v1769_v5  ;;  %v1517_v44 = vpop.f32.mrb[72].mxu1  ;;  %v1695_v45 = vpop.f32.mrb[72].mxu0 }
 0x529   : > { %v1519_v15 = vpop.f32.mrb[73].mxu1  ;;  %v1697_v46 = vpop.f32.mrb[73].mxu0 }
 0x52a   : > { %v1786_v4 = vadd.f32 %v1695_v45, %v1519_v15  ;;  %v1770_v59 = vsub.f32 %v1517_v44, %v1697_v46 }
 0x52c   : > { %1809 = vst [vmem:[%s3197_s28 + $0x48] sm:$0xff] %v1786_v4  ;;  %1808 = vst [vmem:[%s3197_s28 + $0x40] sm:$0xff] %v1770_v59  ;;  %v1523_v14 = vpop.f32.mrb[74].mxu1  ;;  %v1701_v47 = vpop.f32.mrb[74].mxu0 }
 0x52d   : > { %v1525_v48 = vpop.f32.mrb[75].mxu1  ;;  %v1703_v49 = vpop.f32.mrb[75].mxu0 }
 0x52e   : > { %v1787_v50 = vadd.f32 %v1701_v47, %v1525_v48  ;;  %v1771_v51 = vsub.f32 %v1523_v14, %v1703_v49 }
 0x530   : > { %1811 = vst [vmem:[%s3197_s28 + $0x58] sm:$0xff] %v1787_v50  ;;  %1810 = vst [vmem:[%s3197_s28 + $0x50] sm:$0xff] %v1771_v51  ;;  %v1529_v52 = vpop.f32.mrb[76].mxu1  ;;  %v1707_v7 = vpop.f32.mrb[76].mxu0 }
 0x531   : > { %v1531_v17 = vpop.f32.mrb[77].mxu1  ;;  %v1709_v54 = vpop.f32.mrb[77].mxu0 }
 0x532   : > { %v1788_v62 = vadd.f32 %v1707_v7, %v1531_v17  ;;  %v1772_v53 = vsub.f32 %v1529_v52, %v1709_v54 }
 0x534   : > { %1813 = vst [vmem:[%s3197_s28 + $0x68] sm:$0xff] %v1788_v62  ;;  %1812 = vst [vmem:[%s3197_s28 + $0x60] sm:$0xff] %v1772_v53  ;;  %v1535_v16 = vpop.f32.mrb[78].mxu1  ;;  %v1713_v6 = vpop.f32.mrb[78].mxu0 }
 0x535   : > { %v1537_v20 = vpop.f32.mrb[79].mxu1  ;;  %v1715_v21 = vpop.f32.mrb[79].mxu0 }
 0x536   : > { %v1789_v61 = vadd.f32 %v1713_v6, %v1537_v20  ;;  %v1773_v22 = vsub.f32 %v1535_v16, %v1715_v21 }
 0x538   : > { %1815 = vst [vmem:[%s3197_s28 + $0x78] sm:$0xff] %v1789_v61  ;;  %1814 = vst [vmem:[%s3197_s28 + $0x70] sm:$0xff] %v1773_v22  ;;  %v1541_v19 = vpop.f32.mrb[80].mxu1  ;;  %v1719_v23 = vpop.f32.mrb[80].mxu0 }
 0x539   : > { %v1543_v24 = vpop.f32.mrb[81].mxu1  ;;  %v1721_v18 = vpop.f32.mrb[81].mxu0 }
 0x53a   : > { %v1790_v56 = vadd.f32 %v1719_v23, %v1543_v24  ;;  %v1774_v9 = vsub.f32 %v1541_v19, %v1721_v18 }
 0x53c   : > { %1817 = vst [vmem:[%s3197_s28 + $0x88] sm:$0xff] %v1790_v56  ;;  %1816 = vst [vmem:[%s3197_s28 + $0x80] sm:$0xff] %v1774_v9  ;;  %v1547_v25 = vpop.f32.mrb[82].mxu1  ;;  %v1725_v26 = vpop.f32.mrb[82].mxu0 }
 0x53d   : > { %v1549_v55 = vpop.f32.mrb[83].mxu1  ;;  %v1727_v8 = vpop.f32.mrb[83].mxu0 }
 0x53e   : > { %v1791_v1 = vadd.f32 %v1725_v26, %v1549_v55  ;;  %v1775_v27 = vsub.f32 %v1547_v25, %v1727_v8 }
 0x540   : > { %1819 = vst [vmem:[%s3197_s28 + $0x98] sm:$0xff] %v1791_v1  ;;  %1818 = vst [vmem:[%s3197_s28 + $0x90] sm:$0xff] %v1775_v27  ;;  %v1553_v28 = vpop.f32.mrb[84].mxu1  ;;  %v1731_v29 = vpop.f32.mrb[84].mxu0 }
 0x541   : > { %v1555_v63 = vpop.f32.mrb[85].mxu1  ;;  %v1733_v30 = vpop.f32.mrb[85].mxu0 }
 0x542   : > { %v1792_v31 = vadd.f32 %v1731_v29, %v1555_v63  ;;  %v1776_v11 = vsub.f32 %v1553_v28, %v1733_v30 }
 0x544   : > { %1821 = vst [vmem:[%s3197_s28 + $0xa8] sm:$0xff] %v1792_v31  ;;  %1820 = vst [vmem:[%s3197_s28 + $0xa0] sm:$0xff] %v1776_v11  ;;  %v1559_v32 = vpop.f32.mrb[86].mxu1  ;;  %v1737_v33 = vpop.f32.mrb[86].mxu0 }
 0x545   : > { %v1561_v58 = vpop.f32.mrb[87].mxu1  ;;  %v1739_v10 = vpop.f32.mrb[87].mxu0 }
 0x546   : > { %v1793_v0 = vadd.f32 %v1737_v33, %v1561_v58  ;;  %v1777_v34 = vsub.f32 %v1559_v32, %v1739_v10 }
 0x548   : > { %1823 = vst [vmem:[%s3197_s28 + $0xb8] sm:$0xff] %v1793_v0  ;;  %1822 = vst [vmem:[%s3197_s28 + $0xb0] sm:$0xff] %v1777_v34  ;;  %v1565_v35 = vpop.f32.mrb[88].mxu1 }
 0x549   : > { %v1567_v3 = vpop.f32.mrb[89].mxu1 }
 0x54c   : > { %v1571_v36 = vpop.f32.mrb[90].mxu1 }
 0x54d   : > { %v1573_v57 = vpop.f32.mrb[91].mxu1 }
 0x550   : > { %v1577_v37 = vpop.f32.mrb[92].mxu1 }
 0x551   : > { %v1579_v2 = vpop.f32.mrb[93].mxu1 }
 0x554   : > { %v1583_v13 = vpop.f32.mrb[94].mxu1 }
 0x555   : > { %v1585_v38 = vpop.f32.mrb[95].mxu1 }
 0x558   : > { %v1743_v39 = vpop.f32.mrb[96].mxu1 }
 0x559   : > { %v1794_v40 = vadd.f32 %v1743_v39, %v1567_v3  ;;  %v1745_v12 = vpop.f32.mrb[97].mxu1 }
 0x55a   : > { %v1778_v41 = vsub.f32 %v1565_v35, %v1745_v12 }
 0x55b   : > { %1825 = vst [vmem:[%s3197_s28 + $0xc8] sm:$0xff] %v1794_v40 }
 0x55c   : > { %1824 = vst [vmem:[%s3197_s28 + $0xc0] sm:$0xff] %v1778_v41  ;;  %v1749_v42 = vpop.f32.mrb[98].mxu1 }
 0x55d   : > { %v1795_v43 = vadd.f32 %v1749_v42, %v1573_v57  ;;  %v1751_v60 = vpop.f32.mrb[99].mxu1 }
 0x55e   : > { %v1779_v5 = vsub.f32 %v1571_v36, %v1751_v60 }
 0x55f   : > { %1827 = vst [vmem:[%s3197_s28 + $0xd8] sm:$0xff] %v1795_v43 }
 0x560   : > { %1826 = vst [vmem:[%s3197_s28 + $0xd0] sm:$0xff] %v1779_v5  ;;  %v1755_v44 = vpop.f32.mrb[100].mxu1 }
 0x561   : > { %v1796_v45 = vadd.f32 %v1755_v44, %v1579_v2  ;;  %v1757_v15 = vpop.f32.mrb[101].mxu1 }
 0x562   : > { %v1780_v46 = vsub.f32 %v1577_v37, %v1757_v15 }
 0x563   : > { %1829 = vst [vmem:[%s3197_s28 + $0xe8] sm:$0xff] %v1796_v45 }
 0x564   : > { %1828 = vst [vmem:[%s3197_s28 + $0xe0] sm:$0xff] %v1780_v46  ;;  %v1761_v4 = vpop.f32.mrb[102].mxu1 }
 0x565   : > { %v1797_v59 = vadd.f32 %v1761_v4, %v1585_v38  ;;  %v1763_v14 = vpop.f32.mrb[103].mxu1 }
 0x566   : > { %v1781_v47 = vsub.f32 %v1583_v13, %v1763_v14 }
 0x567   : > { %1831 = vst [vmem:[%s3197_s28 + $0xf8] sm:$0xff] %v1797_v59 }
 0x568   : > { %1830 = vst [vmem:[%s3197_s28 + $0xf0] sm:$0xff] %v1781_v47 }
 0x569   : > { %2557 = shalt.err (!%p2554_p8)
}
 0x56a   : > { %s2558_s30 = scalar_lea.hbm %s3234_s17, 4096  ;;  %s2562_s7 = scalar_lea.hbm %s3288_s6, 8192 }
 0x56b   : > { %p2559_p6 = scmp.ne.s32.totalorder %s3234_s17, %s2558_s30  ;;  %p2563_p3 = scmp.lt.u32.totalorder %s3234_s17, %s3288_s6 }
 0x56c   : > { %p2564_p0 = scmp.lt.u32.totalorder %s2562_s7, %s2558_s30  ;;  %p2566_p2 = scmp.lt.u32.totalorder %s2558_s30, %s3234_s17 }
 0x56d   : > { %p2560_p9 = pnand %p2559_p6, %p3310_p7 }
 0x56e   : > { %p2565_p5 = por %p2564_p0, %p2563_p3 }
 0x56f   : > { %p2561_p4 = pneg %p2560_p9 }
 0x570   : > { %p2567_p10 = por %p2566_p2, %p2565_p5 }
 0x572   : > { %p2568_p1 = pnand %p2567_p10, %p2561_p4 }
 0x574   : > { %2571 = shalt.err (!%p2568_p1)
}
 0x575   : > { %s2636_s13 = smov 256   ;;  %s2637_s9 = smov 16  }
 0x576   : > { %2292 = dma.vmem_to_hbm [thread:$0]  (%p3310_p7), %s3236_s20, 4096, %s3234_s17, %s1833_s27, %s2636_s13, %s2636_s13, %s2637_s9  }
 0x577 PF: > { %s1862_s29 = sand.u32 1, %s2610_s21   ;;  %p3311_p11 = scmp.ne.s32.totalorder %s3301_s25, 0 }
 0x578   : > { %p3312_p12 = scmp.ge.s32.totalorder %s2622_s24, 2  ;;  %s1863_s11 = scalar_lea.sflag [#allocation5], %s1862_s29 }
 0x57a   : > { %p2315_p13 = pnand %p3312_p12, %p3311_p11 }
 0x57c   : > { %2605 = dma.done.wait (!%p2315_p13), %s1863_s11, 4096  }
 0x57d   : > { %2607 = vsyncadd (!%p2315_p13), %s1863_s11, 4294963200  ;;  %p22_p8 = scmp.ge.s32.totalorder %s2842_s15, 4   ;;  %s3313_s21 = smov %s2614_s22 }
 0x57e   : > { %s3314_s22 = smov %s2618_s23  ;;  %s3315_s23 = smov %s2854_s12 }
 0x57f   : > { %s3316_s24 = smov %s2842_s15  ;;  %24 = sbr.rel (!%p22_p8) target bundleno = 8 (0x8), region = 114 }
 0x586   :  { %1868 = vsyncpa [#allocation4], 1 }
 0x587   :  { %1870 = vsyncpa [#allocation4 + $0x1], 1 }
 0x588   :  { %1871 = vsyncpa [#allocation7], 1 }
 0x589   :  { %1872 = vsyncpa [#allocation10], 1 }
 0x58a   :  { %1873 = vsyncpa [#allocation13], 1 }
 0x58b   :  { %1874 = vsyncpa [#allocation5], 1 }
 0x58c   :  { %1876 = vsyncpa [#allocation5 + $0x1], 1 }

// kernel: tpu_custom_call.1
= control target key start
LH: loop header
LB: loop body
LE: loop exit
PB: predicated region body
PF: predicated region fallthrough
CT: control target
= control target key end

     0   :  { %11 = vsyncpa [#allocation4], 0  ;;  %s3282_s0 = inlined_call_operand.hbm [shape: f32[256,256], index: 0, kind: input, shape index: {}]   ;;  %s3283_s1 = inlined_call_operand.hbm [shape: f32[256,256], index: 1, kind: input, shape index: {}]   ;;  %s3284_s2 = inlined_call_operand.hbm [shape: f32[256,256], index: 2, kind: input, shape index: {}]   ;;  %s3285_s3 = inlined_call_operand.hbm [shape: f32[2,128,128], index: 3, kind: input, shape index: {}]   ;;  %s3286_s4 = inlined_call_operand.hbm [shape: f32[2,128,128], index: 4, kind: input, shape index: {}]   ;;  %s3287_s5 = inlined_call_operand.hbm [shape: f32[2,128,128], index: 5, kind: input, shape index: {}]   ;;  %s3288_s6 = inlined_call_operand.hbm [shape: f32[256,256], index: 6, kind: output, shape index: {}]  }
   0x1   :  { %13 = vsyncpa [#allocation4 + $0x1], 0 }
   0x2   :  { %14 = vsyncpa [#allocation7], 0 }
   0x3   :  { %15 = vsyncpa [#allocation10], 0 }
   0x4   :  { %16 = vsyncpa [#allocation13], 0 }
   0x5   :  { %17 = vsyncpa [#allocation5], 0 }
   0x6   :  { %19 = vsyncpa [#allocation5 + $0x1], 0  ;;  %s2673_s21 = smov 0   ;;  %s2675_s22 = smov 0  }
   0x7   :  { %s2677_s23 = smov 0   ;;  %s2679_s24 = smov 0  }
   0x8 LB: > { %s2624_s25 = smov [#allocation6]   ;;  %s2694_s27 = sadd.s32 4294967295, %s2622_s24   ;;  %s2622_s24 = sphi %s2679_s24, %s3316_s24   ;;  %s2618_s23 = sphi %s2677_s23, %s3315_s23   ;;  %s2614_s22 = sphi %s2675_s22, %s3314_s22   ;;  %s2610_s21 = sphi %s2673_s21, %s3313_s21  }
   0x9   : > { %s199_s26 = sshll.u32 %s2624_s25, 4  ;;  %p1969_p0 = scmp.ge.s32.totalorder %s2622_s24, 1  ;;  %s2699_s26 = int_to_ptr.vmem [resolvable:$true] %s199_s26 }
   0xa   : > { %p3289_p1 = scmp.eq.s32.totalorder %s2694_s27, 0  ;;  %p187_p2 = scmp.lt.s32.totalorder %s2622_s24, 3 }
   0xb   : > { %s2625_s29 = smov [#allocation9]   ;;  %s2626_s8 = smov [#allocation8]  }
   0xc   : > { %p2701_p3 = pnand %p1969_p0, %p187_p2  ;;  %s225_s30 = sshll.u32 %s2625_s29, 4  ;;  %s2714_s30 = int_to_ptr.vmem [resolvable:$true] %s225_s30 }
   0xd   : > { %s2716_s9 = sshll.u32 %s2626_s8, 4  ;;  %s2374_s12 = scalar_lea.hbm %s3283_s1, 8192  ;;  %s213_s9 = int_to_ptr.vmem [resolvable:$true] %s2716_s9 }
   0xe   : > { %s3294_s28 = scalar_select %p2701_p3, 1, 0 }
   0xf   : > { %p2294_p5 = pneg %p2701_p3  ;;  %p2375_p7 = scmp.ne.s32.totalorder %s3283_s1, %s2374_s12 }
  0x10   : > { %p2381_p11 = scmp.lt.u32.totalorder %s2374_s12, %s3283_s1 }
  0x11   : > { %p2710_p6 = pnand %p2294_p5, %p3289_p1 }
  0x13   : > { %p2726_p8 = pneg %p2710_p6 }
  0x15   : > { %p2377_p9 = pnand %p2726_p8, %p2375_p7 }
  0x17   : > { %p2378_p10 = pneg %p2377_p9 }
  0x19   : > { %p2383_p12 = pnand %p2381_p11, %p2378_p10 }
  0x1b   : > { %2386 = shalt.err (!%p2383_p12)
}
  0x1c   : > { %s2387_s18 = scalar_lea.vmem %s2699_s26, 8192  ;;  %p2395_p5 = scmp.lt.s32.totalorder %s2699_s26, %s2699_s26 }
  0x1d   : > { %p2388_p13 = scmp.ne.s32.totalorder %s2699_s26, %s2387_s18  ;;  %p2396_p4 = scmp.lt.s32.totalorder %s2387_s18, %s2387_s18 }
  0x1f   : > { %p2390_p0 = pnand %p2388_p13, %p2726_p8  ;;  %p2397_p7 = por %p2396_p4, %p2395_p5 }
  0x21   : > { %p2391_p2 = pneg %p2390_p0 }
  0x23   : > { %p2398_p9 = pnand %p2397_p7, %p2391_p2 }
  0x25   : > { %2401 = shalt.err (!%p2398_p9)
}
  0x26   : > { %s2627_s19 = smov 256   ;;  %s2628_s20 = smov 16  }
  0x27   : > { %2297 = dma.hbm_to_vmem [thread:$0]  (!%p2710_p6), %s3283_s1, 8192, %s2699_s26, [#allocation7], %s2627_s19, %s2627_s19, %s2628_s20  }
  0x28   : > { %s2402_s11 = scalar_lea.hbm %s3285_s3, 4096 }
  0x29   : > { %p2403_p4 = scmp.ne.s32.totalorder %s3285_s3, %s2402_s11  ;;  %p2409_p12 = scmp.lt.u32.totalorder %s2402_s11, %s3285_s3 }
  0x2b   : > { %p2405_p10 = pnand %p2403_p4, %p2726_p8 }
  0x2d   : > { %p2406_p11 = pneg %p2405_p10 }
  0x2f   : > { %p2411_p13 = pnand %p2409_p12, %p2406_p11 }
  0x31   : > { %2414 = shalt.err (!%p2411_p13)
}
  0x32   : > { %s2415_s26 = scalar_lea.vmem %s2714_s30, 4096  ;;  %p2423_p7 = scmp.lt.s32.totalorder %s2714_s30, %s2714_s30 }
  0x33   : > { %p2416_p0 = scmp.ne.s32.totalorder %s2714_s30, %s2415_s26  ;;  %p2424_p9 = scmp.lt.s32.totalorder %s2415_s26, %s2415_s26 }
  0x35   : > { %p2418_p2 = pnand %p2416_p0, %p2726_p8  ;;  %p2425_p4 = por %p2424_p9, %p2423_p7 }
  0x37   : > { %p2419_p5 = pneg %p2418_p2 }
  0x39   : > { %p2426_p10 = pnand %p2425_p4, %p2419_p5 }
  0x3b   : > { %2429 = shalt.err (!%p2426_p10)
}
  0x3c   : > { %s3291_s17 = smov 128   ;;  %s2630_s18 = smov 8  }
  0x3d   : > { %2303 = dma.hbm_to_vmem [thread:$0]  (!%p2710_p6), %s3285_s3, 4096, %s2714_s30, [#allocation10], %s3291_s17, %s3291_s17, %s2630_s18  }
  0x3e   : > { %s2430_s11 = scalar_lea.hbm %s3284_s2, 8192 }
  0x3f   : > { %p2431_p11 = scmp.ne.s32.totalorder %s3284_s2, %s2430_s11  ;;  %p2437_p0 = scmp.lt.u32.totalorder %s2430_s11, %s3284_s2 }
  0x41   : > { %p2433_p12 = pnand %p2431_p11, %p2726_p8 }
  0x43   : > { %p2434_p13 = pneg %p2433_p12 }
  0x45   : > { %p2439_p2 = pnand %p2437_p0, %p2434_p13 }
  0x47   : > { %2442 = shalt.err (!%p2439_p2)
}
  0x48   : > { %s2443_s26 = scalar_lea.vmem %s213_s9, 8192  ;;  %p2451_p4 = scmp.lt.s32.totalorder %s213_s9, %s213_s9 }
  0x49   : > { %p2444_p5 = scmp.ne.s32.totalorder %s213_s9, %s2443_s26  ;;  %p2452_p10 = scmp.lt.s32.totalorder %s2443_s26, %s2443_s26 }
  0x4b   : > { %p2446_p7 = pnand %p2444_p5, %p2726_p8  ;;  %p2453_p1 = por %p2452_p10, %p2451_p4 }
  0x4d   : > { %p2447_p9 = pneg %p2446_p7 }
  0x4f   : > { %p2454_p3 = pnand %p2453_p1, %p2447_p9 }
  0x51   : > { %2457 = shalt.err (!%p2454_p3)
}
  0x52   : > { %2300 = dma.hbm_to_vmem [thread:$0]  (!%p2710_p6), %s3284_s2, 8192, %s213_s9, [#allocation7], %s2627_s19, %s2627_s19, %s2628_s20  }
  0x53   : > { %s2631_s29 = smov [#allocation11]   ;;  %s2632_s10 = smov [#allocation12]  }
  0x54   : > { %s238_s8 = sshll.u32 %s2631_s29, 4  ;;  %s251_s11 = sshll.u32 %s2632_s10, 4  ;;  %s239_s8 = int_to_ptr.vmem [resolvable:$true] %s238_s8  ;;  %s252_s11 = int_to_ptr.vmem [resolvable:$true] %s251_s11 }
  0x55   : > { %s2458_s14 = scalar_lea.hbm %s3286_s4, 4096 }
  0x56   : > { %p2459_p1 = scmp.ne.s32.totalorder %s3286_s4, %s2458_s14  ;;  %p2465_p12 = scmp.lt.u32.totalorder %s2458_s14, %s3286_s4 }
  0x58   : > { %p2461_p3 = pnand %p2459_p1, %p2726_p8 }
  0x5a   : > { %p2462_p11 = pneg %p2461_p3 }
  0x5c   : > { %p2467_p13 = pnand %p2465_p12, %p2462_p11 }
  0x5e   : > { %2470 = shalt.err (!%p2467_p13)
}
  0x5f   : > { %s2471_s9 = scalar_lea.vmem %s239_s8, 4096  ;;  %p2479_p7 = scmp.lt.s32.totalorder %s239_s8, %s239_s8 }
  0x60   : > { %p2472_p0 = scmp.ne.s32.totalorder %s239_s8, %s2471_s9  ;;  %p2480_p9 = scmp.lt.s32.totalorder %s2471_s9, %s2471_s9 }
  0x62   : > { %p2474_p2 = pnand %p2472_p0, %p2726_p8  ;;  %p2481_p4 = por %p2480_p9, %p2479_p7 }
  0x64   : > { %p2475_p5 = pneg %p2474_p2 }
  0x66   : > { %p2482_p10 = pnand %p2481_p4, %p2475_p5 }
  0x68   : > { %2485 = shalt.err (!%p2482_p10)
}
  0x69   : > { %s3297_s25 = smov 128   ;;  %s2486_s13 = scalar_lea.hbm %s3287_s5, 4096 }
  0x6a   : > { %2306 = dma.hbm_to_vmem [thread:$0]  (!%p2710_p6), %s3286_s4, 4096, %s239_s8, [#allocation10], %s3297_s25, %s3297_s25, %s2630_s18  }
  0x6b   : > { %p2487_p1 = scmp.ne.s32.totalorder %s3287_s5, %s2486_s13  ;;  %p2493_p12 = scmp.lt.u32.totalorder %s2486_s13, %s3287_s5 }
  0x6d   : > { %p2489_p3 = pnand %p2487_p1, %p2726_p8 }
  0x6f   : > { %p2490_p11 = pneg %p2489_p3 }
  0x71   : > { %p2495_p13 = pnand %p2493_p12, %p2490_p11 }
  0x73   : > { %2498 = shalt.err (!%p2495_p13)
}
  0x74   : > { %s2499_s9 = scalar_lea.vmem %s252_s11, 4096  ;;  %p2507_p7 = scmp.lt.s32.totalorder %s252_s11, %s252_s11 }
  0x75   : > { %p2500_p0 = scmp.ne.s32.totalorder %s252_s11, %s2499_s9  ;;  %p2508_p9 = scmp.lt.s32.totalorder %s2499_s9, %s2499_s9 }
  0x77   : > { %p2502_p2 = pnand %p2500_p0, %p2726_p8  ;;  %p2509_p4 = por %p2508_p9, %p2507_p7 }
  0x79   : > { %p2503_p5 = pneg %p2502_p2 }
  0x7b   : > { %p2510_p10 = pnand %p2509_p4, %p2503_p5 }
  0x7d   : > { %2513 = shalt.err (!%p2510_p10)
}
  0x7e   : > { %2309 = dma.hbm_to_vmem [thread:$0]  (!%p2710_p6), %s3287_s5, 4096, %s252_s11, [#allocation13], %s3297_s25, %s3297_s25, %s2630_s18  }
  0x7f   : > { %s1968_s7 = sadd.s32 4294967294, %s2622_s24   ;;  %s2842_s15 = sadd.s32 1, %s2622_s24  }
  0x80   : > { %s32_s29 = sadd.s32 1, %s2618_s23  ;;  %s29_s10 = ssub.s32 %s2622_s24, %s2842_s15 }
  0x81   : > { %p39_p8 = scmp.ne.s32.totalorder %s2618_s23, %s2614_s22  ;;  %p30_p1 = scmp.eq.s32.totalorder %s29_s10, 0 }
  0x82   : > { %p40_p3 = scmp.eq.s32.totalorder %s2622_s24, 0  ;;  %p45_p11 = scmp.ne.s32.totalorder %s2614_s22, %s2610_s21 }
  0x83   : > { %p174_p12 = scmp.eq.s32.totalorder %s2694_s27, 1  ;;  %p3298_p0 = scmp.eq.s32.totalorder %s2694_s27, 0 }
  0x84   : > { %s2854_s12 = scalar_select %p30_p1, %s2618_s23, %s32_s29  }
  0x85   : > { %p41_p13 = por %p40_p3, %p39_p8  ;;  %p2858_p2 = por %p3298_p0, %p45_p11 }
  0x86   : > { %p2862_p6 = por %p174_p12, %p39_p8  ;;  %p180_p5 = scmp.eq.s32.totalorder %s1968_s7, 1 }
  0x87   : > { %p2323_p7 = scmp.lt.s32.totalorder %s2622_s24, 2  ;;  %s265_s11 = sand.u32 1, %s2618_s23  }
  0x88   : > { %s3300_s18 = scalar_select %p2862_p6, 1, 0 }
  0x89   : > { %p2868_p9 = por %p180_p5, %p45_p11  ;;  %s1976_s14 = sshll.u32 %s265_s11, 8 }
  0x8a   : > { %s1995_s16 = sshll.u32 %s2622_s24, 12  ;;  %s269_s8 = scalar_lea.vmem [#allocation3], %s1976_s14 }
  0x8b   : > { %s3301_s25 = scalar_select %p2868_p9, 1, 0 }
  0x8c   : > { %s2876_s9 = scalar_lea.hbm %s3282_s0, %s1995_s16  ;;  %s277_s17 = sshll.u32 %s269_s8, 4  ;;  %s2882_s17 = int_to_ptr.vmem [resolvable:$true] %s277_s17 }
  0x8d   : > { %p2878_p4 = pnand %p2323_p7, %p41_p13  ;;  %s2884_s29 = scalar_lea.sflag [#allocation4], %s265_s11 }
  0x8e   : > { %s2514_s10 = scalar_lea.hbm %s2876_s9, 4096  ;;  %s2519_s26 = scalar_lea.hbm %s3282_s0, 8192 }
  0x8f   : > { %p2515_p10 = scmp.ne.s32.totalorder %s2876_s9, %s2514_s10  ;;  %p2516_p8 = pneg %p2878_p4 }
  0x90   : > { %p2520_p11 = scmp.lt.u32.totalorder %s2876_s9, %s3282_s0  ;;  %p2521_p12 = scmp.lt.u32.totalorder %s2519_s26, %s2514_s10 }
  0x91   : > { %p2517_p1 = pnand %p2516_p8, %p2515_p10  ;;  %p2523_p0 = scmp.lt.u32.totalorder %s2514_s10, %s2876_s9 }
  0x92   : > { %p2522_p13 = por %p2521_p12, %p2520_p11 }
  0x93   : > { %p2518_p3 = pneg %p2517_p1 }
  0x94   : > { %p2524_p5 = por %p2523_p0, %p2522_p13 }
  0x96   : > { %p2525_p7 = pnand %p2524_p5, %p2518_p3 }
  0x98   : > { %2528 = shalt.err (!%p2525_p7)
}
  0x99   : > { %s2529_s11 = scalar_lea.vmem %s2882_s17, 4096  ;;  %s2633_s14 = smov [#allocation3]  }
  0x9a   : > { %p2530_p10 = scmp.ne.s32.totalorder %s2882_s17, %s2529_s11  ;;  %s2534_s16 = sshll.u32 %s2633_s14, 4  ;;  %s2535_s16 = int_to_ptr.vmem [resolvable:$false] %s2534_s16 }
  0x9b   : > { %s2536_s30 = scalar_lea.vmem %s2535_s16, 8192  ;;  %p2537_p6 = scmp.lt.s32.totalorder %s2882_s17, %s2535_s16 }
  0x9c   : > { %p2532_p1 = pnand %p2530_p10, %p2516_p8  ;;  %p2538_p11 = scmp.lt.s32.totalorder %s2536_s30, %s2529_s11 }
  0x9e   : > { %p2533_p9 = pneg %p2532_p1  ;;  %p2539_p12 = por %p2538_p11, %p2537_p6 }
  0xa0   : > { %p2540_p13 = pnand %p2539_p12, %p2533_p9 }
  0xa2   : > { %2543 = shalt.err (!%p2540_p13)
}
  0xa3   : > { %2313 = dma.hbm_to_vmem [thread:$0]  (!%p2878_p4), %s2876_s9, 4096, %s2882_s17, %s2884_s29, %s2627_s19, %s2627_s19, %s2628_s20  }
  0xa4   : > { %p3303_p8 = scmp.ne.s32.totalorder %s3294_s28, 0 }
  0xa5   : > { %s2918_s10 = sand.u32 (!%p3303_p8), 1, %s2614_s22  }
  0xa6   : > { %289 = sbr.rel (%p3303_p8) target bundleno = 1399 (0x577), region = 44  ;;  %s1981_s26 = sshll.u32 (!%p3303_p8), %s2918_s10, 8 }
  0xa7   : > { %s292_s8 = scalar_lea.sflag (!%p3303_p8), [#allocation4], %s2918_s10  ;;  %s2924_s7 = scalar_lea.vmem (!%p3303_p8), [#allocation3], %s1981_s26 }
  0xad   : > { %2589 = dma.done.wait (%p2858_p2), %s292_s8, 4096  }
  0xae   : > { %2591 = vsyncadd (%p2858_p2), %s292_s8, 4294963200  ;;  %p3304_p6 = scmp.eq.s32.totalorder %s2694_s27, 0 }
  0xb0   : > { %2593 = dma.done.wait (%p3304_p6), [#allocation7], 16384   ;;  %p3305_p9 = pmov %p3304_p6 }
  0xb1   : > { %p3306_p4 = pmov %p3304_p6 }
  0xb2   : > { %2595 = vsyncadd (%p3305_p9), [#allocation7], 4294950912 }
  0xb3   : > { %2597 = dma.done.wait (%p3306_p4), [#allocation10], 8192   ;;  %p3307_p3 = pmov %p3306_p4 }
  0xb5   : > { %2599 = vsyncadd (%p3307_p3), [#allocation10], 4294959104  ;;  %p3308_p0 = pmov %p3307_p3 }
  0xb7   : > { %2601 = dma.done.wait (%p3308_p0), [#allocation13], 4096   ;;  %p3309_p5 = pmov %p3308_p0 }
  0xb8   : > { %v412_v0 = vld [vmem:[#allocation6 + $0x8] sm:$0xff]  ;;  %v414_v1 = vld [vmem:[#allocation6 + $0x18] sm:$0xff]  ;;  %v411_v2 = vld [vmem:[#allocation6] sm:$0xff]  ;;  %s3197_s28 = scalar_lea.vmem [#allocation14], %s1981_s26  ;;  %s1997_s19 = sshll.u32 %s2694_s27, 12 }
  0xb9   : > { %2603 = vsyncadd (%p3309_p5), [#allocation13], 4294963200  ;;  %v1998_v3 = vpack.c.bf16 %v414_v1, %v412_v0  ;;  %v413_v4 = vld [vmem:[#allocation6 + $0x10] sm:$0xff]  ;;  %v416_v5 = vld [vmem:[#allocation6 + $0x28] sm:$0xff]  ;;  %s1847_s20 = sshll.u32 %s3197_s28, 4  ;;  %s3234_s17 = scalar_lea.hbm %s3288_s6, %s1997_s19  ;;  %s3236_s20 = int_to_ptr.vmem [resolvable:$true] %s1847_s20 }
  0xba   : > { %v418_v6 = vld [vmem:[#allocation6 + $0x38] sm:$0xff]  ;;  %v2000_v7 = vpack.c.bf16 %v413_v4, %v411_v2  ;;  %v415_v9 = vld [vmem:[#allocation6 + $0x20] sm:$0xff]  ;;  %v417_v10 = vld [vmem:[#allocation6 + $0x30] sm:$0xff]  ;;  %s1833_s27 = scalar_lea.sflag [#allocation5], %s2918_s10  ;;  %s2544_s29 = scalar_lea.vmem %s3236_s20, 4096 }
  0xbb   : > { %v2002_v8 = vpack.c.bf16 %v418_v6, %v416_v5  ;;  %v420_v11 = vld [vmem:[#allocation6 + $0x48] sm:$0xff]  ;;  %1999 = vmatprep.subr.bf16.mxu0 %v1998_v3  ;;  %v422_v12 = vld [vmem:[#allocation6 + $0x58] sm:$0xff]  ;;  %v2004_v13 = vpack.c.bf16 %v417_v10, %v415_v9  ;;  %v419_v15 = vld [vmem:[#allocation6 + $0x40] sm:$0xff]  ;;  %p2545_p2 = scmp.ne.s32.totalorder %s3236_s20, %s2544_s29  ;;  %p3310_p7 = scmp.ne.s32.totalorder %s3300_s18, 0 }
  0xbc   : > { %2001 = vmatpush1.bf16.msra.mxu0 %v2000_v7  ;;  %v2006_v14 = vpack.c.bf16 %v422_v12, %v420_v11  ;;  %v421_v16 = vld [vmem:[#allocation6 + $0x50] sm:$0xff]  ;;  %v424_v17 = vld [vmem:[#allocation6 + $0x68] sm:$0xff]  ;;  %v426_v18 = vld [vmem:[#allocation6 + $0x78] sm:$0xff]  ;;  %s2635_s11 = smov [#allocation14]  }
  0xbd   : > { %2003 = vmatprep.subr.bf16.mxu0 %v2002_v8  ;;  %v2008_v19 = vpack.c.bf16 %v421_v16, %v419_v15  ;;  %v2010_v20 = vpack.c.bf16 %v426_v18, %v424_v17  ;;  %v423_v21 = vld [vmem:[#allocation6 + $0x60] sm:$0xff]  ;;  %v425_v22 = vld [vmem:[#allocation6 + $0x70] sm:$0xff]  ;;  %v428_v23 = vld [vmem:[#allocation6 + $0x88] sm:$0xff]  ;;  %p2546_p10 = pnand %p2545_p2, %p3310_p7  ;;  %s2548_s14 = sshll.u32 %s2635_s11, 4  ;;  %s2549_s14 = int_to_ptr.vmem [resolvable:$false] %s2548_s14 }
  0xbe   : > { %v430_v24 = vld [vmem:[#allocation6 + $0x98] sm:$0xff]  ;;  %v2012_v25 = vpack.c.bf16 %v425_v22, %v423_v21  ;;  %v427_v27 = vld [vmem:[#allocation6 + $0x80] sm:$0xff]  ;;  %v429_v28 = vld [vmem:[#allocation6 + $0x90] sm:$0xff]  ;;  %s2550_s16 = scalar_lea.vmem %s2549_s14, 8192  ;;  %p2551_p11 = scmp.lt.s32.totalorder %s3236_s20, %s2549_s14 }
  0xbf   : > { %v2014_v26 = vpack.c.bf16 %v430_v24, %v428_v23  ;;  %v432_v29 = vld [vmem:[#allocation6 + $0xa8] sm:$0xff]  ;;  %v434_v30 = vld [vmem:[#allocation6 + $0xb8] sm:$0xff]  ;;  %v2016_v31 = vpack.c.bf16 %v429_v28, %v427_v27  ;;  %v431_v33 = vld [vmem:[#allocation6 + $0xa0] sm:$0xff]  ;;  %p2547_p1 = pneg %p2546_p10  ;;  %p2552_p12 = scmp.lt.s32.totalorder %s2550_s16, %s2544_s29 }
  0xc0   : > { %2005 = vmatpush1.bf16.msra.mxu0 %v2004_v13  ;;  %v2018_v32 = vpack.c.bf16 %v434_v30, %v432_v29  ;;  %v433_v34 = vld [vmem:[#allocation6 + $0xb0] sm:$0xff]  ;;  %v436_v35 = vld [vmem:[#allocation6 + $0xc8] sm:$0xff]  ;;  %v438_v36 = vld [vmem:[#allocation6 + $0xd8] sm:$0xff] }
  0xc1   : > { %2007 = vmatprep.subr.bf16.mxu0 %v2006_v14  ;;  %v2020_v37 = vpack.c.bf16 %v433_v34, %v431_v33  ;;  %v2022_v38 = vpack.c.bf16 %v438_v36, %v436_v35  ;;  %v435_v39 = vld [vmem:[#allocation6 + $0xc0] sm:$0xff]  ;;  %v437_v40 = vld [vmem:[#allocation6 + $0xd0] sm:$0xff]  ;;  %v380_v41 = vld [vmem:[%s2924_s7 + $0x8] sm:$0xff]  ;;  %p2553_p13 = por %p2552_p12, %p2551_p11 }
  0xc2   : > { %v440_v42 = vld [vmem:[#allocation6 + $0xe8] sm:$0xff]  ;;  %v442_v43 = vld [vmem:[#allocation6 + $0xf8] sm:$0xff]  ;;  %539 = vmatprep.mubr.f32.mxu0 %v380_v41  ;;  %v2024_v44 = vpack.c.bf16 %v437_v40, %v435_v39  ;;  %v439_v46 = vld [vmem:[#allocation6 + $0xe0] sm:$0xff] }
  0xc3   : > { %v2026_v45 = vpack.c.bf16 %v442_v43, %v440_v42  ;;  %v441_v47 = vld [vmem:[#allocation6 + $0xf0] sm:$0xff]  ;;  %v444_v48 = vld [vmem:[#allocation6 + $0x108] sm:$0xff]  ;;  %v446_v49 = vld [vmem:[#allocation6 + $0x118] sm:$0xff]  ;;  %p2554_p8 = pnand %p2553_p13, %p2547_p1 }
  0xc4   : > { %2009 = vmatpush1.bf16.msra.mxu0 %v2008_v19  ;;  %v2028_v50 = vpack.c.bf16 %v441_v47, %v439_v46  ;;  %v2030_v51 = vpack.c.bf16 %v446_v49, %v444_v48  ;;  %v443_v52 = vld [vmem:[#allocation6 + $0x100] sm:$0xff]  ;;  %v445_v53 = vld [vmem:[#allocation6 + $0x110] sm:$0xff]  ;;  %v448_v54 = vld [vmem:[#allocation6 + $0x128] sm:$0xff] }
  0xc5   : > { %2011 = vmatprep.subr.bf16.mxu0 %v2010_v20  ;;  %v450_v55 = vld [vmem:[#allocation6 + $0x138] sm:$0xff]  ;;  %v2032_v56 = vpack.c.bf16 %v445_v53, %v443_v52  ;;  %v447_v58 = vld [vmem:[#allocation6 + $0x120] sm:$0xff]  ;;  %v449_v59 = vld [vmem:[#allocation6 + $0x130] sm:$0xff] }
  0xc6   : > { %v2034_v57 = vpack.c.bf16 %v450_v55, %v448_v54  ;;  %v452_v60 = vld [vmem:[#allocation6 + $0x148] sm:$0xff]  ;;  %v454_v61 = vld [vmem:[#allocation6 + $0x158] sm:$0xff]  ;;  %v2036_v62 = vpack.c.bf16 %v449_v59, %v447_v58  ;;  %v451_v0 = vld [vmem:[#allocation6 + $0x140] sm:$0xff] }
  0xc7   : > { %v2038_v63 = vpack.c.bf16 %v454_v61, %v452_v60  ;;  %v453_v1 = vld [vmem:[#allocation6 + $0x150] sm:$0xff]  ;;  %v456_v2 = vld [vmem:[#allocation6 + $0x168] sm:$0xff]  ;;  %v458_v3 = vld [vmem:[#allocation6 + $0x178] sm:$0xff] }
  0xc8   : > { %2013 = vmatpush1.bf16.msra.mxu0 %v2012_v25  ;;  %v2040_v4 = vpack.c.bf16 %v453_v1, %v451_v0  ;;  %v2042_v5 = vpack.c.bf16 %v458_v3, %v456_v2  ;;  %v455_v6 = vld [vmem:[#allocation6 + $0x160] sm:$0xff]  ;;  %v457_v7 = vld [vmem:[#allocation6 + $0x170] sm:$0xff]  ;;  %v460_v8 = vld [vmem:[#allocation6 + $0x188] sm:$0xff]  ;;  %v2634_v0 = vmov 0.0  }
  0xc9   : > { %2015 = vmatprep.subr.bf16.mxu0 %v2014_v26  ;;  %v462_v9 = vld [vmem:[#allocation6 + $0x198] sm:$0xff]  ;;  %v2044_v10 = vpack.c.bf16 %v457_v7, %v455_v6  ;;  %v459_v12 = vld [vmem:[#allocation6 + $0x180] sm:$0xff]  ;;  %v461_v13 = vld [vmem:[#allocation6 + $0x190] sm:$0xff]  ;;  %783 = vmatprep.mubr.f32.mxu1 %v2634_v0 }
  0xca   : > { %v2046_v11 = vpack.c.bf16 %v462_v9, %v460_v8  ;;  %v464_v14 = vld [vmem:[#allocation6 + $0x1a8] sm:$0xff]  ;;  %v466_v15 = vld [vmem:[#allocation6 + $0x1b8] sm:$0xff]  ;;  %v2048_v16 = vpack.c.bf16 %v461_v13, %v459_v12  ;;  %v463_v18 = vld [vmem:[#allocation6 + $0x1a0] sm:$0xff] }
  0xcb   : > { %v2050_v17 = vpack.c.bf16 %v466_v15, %v464_v14  ;;  %v465_v19 = vld [vmem:[#allocation6 + $0x1b0] sm:$0xff]  ;;  %v468_v20 = vld [vmem:[#allocation6 + $0x1c8] sm:$0xff]  ;;  %v470_v21 = vld [vmem:[#allocation6 + $0x1d8] sm:$0xff] }
  0xcc   : > { %2017 = vmatpush1.bf16.msra.mxu0 %v2016_v31  ;;  %v2052_v22 = vpack.c.bf16 %v465_v19, %v463_v18  ;;  %v2054_v23 = vpack.c.bf16 %v470_v21, %v468_v20  ;;  %v467_v24 = vld [vmem:[#allocation6 + $0x1c0] sm:$0xff]  ;;  %v469_v25 = vld [vmem:[#allocation6 + $0x1d0] sm:$0xff]  ;;  %v472_v26 = vld [vmem:[#allocation6 + $0x1e8] sm:$0xff] }
  0xcd   : > { %2019 = vmatprep.subr.bf16.mxu0 %v2018_v32  ;;  %v474_v27 = vld [vmem:[#allocation6 + $0x1f8] sm:$0xff]  ;;  %v2056_v28 = vpack.c.bf16 %v469_v25, %v467_v24  ;;  %v471_v30 = vld [vmem:[#allocation6 + $0x1e0] sm:$0xff]  ;;  %v473_v31 = vld [vmem:[#allocation6 + $0x1f0] sm:$0xff] }
  0xce   : > { %v2058_v29 = vpack.c.bf16 %v474_v27, %v472_v26  ;;  %v2060_v32 = vpack.c.bf16 %v473_v31, %v471_v30  ;;  %v379_v33 = vld [vmem:[%s2924_s7] sm:$0xff]  ;;  %v382_v34 = vld [vmem:[%s2924_s7 + $0x18] sm:$0xff]  ;;  %v381_v35 = vld [vmem:[%s2924_s7 + $0x10] sm:$0xff] }
  0xcf   : > { %v384_v36 = vld [vmem:[%s2924_s7 + $0x28] sm:$0xff]  ;;  %v385_v39 = vld [vmem:[%s2924_s7 + $0x30] sm:$0xff]  ;;  %v387_v41 = vld [vmem:[%s2924_s7 + $0x40] sm:$0xff] }
  0xd0   : > { %2021 = vmatpush1.bf16.msra.mxu0 %v2020_v37  ;;  %v383_v37 = vld [vmem:[%s2924_s7 + $0x20] sm:$0xff]  ;;  %v388_v40 = vld [vmem:[%s2924_s7 + $0x48] sm:$0xff]  ;;  %v390_v42 = vld [vmem:[%s2924_s7 + $0x58] sm:$0xff] }
  0xd1   : > { %2023 = vmatprep.subr.bf16.mxu0 %v2022_v38  ;;  %v386_v38 = vld [vmem:[%s2924_s7 + $0x38] sm:$0xff]  ;;  %v389_v43 = vld [vmem:[%s2924_s7 + $0x50] sm:$0xff]  ;;  %v396_v48 = vld [vmem:[%s2924_s7 + $0x88] sm:$0xff] }
  0xd2   : > { %v394_v46 = vld [vmem:[%s2924_s7 + $0x78] sm:$0xff]  ;;  %v393_v47 = vld [vmem:[%s2924_s7 + $0x70] sm:$0xff]  ;;  %v395_v49 = vld [vmem:[%s2924_s7 + $0x80] sm:$0xff] }
  0xd3   : > { %v400_v52 = vld [vmem:[%s2924_s7 + $0xa8] sm:$0xff]  ;;  %v399_v53 = vld [vmem:[%s2924_s7 + $0xa0] sm:$0xff]  ;;  %v402_v54 = vld [vmem:[%s2924_s7 + $0xb8] sm:$0xff] }
  0xd4   : > { %2025 = vmatpush1.bf16.msra.mxu0 %v2024_v44  ;;  %v392_v44 = vld [vmem:[%s2924_s7 + $0x68] sm:$0xff]  ;;  %v401_v55 = vld [vmem:[%s2924_s7 + $0xb0] sm:$0xff]  ;;  %v406_v58 = vld [vmem:[%s2924_s7 + $0xd8] sm:$0xff] }
  0xd5   : > { %2027 = vmatprep.subr.bf16.mxu0 %v2026_v45  ;;  %v391_v45 = vld [vmem:[%s2924_s7 + $0x60] sm:$0xff]  ;;  %v405_v59 = vld [vmem:[%s2924_s7 + $0xd0] sm:$0xff]  ;;  %v408_v60 = vld [vmem:[%s2924_s7 + $0xe8] sm:$0xff] }
  0xd6   : > { %v407_v61 = vld [vmem:[%s2924_s7 + $0xe0] sm:$0xff] }
  0xd8   : > { %2029 = vmatpush1.bf16.msra.mxu0 %v2028_v50  ;;  %v398_v50 = vld [vmem:[%s2924_s7 + $0x98] sm:$0xff] }
  0xd9   : > { %2031 = vmatprep.subr.bf16.mxu0 %v2030_v51  ;;  %v397_v51 = vld [vmem:[%s2924_s7 + $0x90] sm:$0xff] }
  0xdc   : > { %2033 = vmatpush1.bf16.msra.mxu0 %v2032_v56  ;;  %v404_v56 = vld [vmem:[%s2924_s7 + $0xc8] sm:$0xff] }
  0xdd   : > { %2035 = vmatprep.subr.bf16.mxu0 %v2034_v57  ;;  %v403_v57 = vld [vmem:[%s2924_s7 + $0xc0] sm:$0xff] }
  0xe0   : > { %2037 = vmatpush1.bf16.msra.mxu0 %v2036_v62  ;;  %v410_v62 = vld [vmem:[%s2924_s7 + $0xf8] sm:$0xff] }
  0xe1   : > { %2039 = vmatprep.subr.bf16.mxu0 %v2038_v63  ;;  %v409_v63 = vld [vmem:[%s2924_s7 + $0xf0] sm:$0xff] }
  0xe4   : > { %2041 = vmatpush1.bf16.msra.mxu0 %v2040_v4 }
  0xe5   : > { %2043 = vmatprep.subr.bf16.mxu0 %v2042_v5 }
  0xe8   : > { %2045 = vmatpush1.bf16.msra.mxu0 %v2044_v10 }
  0xe9   : > { %2047 = vmatprep.subr.bf16.mxu0 %v2046_v11 }
  0xec   : > { %2049 = vmatpush1.bf16.msra.mxu0 %v2048_v16 }
  0xed   : > { %2051 = vmatprep.subr.bf16.mxu0 %v2050_v17 }
  0xf0   : > { %2053 = vmatpush1.bf16.msra.mxu0 %v2052_v22 }
  0xf1   : > { %2055 = vmatprep.subr.bf16.mxu0 %v2054_v23 }
  0xf4   : > { %2057 = vmatpush1.bf16.msra.mxu0 %v2056_v28 }
  0xf5   : > { %2059 = vmatprep.subr.bf16.mxu0 %v2058_v29 }
  0xf8   : > { %2061 = vmatpush1.bf16.msra.mxu0 %v2060_v32 }
  0xfb   : > { %540 = vmatmul.mubr.f32.vlgmr.msra.gmra.mrb[0].mxu0 %v379_v33 }
  0xfc   : > { %545 = vmatprep.mubr.f32.mxu0 %v382_v34 }
  0xff   : > { %546 = vmatmul.mubr.f32.gmra.mrb[2].mxu0 %v381_v35 }
 0x100   : > { %551 = vmatprep.mubr.f32.mxu0 %v384_v36 }
 0x103   : > { %552 = vmatmul.mubr.f32.gmra.mrb[4].mxu0 %v383_v37 }
 0x104   : > { %557 = vmatprep.mubr.f32.mxu0 %v386_v38 }
 0x107   : > { %558 = vmatmul.mubr.f32.gmra.mrb[6].mxu0 %v385_v39 }
 0x108   : > { %563 = vmatprep.mubr.f32.mxu0 %v388_v40 }
 0x10b   : > { %564 = vmatmul.mubr.f32.gmra.mrb[8].mxu0 %v387_v41 }
 0x10c   : > { %569 = vmatprep.mubr.f32.mxu0 %v390_v42 }
 0x10f   : > { %570 = vmatmul.mubr.f32.gmra.mrb[10].mxu0 %v389_v43 }
 0x110   : > { %575 = vmatprep.mubr.f32.mxu0 %v392_v44 }
 0x113   : > { %576 = vmatmul.mubr.f32.gmra.mrb[12].mxu0 %v391_v45 }
 0x114   : > { %581 = vmatprep.mubr.f32.mxu0 %v394_v46 }
 0x117   : > { %582 = vmatmul.mubr.f32.gmra.mrb[14].mxu0 %v393_v47 }
 0x118   : > { %587 = vmatprep.mubr.f32.mxu0 %v396_v48 }
 0x11b   : > { %588 = vmatmul.mubr.f32.gmra.mrb[16].mxu0 %v395_v49  ;;  %v703_v49 = vld [vmem:[#allocation9] sm:$0xff] }
 0x11c   : > { %593 = vmatprep.mubr.f32.mxu0 %v398_v50  ;;  %v704_v50 = vld [vmem:[#allocation9 + $0x8] sm:$0xff] }
 0x11f   : > { %594 = vmatmul.mubr.f32.gmra.mrb[18].mxu0 %v397_v51  ;;  %v705_v51 = vld [vmem:[#allocation9 + $0x10] sm:$0xff] }
 0x120   : > { %599 = vmatprep.mubr.f32.mxu0 %v400_v52  ;;  %v706_v52 = vld [vmem:[#allocation9 + $0x18] sm:$0xff] }
 0x123   : > { %600 = vmatmul.mubr.f32.gmra.mrb[20].mxu0 %v399_v53  ;;  %v707_v53 = vld [vmem:[#allocation9 + $0x20] sm:$0xff] }
 0x124   : > { %605 = vmatprep.mubr.f32.mxu0 %v402_v54  ;;  %v708_v54 = vld [vmem:[#allocation9 + $0x28] sm:$0xff] }
 0x127   : > { %606 = vmatmul.mubr.f32.gmra.mrb[22].mxu0 %v401_v55  ;;  %v709_v55 = vld [vmem:[#allocation9 + $0x30] sm:$0xff] }
 0x128   : > { %611 = vmatprep.mubr.f32.mxu0 %v404_v56  ;;  %v710_v56 = vld [vmem:[#allocation9 + $0x38] sm:$0xff] }
 0x12b   : > { %612 = vmatmul.mubr.f32.gmra.mrb[24].mxu0 %v403_v57  ;;  %v711_v57 = vld [vmem:[#allocation9 + $0x40] sm:$0xff] }
 0x12c   : > { %617 = vmatprep.mubr.f32.mxu0 %v406_v58  ;;  %v712_v58 = vld [vmem:[#allocation9 + $0x48] sm:$0xff] }
 0x12f   : > { %618 = vmatmul.mubr.f32.gmra.mrb[26].mxu0 %v405_v59  ;;  %v713_v59 = vld [vmem:[#allocation9 + $0x50] sm:$0xff] }
 0x130   : > { %623 = vmatprep.mubr.f32.mxu0 %v408_v60  ;;  %v714_v60 = vld [vmem:[#allocation9 + $0x58] sm:$0xff] }
 0x133   : > { %624 = vmatmul.mubr.f32.gmra.mrb[28].mxu0 %v407_v61  ;;  %v715_v61 = vld [vmem:[#allocation9 + $0x60] sm:$0xff] }
 0x134   : > { %629 = vmatprep.mubr.f32.mxu0 %v410_v62  ;;  %v716_v62 = vld [vmem:[#allocation9 + $0x68] sm:$0xff] }
 0x137   : > { %630 = vmatmul.mubr.f32.gmra.mrb[30].mxu0 %v409_v63  ;;  %v717_v63 = vld [vmem:[#allocation9 + $0x70] sm:$0xff] }
 0x1ce   : > { %v541_v1 = vpop.f32.mrb[0].mxu0 }
 0x1cf   : > { %v543_v2 = vpop.f32.mrb[1].mxu0 }
 0x1d2   : > { %v547_v3 = vpop.f32.mrb[2].mxu0 }
 0x1d3   : > { %v2975_v4 = vpack.c.bf16 %v547_v3, %v541_v1  ;;  %v549_v5 = vpop.f32.mrb[3].mxu0  ;;  %v718_v1 = vld [vmem:[#allocation9 + $0x78] sm:$0xff]  ;;  %v882_v3 = vld [vmem:[#allocation9 + $0x88] sm:$0xff] }
 0x1d4   : > { %v2062_v6 = vpack.c.bf16 %v549_v5, %v543_v2  ;;  %v881_v2 = vld [vmem:[#allocation9 + $0x80] sm:$0xff]  ;;  %v884_v5 = vld [vmem:[#allocation9 + $0x98] sm:$0xff] }
 0x1d6   : > { %v553_v7 = vpop.f32.mrb[4].mxu0  ;;  %2063 = vmatprep.subr.bf16.mxu1 %v2062_v6 }
 0x1d7   : > { %v555_v8 = vpop.f32.mrb[5].mxu0  ;;  %2065 = vmatpush1.bf16.msra.mxu1 %v2975_v4 }
 0x1da   : > { %v559_v9 = vpop.f32.mrb[6].mxu0 }
 0x1db   : > { %v2068_v10 = vpack.c.bf16 %v559_v9, %v553_v7  ;;  %v561_v11 = vpop.f32.mrb[7].mxu0  ;;  %v886_v7 = vld [vmem:[#allocation9 + $0xa8] sm:$0xff]  ;;  %v888_v9 = vld [vmem:[#allocation9 + $0xb8] sm:$0xff] }
 0x1dc   : > { %v2066_v12 = vpack.c.bf16 %v561_v11, %v555_v8  ;;  %v887_v8 = vld [vmem:[#allocation9 + $0xb0] sm:$0xff]  ;;  %v1189_v11 = vld [vmem:[#allocation8 + $0x18] sm:$0xff] }
 0x1de   : > { %v565_v13 = vpop.f32.mrb[8].mxu0  ;;  %2067 = vmatprep.subr.bf16.mxu1 %v2066_v12 }
 0x1df   : > { %v567_v14 = vpop.f32.mrb[9].mxu0  ;;  %2069 = vmatpush1.bf16.msra.mxu1 %v2068_v10 }
 0x1e2   : > { %v571_v15 = vpop.f32.mrb[10].mxu0 }
 0x1e3   : > { %v2072_v16 = vpack.c.bf16 %v571_v15, %v565_v13  ;;  %v573_v17 = vpop.f32.mrb[11].mxu0  ;;  %v1186_v13 = vld [vmem:[#allocation8] sm:$0xff] }
 0x1e4   : > { %v2070_v18 = vpack.c.bf16 %v573_v17, %v567_v14  ;;  %v1188_v14 = vld [vmem:[#allocation8 + $0x10] sm:$0xff]  ;;  %v1191_v17 = vld [vmem:[#allocation8 + $0x28] sm:$0xff] }
 0x1e5   : > { %v2128_v15 = vpack.c.bf16 %v1188_v14, %v1186_v13  ;;  %v1224_v13 = vld [vmem:[#allocation8 + $0x130] sm:$0xff] }
 0x1e6   : > { %v577_v19 = vpop.f32.mrb[12].mxu0  ;;  %2071 = vmatprep.subr.bf16.mxu1 %v2070_v18 }
 0x1e7   : > { %v579_v20 = vpop.f32.mrb[13].mxu0  ;;  %2073 = vmatpush1.bf16.msra.mxu1 %v2072_v16 }
 0x1ea   : > { %v583_v21 = vpop.f32.mrb[14].mxu0 }
 0x1eb   : > { %v2076_v22 = vpack.c.bf16 %v583_v21, %v577_v19  ;;  %v585_v23 = vpop.f32.mrb[15].mxu0  ;;  %v1192_v21 = vld [vmem:[#allocation8 + $0x30] sm:$0xff] }
 0x1ec   : > { %v2074_v24 = vpack.c.bf16 %v585_v23, %v579_v20  ;;  %v1190_v20 = vld [vmem:[#allocation8 + $0x20] sm:$0xff]  ;;  %v890_v23 = vld [vmem:[#allocation9 + $0xc8] sm:$0xff] }
 0x1ee   : > { %v589_v25 = vpop.f32.mrb[16].mxu0  ;;  %2075 = vmatprep.subr.bf16.mxu1 %v2074_v24 }
 0x1ef   : > { %v591_v26 = vpop.f32.mrb[17].mxu0  ;;  %2077 = vmatpush1.bf16.msra.mxu1 %v2076_v22 }
 0x1f2   : > { %v595_v27 = vpop.f32.mrb[18].mxu0 }
 0x1f3   : > { %v2080_v28 = vpack.c.bf16 %v595_v27, %v589_v25  ;;  %v597_v29 = vpop.f32.mrb[19].mxu0  ;;  %v1197_v25 = vld [vmem:[#allocation8 + $0x58] sm:$0xff]  ;;  %v1194_v27 = vld [vmem:[#allocation8 + $0x40] sm:$0xff] }
 0x1f4   : > { %v2078_v30 = vpack.c.bf16 %v597_v29, %v591_v26 }
 0x1f6   : > { %v601_v31 = vpop.f32.mrb[20].mxu0  ;;  %2079 = vmatprep.subr.bf16.mxu1 %v2078_v30 }
 0x1f7   : > { %v603_v32 = vpop.f32.mrb[21].mxu0  ;;  %2081 = vmatpush1.bf16.msra.mxu1 %v2080_v28 }
 0x1fa   : > { %v607_v33 = vpop.f32.mrb[22].mxu0 }
 0x1fb   : > { %v2084_v34 = vpack.c.bf16 %v607_v33, %v601_v31  ;;  %v609_v35 = vpop.f32.mrb[23].mxu0  ;;  %v1199_v31 = vld [vmem:[#allocation8 + $0x68] sm:$0xff] }
 0x1fc   : > { %v2082_v36 = vpack.c.bf16 %v609_v35, %v603_v32  ;;  %v1201_v32 = vld [vmem:[#allocation8 + $0x78] sm:$0xff]  ;;  %v1200_v35 = vld [vmem:[#allocation8 + $0x70] sm:$0xff] }
 0x1fd   : > { %v2138_v33 = vpack.c.bf16 %v1201_v32, %v1199_v31  ;;  %v1236_v31 = vld [vmem:[#allocation8 + $0x190] sm:$0xff] }
 0x1fe   : > { %v613_v37 = vpop.f32.mrb[24].mxu0  ;;  %2083 = vmatprep.subr.bf16.mxu1 %v2082_v36 }
 0x1ff   : > { %v615_v38 = vpop.f32.mrb[25].mxu0  ;;  %2085 = vmatpush1.bf16.msra.mxu1 %v2084_v34 }
 0x202   : > { %v619_v39 = vpop.f32.mrb[26].mxu0 }
 0x203   : > { %v2088_v40 = vpack.c.bf16 %v619_v39, %v613_v37  ;;  %v621_v41 = vpop.f32.mrb[27].mxu0  ;;  %v892_v37 = vld [vmem:[#allocation9 + $0xd8] sm:$0xff] }
 0x204   : > { %v2086_v42 = vpack.c.bf16 %v621_v41, %v615_v38  ;;  %v1203_v38 = vld [vmem:[#allocation8 + $0x88] sm:$0xff]  ;;  %v1205_v39 = vld [vmem:[#allocation8 + $0x98] sm:$0xff]  ;;  %v1202_v41 = vld [vmem:[#allocation8 + $0x80] sm:$0xff] }
 0x206   : > { %v625_v43 = vpop.f32.mrb[28].mxu0  ;;  %2087 = vmatprep.subr.bf16.mxu1 %v2086_v42 }
 0x207   : > { %v627_v44 = vpop.f32.mrb[29].mxu0  ;;  %2089 = vmatpush1.bf16.msra.mxu1 %v2088_v40 }
 0x20a   : > { %v631_v45 = vpop.f32.mrb[30].mxu0 }
 0x20b   : > { %v2092_v46 = vpack.c.bf16 %v631_v45, %v625_v43  ;;  %v633_v47 = vpop.f32.mrb[31].mxu0  ;;  %v1207_v45 = vld [vmem:[#allocation8 + $0xa8] sm:$0xff] }
 0x20c   : > { %v2090_v48 = vpack.c.bf16 %v633_v47, %v627_v44  ;;  %v893_v44 = vld [vmem:[#allocation9 + $0xe0] sm:$0xff] }
 0x20e   : > { %2091 = vmatprep.subr.bf16.mxu1 %v2090_v48 }
 0x20f   : > { %2093 = vmatpush1.bf16.msra.mxu1 %v2092_v46 }
 0x210   : > { %2095 = vmatprep.subr.bf16.mxu1 %v2062_v6  ;;  %v885_v6 = vld [vmem:[#allocation9 + $0xa0] sm:$0xff] }
 0x212   : > { %784 = vmatmul.mubr.f32.vlgmr.msra.gmra.mrb[0].mxu1 %v703_v49  ;;  %v1208_v49 = vld [vmem:[#allocation8 + $0xb0] sm:$0xff] }
 0x213   : > { %2097 = vmatpush1.bf16.msra.mxu1 %v2975_v4  ;;  %789 = vmatprep.mubr.f32.mxu1 %v2634_v0  ;;  %v883_v4 = vld [vmem:[#allocation9 + $0x90] sm:$0xff] }
 0x214   : > { %2099 = vmatprep.subr.bf16.mxu1 %v2066_v12 }
 0x216   : > { %790 = vmatmul.mubr.f32.gmra.mrb[2].mxu1 %v704_v50 }
 0x217   : > { %2101 = vmatpush1.bf16.msra.mxu1 %v2068_v10  ;;  %795 = vmatprep.mubr.f32.mxu1 %v2634_v0  ;;  %v1187_v10 = vld [vmem:[#allocation8 + $0x8] sm:$0xff] }
 0x218   : > { %2103 = vmatprep.subr.bf16.mxu1 %v2070_v18  ;;  %v2126_v12 = vpack.c.bf16 %v1189_v11, %v1187_v10  ;;  %v1193_v18 = vld [vmem:[#allocation8 + $0x38] sm:$0xff] }
 0x219   : > { %v2130_v19 = vpack.c.bf16 %v1193_v18, %v1191_v17  ;;  %v1225_v10 = vld [vmem:[#allocation8 + $0x138] sm:$0xff]  ;;  %v1226_v18 = vld [vmem:[#allocation8 + $0x140] sm:$0xff] }
 0x21a   : > { %796 = vmatmul.mubr.f32.gmra.mrb[4].mxu1 %v705_v51  ;;  %2127 = vmatprep.subr.bf16.mxu0 %v2126_v12  ;;  %v894_v51 = vld [vmem:[#allocation9 + $0xe8] sm:$0xff]  ;;  %v1222_v12 = vld [vmem:[#allocation8 + $0x120] sm:$0xff] }
 0x21b   : > { %2105 = vmatpush1.bf16.msra.mxu1 %v2072_v16  ;;  %801 = vmatprep.mubr.f32.mxu1 %v2634_v0  ;;  %v889_v16 = vld [vmem:[#allocation9 + $0xc0] sm:$0xff]  ;;  %v2164_v14 = vpack.c.bf16 %v1224_v13, %v1222_v12 }
 0x21c   : > { %2107 = vmatprep.subr.bf16.mxu1 %v2074_v24  ;;  %2129 = vmatpush1.bf16.msra.mxu0 %v2128_v15  ;;  %v1195_v24 = vld [vmem:[#allocation8 + $0x48] sm:$0xff] }
 0x21d   : > { %2131 = vmatprep.subr.bf16.mxu0 %v2130_v19  ;;  %v2134_v26 = vpack.c.bf16 %v1197_v25, %v1195_v24  ;;  %v1227_v15 = vld [vmem:[#allocation8 + $0x148] sm:$0xff]  ;;  %v1228_v19 = vld [vmem:[#allocation8 + $0x150] sm:$0xff]  ;;  %v1230_v24 = vld [vmem:[#allocation8 + $0x160] sm:$0xff] }
 0x21e   : > { %802 = vmatmul.mubr.f32.gmra.mrb[6].mxu1 %v706_v52  ;;  %v1211_v52 = vld [vmem:[#allocation8 + $0xc8] sm:$0xff]  ;;  %v1232_v25 = vld [vmem:[#allocation8 + $0x170] sm:$0xff] }
 0x21f   : > { %2109 = vmatpush1.bf16.msra.mxu1 %v2076_v22  ;;  %807 = vmatprep.mubr.f32.mxu1 %v2634_v0  ;;  %v2132_v22 = vpack.c.bf16 %v1192_v21, %v1190_v20  ;;  %v2168_v20 = vpack.c.bf16 %v1228_v19, %v1226_v18  ;;  %v1231_v21 = vld [vmem:[#allocation8 + $0x168] sm:$0xff] }
 0x220   : > { %2111 = vmatprep.subr.bf16.mxu1 %v2078_v30  ;;  %v891_v30 = vld [vmem:[#allocation9 + $0xd0] sm:$0xff] }
 0x221   : > { %2133 = vmatpush1.bf16.msra.mxu0 %v2132_v22  ;;  %v1233_v22 = vld [vmem:[#allocation8 + $0x178] sm:$0xff] }
 0x222   : > { %808 = vmatmul.mubr.f32.gmra.mrb[8].mxu1 %v707_v53  ;;  %2135 = vmatprep.subr.bf16.mxu0 %v2134_v26  ;;  %v1213_v53 = vld [vmem:[#allocation8 + $0xd8] sm:$0xff]  ;;  %v2172_v26 = vpack.c.bf16 %v1232_v25, %v1230_v24 }
 0x223   : > { %2113 = vmatpush1.bf16.msra.mxu1 %v2080_v28  ;;  %813 = vmatprep.mubr.f32.mxu1 %v2634_v0  ;;  %v1196_v28 = vld [vmem:[#allocation8 + $0x50] sm:$0xff] }
 0x224   : > { %2115 = vmatprep.subr.bf16.mxu1 %v2082_v36  ;;  %v2136_v29 = vpack.c.bf16 %v1196_v28, %v1194_v27  ;;  %v1235_v27 = vld [vmem:[#allocation8 + $0x188] sm:$0xff]  ;;  %v1237_v28 = vld [vmem:[#allocation8 + $0x198] sm:$0xff] }
 0x226   : > { %814 = vmatmul.mubr.f32.gmra.mrb[10].mxu1 %v708_v54  ;;  %2137 = vmatpush1.bf16.msra.mxu0 %v2136_v29  ;;  %v2150_v54 = vpack.c.bf16 %v1213_v53, %v1211_v52  ;;  %v2174_v29 = vpack.c.bf16 %v1237_v28, %v1235_v27 }
 0x227   : > { %2117 = vmatpush1.bf16.msra.mxu1 %v2084_v34  ;;  %819 = vmatprep.mubr.f32.mxu1 %v2634_v0  ;;  %v1198_v34 = vld [vmem:[#allocation8 + $0x60] sm:$0xff] }
 0x228   : > { %2119 = vmatprep.subr.bf16.mxu1 %v2086_v42  ;;  %v2140_v36 = vpack.c.bf16 %v1200_v35, %v1198_v34  ;;  %2139 = vmatprep.subr.bf16.mxu0 %v2138_v33  ;;  %v1204_v42 = vld [vmem:[#allocation8 + $0x90] sm:$0xff]  ;;  %v1239_v33 = vld [vmem:[#allocation8 + $0x1a8] sm:$0xff]  ;;  %v1241_v34 = vld [vmem:[#allocation8 + $0x1b8] sm:$0xff] }
 0x229   : > { %v2144_v43 = vpack.c.bf16 %v1204_v42, %v1202_v41  ;;  %v2178_v35 = vpack.c.bf16 %v1241_v34, %v1239_v33  ;;  %v1242_v42 = vld [vmem:[#allocation8 + $0x1c0] sm:$0xff] }
 0x22a   : > { %820 = vmatmul.mubr.f32.gmra.mrb[12].mxu1 %v709_v55  ;;  %2141 = vmatpush1.bf16.msra.mxu0 %v2140_v36  ;;  %v1210_v55 = vld [vmem:[#allocation8 + $0xc0] sm:$0xff] }
 0x22b   : > { %2121 = vmatpush1.bf16.msra.mxu1 %v2088_v40  ;;  %825 = vmatprep.mubr.f32.mxu1 %v2634_v0  ;;  %v2142_v40 = vpack.c.bf16 %v1205_v39, %v1203_v38  ;;  %v1238_v36 = vld [vmem:[#allocation8 + $0x1a0] sm:$0xff]  ;;  %v1243_v39 = vld [vmem:[#allocation8 + $0x1c8] sm:$0xff] }
 0x22c   : > { %2123 = vmatprep.subr.bf16.mxu1 %v2090_v48  ;;  %v1206_v48 = vld [vmem:[#allocation8 + $0xa0] sm:$0xff] }
 0x22d   : > { %2143 = vmatprep.subr.bf16.mxu0 %v2142_v40  ;;  %v2148_v50 = vpack.c.bf16 %v1208_v49, %v1206_v48  ;;  %v1245_v40 = vld [vmem:[#allocation8 + $0x1d8] sm:$0xff]  ;;  %v1246_v48 = vld [vmem:[#allocation8 + $0x1e0] sm:$0xff]  ;;  %v1248_v49 = vld [vmem:[#allocation8 + $0x1f0] sm:$0xff] }
 0x22e   : > { %826 = vmatmul.mubr.f32.gmra.mrb[14].mxu1 %v710_v56  ;;  %2145 = vmatpush1.bf16.msra.mxu0 %v2144_v43  ;;  %v1212_v56 = vld [vmem:[#allocation8 + $0xd0] sm:$0xff]  ;;  %v2182_v41 = vpack.c.bf16 %v1245_v40, %v1243_v39 }
 0x22f   : > { %2125 = vmatpush1.bf16.msra.mxu1 %v2092_v46  ;;  %831 = vmatprep.mubr.f32.mxu1 %v2634_v0  ;;  %v1209_v46 = vld [vmem:[#allocation8 + $0xb8] sm:$0xff]  ;;  %v1244_v43 = vld [vmem:[#allocation8 + $0x1d0] sm:$0xff] }
 0x230   : > { %v2146_v47 = vpack.c.bf16 %v1209_v46, %v1207_v45  ;;  %v1247_v45 = vld [vmem:[#allocation8 + $0x1e8] sm:$0xff]  ;;  %v1249_v46 = vld [vmem:[#allocation8 + $0x1f8] sm:$0xff] }
 0x232   : > { %832 = vmatmul.mubr.f32.gmra.mrb[16].mxu1 %v711_v57  ;;  %2147 = vmatprep.subr.bf16.mxu0 %v2146_v47  ;;  %v2152_v57 = vpack.c.bf16 %v1212_v56, %v1210_v55  ;;  %v2186_v47 = vpack.c.bf16 %v1249_v46, %v1247_v45 }
 0x233   : > { %837 = vmatprep.mubr.f32.mxu1 %v2634_v0  ;;  %2149 = vmatpush1.bf16.msra.mxu0 %v2148_v50  ;;  %v2188_v50 = vpack.c.bf16 %v1248_v49, %v1246_v48 }
 0x234   : > { %2151 = vmatprep.subr.bf16.mxu0 %v2150_v54 }
 0x236   : > { %838 = vmatmul.mubr.f32.gmra.mrb[18].mxu1 %v712_v58  ;;  %v895_v58 = vld [vmem:[#allocation9 + $0xf0] sm:$0xff] }
 0x237   : > { %843 = vmatprep.mubr.f32.mxu1 %v2634_v0  ;;  %2153 = vmatpush1.bf16.msra.mxu0 %v2152_v57 }
 0x23a   : > { %844 = vmatmul.mubr.f32.gmra.mrb[20].mxu1 %v713_v59  ;;  %v1215_v59 = vld [vmem:[#allocation8 + $0xe8] sm:$0xff] }
 0x23b   : > { %849 = vmatprep.mubr.f32.mxu1 %v2634_v0 }
 0x23e   : > { %850 = vmatmul.mubr.f32.gmra.mrb[22].mxu1 %v714_v60  ;;  %v1217_v60 = vld [vmem:[#allocation8 + $0xf8] sm:$0xff] }
 0x23f   : > { %855 = vmatprep.mubr.f32.mxu1 %v2634_v0 }
 0x242   : > { %856 = vmatmul.mubr.f32.gmra.mrb[24].mxu1 %v715_v61  ;;  %v2154_v61 = vpack.c.bf16 %v1217_v60, %v1215_v59 }
 0x243   : > { %861 = vmatprep.mubr.f32.mxu1 %v2634_v0 }
 0x244   : > { %2155 = vmatprep.subr.bf16.mxu0 %v2154_v61 }
 0x246   : > { %862 = vmatmul.mubr.f32.gmra.mrb[26].mxu1 %v716_v62  ;;  %v1214_v62 = vld [vmem:[#allocation8 + $0xe0] sm:$0xff] }
 0x247   : > { %867 = vmatprep.mubr.f32.mxu1 %v2634_v0 }
 0x24a   : > { %868 = vmatmul.mubr.f32.gmra.mrb[28].mxu1 %v717_v63  ;;  %v1216_v63 = vld [vmem:[#allocation8 + $0xf0] sm:$0xff] }
 0x24b   : > { %873 = vmatprep.mubr.f32.mxu1 %v2634_v0 }
 0x24e   : > { %874 = vmatmul.mubr.f32.gmra.mrb[30].mxu1 %v718_v1  ;;  %v2156_v1 = vpack.c.bf16 %v1216_v63, %v1214_v62 }
 0x24f   : > { %961 = vmatprep.mubr.f32.mxu1 %v2634_v0 }
 0x250   : > { %2157 = vmatpush1.bf16.msra.mxu0 %v2156_v1 }
 0x252   : > { %962 = vmatmul.mubr.f32.vlgmr.msra.gmra.mrb[32].mxu1 %v881_v2  ;;  %v896_v2 = vld [vmem:[#allocation9 + $0xf8] sm:$0xff] }
 0x253   : > { %967 = vmatprep.mubr.f32.mxu1 %v2634_v0 }
 0x256   : > { %968 = vmatmul.mubr.f32.gmra.mrb[34].mxu1 %v882_v3  ;;  %v1219_v3 = vld [vmem:[#allocation8 + $0x108] sm:$0xff] }
 0x257   : > { %973 = vmatprep.mubr.f32.mxu1 %v2634_v0 }
 0x25a   : > { %974 = vmatmul.mubr.f32.gmra.mrb[36].mxu1 %v883_v4  ;;  %v1221_v4 = vld [vmem:[#allocation8 + $0x118] sm:$0xff] }
 0x25b   : > { %979 = vmatprep.mubr.f32.mxu1 %v2634_v0 }
 0x25e   : > { %980 = vmatmul.mubr.f32.gmra.mrb[38].mxu1 %v884_v5  ;;  %v2158_v5 = vpack.c.bf16 %v1221_v4, %v1219_v3 }
 0x25f   : > { %985 = vmatprep.mubr.f32.mxu1 %v2634_v0 }
 0x260   : > { %2159 = vmatprep.subr.bf16.mxu0 %v2158_v5 }
 0x262   : > { %986 = vmatmul.mubr.f32.gmra.mrb[40].mxu1 %v885_v6  ;;  %v1218_v6 = vld [vmem:[#allocation8 + $0x100] sm:$0xff] }
 0x263   : > { %991 = vmatprep.mubr.f32.mxu1 %v2634_v0 }
 0x266   : > { %992 = vmatmul.mubr.f32.gmra.mrb[42].mxu1 %v886_v7  ;;  %v1220_v7 = vld [vmem:[#allocation8 + $0x110] sm:$0xff] }
 0x267   : > { %997 = vmatprep.mubr.f32.mxu1 %v2634_v0 }
 0x26a   : > { %998 = vmatmul.mubr.f32.gmra.mrb[44].mxu1 %v887_v8  ;;  %v2160_v8 = vpack.c.bf16 %v1220_v7, %v1218_v6 }
 0x26b   : > { %1003 = vmatprep.mubr.f32.mxu1 %v2634_v0 }
 0x26c   : > { %2161 = vmatpush1.bf16.msra.mxu0 %v2160_v8 }
 0x26e   : > { %1004 = vmatmul.mubr.f32.gmra.mrb[46].mxu1 %v888_v9  ;;  %v1223_v9 = vld [vmem:[#allocation8 + $0x128] sm:$0xff] }
 0x26f   : > { %1009 = vmatprep.mubr.f32.mxu1 %v2634_v0  ;;  %v2162_v11 = vpack.c.bf16 %v1225_v10, %v1223_v9 }
 0x271   : > { %2163 = vmatprep.subr.bf16.mxu0 %v2162_v11 }
 0x272   : > { %1010 = vmatmul.mubr.f32.gmra.mrb[48].mxu1 %v889_v16  ;;  %2165 = vmatpush1.bf16.msra.mxu0 %v2164_v14  ;;  %v1229_v16 = vld [vmem:[#allocation8 + $0x158] sm:$0xff] }
 0x273   : > { %1015 = vmatprep.mubr.f32.mxu1 %v2634_v0  ;;  %v2166_v17 = vpack.c.bf16 %v1229_v16, %v1227_v15 }
 0x275   : > { %2167 = vmatprep.subr.bf16.mxu0 %v2166_v17 }
 0x276   : > { %1016 = vmatmul.mubr.f32.gmra.mrb[50].mxu1 %v890_v23  ;;  %2169 = vmatpush1.bf16.msra.mxu0 %v2168_v20  ;;  %v2170_v23 = vpack.c.bf16 %v1233_v22, %v1231_v21  ;;  %v346_v20 = vld [vmem:[#allocation12] sm:$0xff] }
 0x277   : > { %1021 = vmatprep.mubr.f32.mxu1 %v2634_v0  ;;  %v363_v21 = vld [vmem:[#allocation12 + $0x80] sm:$0xff] }
 0x278   : > { %2171 = vmatprep.subr.bf16.mxu0 %v2170_v23 }
 0x27a   : > { %1022 = vmatmul.mubr.f32.gmra.mrb[52].mxu1 %v891_v30  ;;  %2173 = vmatpush1.bf16.msra.mxu0 %v2172_v26  ;;  %v1234_v30 = vld [vmem:[#allocation8 + $0x180] sm:$0xff] }
 0x27b   : > { %1027 = vmatprep.mubr.f32.mxu1 %v2634_v0  ;;  %v2176_v32 = vpack.c.bf16 %v1236_v31, %v1234_v30  ;;  %2175 = vmatprep.subr.bf16.mxu0 %v2174_v29  ;;  %v347_v30 = vld [vmem:[#allocation12 + $0x8] sm:$0xff] }
 0x27c   : > { %v364_v31 = vld [vmem:[#allocation12 + $0x88] sm:$0xff] }
 0x27e   : > { %1028 = vmatmul.mubr.f32.gmra.mrb[54].mxu1 %v892_v37  ;;  %2177 = vmatpush1.bf16.msra.mxu0 %v2176_v32  ;;  %v1240_v37 = vld [vmem:[#allocation8 + $0x1b0] sm:$0xff] }
 0x27f   : > { %1033 = vmatprep.mubr.f32.mxu1 %v2634_v0  ;;  %v2180_v38 = vpack.c.bf16 %v1240_v37, %v1238_v36  ;;  %2179 = vmatprep.subr.bf16.mxu0 %v2178_v35 }
 0x282   : > { %1034 = vmatmul.mubr.f32.gmra.mrb[56].mxu1 %v893_v44  ;;  %2181 = vmatpush1.bf16.msra.mxu0 %v2180_v38  ;;  %v2184_v44 = vpack.c.bf16 %v1244_v43, %v1242_v42  ;;  %v348_v42 = vld [vmem:[#allocation12 + $0x10] sm:$0xff] }
 0x283   : > { %1039 = vmatprep.mubr.f32.mxu1 %v2634_v0  ;;  %2183 = vmatprep.subr.bf16.mxu0 %v2182_v41  ;;  %v365_v43 = vld [vmem:[#allocation12 + $0x90] sm:$0xff] }
 0x286   : > { %1040 = vmatmul.mubr.f32.gmra.mrb[58].mxu1 %v894_v51  ;;  %2185 = vmatpush1.bf16.msra.mxu0 %v2184_v44 }
 0x287   : > { %1045 = vmatprep.mubr.f32.mxu1 %v2634_v0  ;;  %2187 = vmatprep.subr.bf16.mxu0 %v2186_v47 }
 0x28a   : > { %1046 = vmatmul.mubr.f32.gmra.mrb[60].mxu1 %v895_v58  ;;  %2189 = vmatpush1.bf16.msra.mxu0 %v2188_v50 }
 0x28b   : > { %1051 = vmatprep.mubr.f32.mxu1 %v2634_v0 }
 0x28e   : > { %1052 = vmatmul.mubr.f32.gmra.mrb[62].mxu1 %v896_v2 }
 0x28f   : > { %1491 = vmatprep.mubr.f32.mxu1 %v2634_v0 }
 0x2e5   : > { %v785_v51 = vpop.f32.mrb[0].mxu1 }
 0x2e6   : > { %v787_v52 = vpop.f32.mrb[1].mxu1 }
 0x2e9   : > { %v791_v53 = vpop.f32.mrb[2].mxu1 }
 0x2ea   : > { %v793_v54 = vpop.f32.mrb[3].mxu1 }
 0x2ed   : > { %v797_v55 = vpop.f32.mrb[4].mxu1 }
 0x2ee   : > { %v799_v56 = vpop.f32.mrb[5].mxu1 }
 0x2f1   : > { %v3011_v57 = vpop.f32.mrb[6].mxu1 }
 0x2f2   : > { %v3013_v58 = vpop.f32.mrb[7].mxu1 }
 0x2f5   : > { %v3015_v59 = vpop.f32.mrb[8].mxu1 }
 0x2f6   : > { %v3017_v60 = vpop.f32.mrb[9].mxu1 }
 0x2f9   : > { %v3019_v61 = vpop.f32.mrb[10].mxu1 }
 0x2fa   : > { %v3021_v62 = vpop.f32.mrb[11].mxu1 }
 0x2fd   : > { %v3023_v63 = vpop.f32.mrb[12].mxu1 }
 0x2fe   : > { %v3025_v1 = vpop.f32.mrb[13].mxu1 }
 0x301   : > { %v3027_v2 = vpop.f32.mrb[14].mxu1 }
 0x302   : > { %v3029_v3 = vpop.f32.mrb[15].mxu1 }
 0x305   : > { %v3031_v4 = vpop.f32.mrb[16].mxu1 }
 0x306   : > { %v3033_v5 = vpop.f32.mrb[17].mxu1 }
 0x309   : > { %v3035_v6 = vpop.f32.mrb[18].mxu1 }
 0x30a   : > { %v3037_v7 = vpop.f32.mrb[19].mxu1 }
 0x30d   : > { %v3039_v8 = vpop.f32.mrb[20].mxu1 }
 0x30e   : > { %v3041_v9 = vpop.f32.mrb[21].mxu1 }
 0x311   : > { %v3043_v10 = vpop.f32.mrb[22].mxu1 }
 0x312   : > { %v3045_v11 = vpop.f32.mrb[23].mxu1 }
 0x315   : > { %v3047_v12 = vpop.f32.mrb[24].mxu1 }
 0x316   : > { %v3049_v13 = vpop.f32.mrb[25].mxu1 }
 0x319   : > { %v3051_v14 = vpop.f32.mrb[26].mxu1 }
 0x31a   : > { %v3053_v15 = vpop.f32.mrb[27].mxu1 }
 0x31d   : > { %v3055_v16 = vpop.f32.mrb[28].mxu1 }
 0x31e   : > { %v3057_v17 = vpop.f32.mrb[29].mxu1 }
 0x321   : > { %v3059_v18 = vpop.f32.mrb[30].mxu1 }
 0x322   : > { %v3061_v19 = vpop.f32.mrb[31].mxu1 }
 0x325   : > { %v963_v22 = vpop.f32.mrb[32].mxu1 }
 0x326   : > { %v1074_v23 = vadd.f32 %v963_v22, %v787_v52  ;;  %v965_v24 = vpop.f32.mrb[33].mxu1 }
 0x327   : > { %v1058_v25 = vsub.f32 %v785_v51, %v965_v24 }
 0x328   : > { %v1106_v26 = vmul.f32 %v1074_v23, %v363_v21  ;;  %v1154_v27 = vmul.f32 %v1074_v23, %v346_v20 }
 0x329   : > { %v1090_v28 = vmul.f32 %v1058_v25, %v346_v20  ;;  %v1138_v29 = vmul.f32 %v1058_v25, %v363_v21  ;;  %v969_v32 = vpop.f32.mrb[34].mxu1  ;;  %v366_v20 = vld [vmem:[#allocation12 + $0x98] sm:$0xff] }
 0x32a   : > { %v1075_v33 = vadd.f32 %v969_v32, %v793_v54  ;;  %v971_v34 = vpop.f32.mrb[35].mxu1 }
 0x32b   : > { %v1122_v35 = vsub.f32 %v1090_v28, %v1106_v26  ;;  %v1059_v36 = vsub.f32 %v791_v53, %v971_v34  ;;  %v1170_v37 = vadd.f32 %v1154_v27, %v1138_v29  ;;  %v349_v53 = vld [vmem:[#allocation12 + $0x18] sm:$0xff]  ;;  %v350_v29 = vld [vmem:[#allocation12 + $0x20] sm:$0xff] }
 0x32c   : > { %v1107_v38 = vmul.f32 %v1075_v33, %v364_v31  ;;  %v1155_v39 = vmul.f32 %v1075_v33, %v347_v30 }
 0x32d   : > { %v1091_v40 = vmul.f32 %v1059_v36, %v347_v30  ;;  %v1139_v41 = vmul.f32 %v1059_v36, %v364_v31  ;;  %v975_v44 = vpop.f32.mrb[36].mxu1  ;;  %1314 = vmatprep.mubr.f32.mxu0 %v1170_v37  ;;  %v367_v30 = vld [vmem:[#allocation12 + $0xa0] sm:$0xff] }
 0x32e   : > { %v1076_v45 = vadd.f32 %v975_v44, %v799_v56  ;;  %v977_v46 = vpop.f32.mrb[37].mxu1  ;;  %1315 = vmatmul.mubr.f32.vlgmr.msra.gmra.mrb[32].mxu0 %v1122_v35 }
 0x32f   : > { %v1060_v47 = vsub.f32 %v797_v55, %v977_v46  ;;  %v1171_v48 = vadd.f32 %v1155_v39, %v1139_v41  ;;  %v1123_v49 = vsub.f32 %v1091_v40, %v1107_v38  ;;  %v351_v39 = vld [vmem:[#allocation12 + $0x28] sm:$0xff] }
 0x330   : > { %v1108_v50 = vmul.f32 %v1076_v45, %v365_v43  ;;  %v1156_v51 = vmul.f32 %v1076_v45, %v348_v42  ;;  %v368_v40 = vld [vmem:[#allocation12 + $0xa8] sm:$0xff] }
 0x331   : > { %v1092_v52 = vmul.f32 %v1060_v47, %v348_v42  ;;  %v1140_v54 = vmul.f32 %v1060_v47, %v365_v43  ;;  %v981_v21 = vpop.f32.mrb[38].mxu1  ;;  %1320 = vmatprep.mubr.f32.mxu0 %v1171_v48 }
 0x332   : > { %v1077_v22 = vadd.f32 %v981_v21, %v3013_v58  ;;  %v983_v23 = vpop.f32.mrb[39].mxu1  ;;  %1321 = vmatmul.mubr.f32.gmra.mrb[34].mxu0 %v1123_v49  ;;  %v352_v49 = vld [vmem:[#allocation12 + $0x30] sm:$0xff] }
 0x333   : > { %v1061_v24 = vsub.f32 %v3011_v57, %v983_v23  ;;  %v1172_v56 = vadd.f32 %v1156_v51, %v1140_v54  ;;  %v1124_v25 = vsub.f32 %v1092_v52, %v1108_v50  ;;  %v369_v50 = vld [vmem:[#allocation12 + $0xb0] sm:$0xff] }
 0x334   : > { %v1109_v26 = vmul.f32 %v1077_v22, %v366_v20  ;;  %v1157_v55 = vmul.f32 %v1077_v22, %v349_v53 }
 0x335   : > { %v1093_v27 = vmul.f32 %v1061_v24, %v349_v53  ;;  %v1141_v28 = vmul.f32 %v1061_v24, %v366_v20  ;;  %v987_v31 = vpop.f32.mrb[40].mxu1  ;;  %1326 = vmatprep.mubr.f32.mxu0 %v1172_v56  ;;  %v353_v24 = vld [vmem:[#allocation12 + $0x38] sm:$0xff] }
 0x336   : > { %v1078_v32 = vadd.f32 %v987_v31, %v3017_v60  ;;  %v989_v33 = vpop.f32.mrb[41].mxu1  ;;  %1327 = vmatmul.mubr.f32.gmra.mrb[36].mxu0 %v1124_v25  ;;  %v370_v56 = vld [vmem:[#allocation12 + $0xb8] sm:$0xff] }
 0x337   : > { %v1062_v58 = vsub.f32 %v3015_v59, %v989_v33  ;;  %v1173_v34 = vadd.f32 %v1157_v55, %v1141_v28  ;;  %v1125_v35 = vsub.f32 %v1093_v27, %v1109_v26  ;;  %v371_v33 = vld [vmem:[#allocation12 + $0xc0] sm:$0xff] }
 0x338   : > { %v1110_v36 = vmul.f32 %v1078_v32, %v367_v30  ;;  %v1158_v57 = vmul.f32 %v1078_v32, %v350_v29  ;;  %v354_v32 = vld [vmem:[#allocation12 + $0x40] sm:$0xff] }
 0x339   : > { %v1094_v37 = vmul.f32 %v1062_v58, %v350_v29  ;;  %v1142_v38 = vmul.f32 %v1062_v58, %v367_v30  ;;  %v993_v41 = vpop.f32.mrb[42].mxu1  ;;  %1332 = vmatprep.mubr.f32.mxu0 %v1173_v34 }
 0x33a   : > { %v1079_v42 = vadd.f32 %v993_v41, %v3021_v62  ;;  %v995_v43 = vpop.f32.mrb[43].mxu1  ;;  %1333 = vmatmul.mubr.f32.gmra.mrb[38].mxu0 %v1125_v35  ;;  %v372_v41 = vld [vmem:[#allocation12 + $0xc8] sm:$0xff] }
 0x33b   : > { %v1063_v60 = vsub.f32 %v3019_v61, %v995_v43  ;;  %v1174_v44 = vadd.f32 %v1158_v57, %v1142_v38  ;;  %v1126_v45 = vsub.f32 %v1094_v37, %v1110_v36 }
 0x33c   : > { %v1111_v46 = vmul.f32 %v1079_v42, %v368_v40  ;;  %v1159_v59 = vmul.f32 %v1079_v42, %v351_v39 }
 0x33d   : > { %v1095_v47 = vmul.f32 %v1063_v60, %v351_v39  ;;  %v1143_v48 = vmul.f32 %v1063_v60, %v368_v40  ;;  %v999_v51 = vpop.f32.mrb[44].mxu1  ;;  %1338 = vmatprep.mubr.f32.mxu0 %v1174_v44  ;;  %v355_v40 = vld [vmem:[#allocation12 + $0x48] sm:$0xff] }
 0x33e   : > { %v1080_v52 = vadd.f32 %v999_v51, %v3025_v1  ;;  %v1001_v54 = vpop.f32.mrb[45].mxu1  ;;  %1339 = vmatmul.mubr.f32.gmra.mrb[40].mxu0 %v1126_v45 }
 0x33f   : > { %v1064_v62 = vsub.f32 %v3023_v63, %v1001_v54  ;;  %v1175_v53 = vadd.f32 %v1159_v59, %v1143_v48  ;;  %v1127_v20 = vsub.f32 %v1095_v47, %v1111_v46  ;;  %v356_v48 = vld [vmem:[#allocation12 + $0x50] sm:$0xff] }
 0x340   : > { %v1112_v21 = vmul.f32 %v1080_v52, %v369_v50  ;;  %v1160_v61 = vmul.f32 %v1080_v52, %v352_v49 }
 0x341   : > { %v1096_v22 = vmul.f32 %v1064_v62, %v352_v49  ;;  %v1144_v23 = vmul.f32 %v1064_v62, %v369_v50  ;;  %v1005_v25 = vpop.f32.mrb[46].mxu1  ;;  %1344 = vmatprep.mubr.f32.mxu0 %v1175_v53  ;;  %v373_v49 = vld [vmem:[#allocation12 + $0xd0] sm:$0xff] }
 0x342   : > { %v1081_v26 = vadd.f32 %v1005_v25, %v3029_v3  ;;  %v1007_v55 = vpop.f32.mrb[47].mxu1  ;;  %1345 = vmatmul.mubr.f32.gmra.mrb[42].mxu0 %v1127_v20 }
 0x343   : > { %v1065_v1 = vsub.f32 %v3027_v2, %v1007_v55  ;;  %v1176_v27 = vadd.f32 %v1160_v61, %v1144_v23  ;;  %v1128_v28 = vsub.f32 %v1096_v22, %v1112_v21  ;;  %v357_v61 = vld [vmem:[#allocation12 + $0x58] sm:$0xff] }
 0x344   : > { %v1113_v29 = vmul.f32 %v1081_v26, %v370_v56  ;;  %v1161_v63 = vmul.f32 %v1081_v26, %v353_v24  ;;  %v374_v22 = vld [vmem:[#allocation12 + $0xd8] sm:$0xff] }
 0x345   : > { %v1097_v30 = vmul.f32 %v1065_v1, %v353_v24  ;;  %v1145_v31 = vmul.f32 %v1065_v1, %v370_v56  ;;  %v1011_v58 = vpop.f32.mrb[48].mxu1  ;;  %1350 = vmatprep.mubr.f32.mxu0 %v1176_v27 }
 0x346   : > { %v1082_v34 = vadd.f32 %v1011_v58, %v3033_v5  ;;  %v1013_v35 = vpop.f32.mrb[49].mxu1  ;;  %1351 = vmatmul.mubr.f32.gmra.mrb[44].mxu0 %v1128_v28  ;;  %v358_v28 = vld [vmem:[#allocation12 + $0x60] sm:$0xff] }
 0x347   : > { %v1066_v3 = vsub.f32 %v3031_v4, %v1013_v35  ;;  %v1177_v36 = vadd.f32 %v1161_v63, %v1145_v31  ;;  %v1129_v57 = vsub.f32 %v1097_v30, %v1113_v29  ;;  %v375_v29 = vld [vmem:[#allocation12 + $0xe0] sm:$0xff] }
 0x348   : > { %v1114_v37 = vmul.f32 %v1082_v34, %v371_v33  ;;  %v1162_v2 = vmul.f32 %v1082_v34, %v354_v32 }
 0x349   : > { %v1098_v38 = vmul.f32 %v1066_v3, %v354_v32  ;;  %v1146_v39 = vmul.f32 %v1066_v3, %v371_v33  ;;  %v1017_v42 = vpop.f32.mrb[50].mxu1  ;;  %1356 = vmatprep.mubr.f32.mxu0 %v1177_v36  ;;  %v359_v3 = vld [vmem:[#allocation12 + $0x68] sm:$0xff] }
 0x34a   : > { %v1083_v43 = vadd.f32 %v1017_v42, %v3037_v7  ;;  %v1019_v60 = vpop.f32.mrb[51].mxu1  ;;  %1357 = vmatmul.mubr.f32.gmra.mrb[46].mxu0 %v1129_v57  ;;  %v376_v36 = vld [vmem:[#allocation12 + $0xe8] sm:$0xff] }
 0x34b   : > { %v1067_v5 = vsub.f32 %v3035_v6, %v1019_v60  ;;  %v1178_v44 = vadd.f32 %v1162_v2, %v1146_v39  ;;  %v1130_v45 = vsub.f32 %v1098_v38, %v1114_v37  ;;  %v377_v60 = vld [vmem:[#allocation12 + $0xf0] sm:$0xff] }
 0x34c   : > { %v1115_v46 = vmul.f32 %v1083_v43, %v372_v41  ;;  %v1163_v4 = vmul.f32 %v1083_v43, %v355_v40  ;;  %v360_v43 = vld [vmem:[#allocation12 + $0x70] sm:$0xff] }
 0x34d   : > { %v1099_v59 = vmul.f32 %v1067_v5, %v355_v40  ;;  %v1147_v47 = vmul.f32 %v1067_v5, %v372_v41  ;;  %v1023_v50 = vpop.f32.mrb[52].mxu1  ;;  %1362 = vmatprep.mubr.f32.mxu0 %v1178_v44 }
 0x34e   : > { %v1084_v51 = vadd.f32 %v1023_v50, %v3041_v9  ;;  %v1025_v52 = vpop.f32.mrb[53].mxu1  ;;  %1363 = vmatmul.mubr.f32.gmra.mrb[48].mxu0 %v1130_v45  ;;  %v378_v50 = vld [vmem:[#allocation12 + $0xf8] sm:$0xff] }
 0x34f   : > { %v1068_v7 = vsub.f32 %v3039_v8, %v1025_v52  ;;  %v1179_v54 = vadd.f32 %v1163_v4, %v1147_v47  ;;  %v1131_v62 = vsub.f32 %v1099_v59, %v1115_v46 }
 0x350   : > { %v1116_v53 = vmul.f32 %v1084_v51, %v373_v49  ;;  %v1164_v6 = vmul.f32 %v1084_v51, %v356_v48 }
 0x351   : > { %v1100_v20 = vmul.f32 %v1068_v7, %v356_v48  ;;  %v1148_v21 = vmul.f32 %v1068_v7, %v373_v49  ;;  %v1029_v23 = vpop.f32.mrb[54].mxu1  ;;  %1368 = vmatprep.mubr.f32.mxu0 %v1179_v54  ;;  %v361_v49 = vld [vmem:[#allocation12 + $0x78] sm:$0xff] }
 0x352   : > { %v1085_v24 = vadd.f32 %v1029_v23, %v3045_v11  ;;  %v1031_v56 = vpop.f32.mrb[55].mxu1  ;;  %1369 = vmatmul.mubr.f32.gmra.mrb[50].mxu0 %v1131_v62 }
 0x353   : > { %v1069_v9 = vsub.f32 %v3043_v10, %v1031_v56  ;;  %v1180_v25 = vadd.f32 %v1164_v6, %v1148_v21  ;;  %v1132_v26 = vsub.f32 %v1100_v20, %v1116_v53 }
 0x354   : > { %v1117_v55 = vmul.f32 %v1085_v24, %v374_v22  ;;  %v1165_v8 = vmul.f32 %v1085_v24, %v357_v61 }
 0x355   : > { %v1101_v1 = vmul.f32 %v1069_v9, %v357_v61  ;;  %v1149_v27 = vmul.f32 %v1069_v9, %v374_v22  ;;  %v1035_v63 = vpop.f32.mrb[56].mxu1  ;;  %1374 = vmatprep.mubr.f32.mxu0 %v1180_v25 }
 0x356   : > { %v1086_v30 = vadd.f32 %v1035_v63, %v3049_v13  ;;  %v1037_v31 = vpop.f32.mrb[57].mxu1  ;;  %1375 = vmatmul.mubr.f32.gmra.mrb[52].mxu0 %v1132_v26 }
 0x357   : > { %v1070_v11 = vsub.f32 %v3047_v12, %v1037_v31  ;;  %v1181_v32 = vadd.f32 %v1165_v8, %v1149_v27  ;;  %v1133_v33 = vsub.f32 %v1101_v1, %v1117_v55 }
 0x358   : > { %v1118_v58 = vmul.f32 %v1086_v30, %v375_v29  ;;  %v1166_v10 = vmul.f32 %v1086_v30, %v358_v28 }
 0x359   : > { %v1102_v34 = vmul.f32 %v1070_v11, %v358_v28  ;;  %v1150_v35 = vmul.f32 %v1070_v11, %v375_v29  ;;  %v1041_v57 = vpop.f32.mrb[58].mxu1  ;;  %1380 = vmatprep.mubr.f32.mxu0 %v1181_v32 }
 0x35a   : > { %v1087_v37 = vadd.f32 %v1041_v57, %v3053_v15  ;;  %v1043_v2 = vpop.f32.mrb[59].mxu1  ;;  %1381 = vmatmul.mubr.f32.gmra.mrb[54].mxu0 %v1133_v33 }
 0x35b   : > { %v1071_v13 = vsub.f32 %v3051_v14, %v1043_v2  ;;  %v1182_v38 = vadd.f32 %v1166_v10, %v1150_v35  ;;  %v1134_v39 = vsub.f32 %v1102_v34, %v1118_v58 }
 0x35c   : > { %v1119_v40 = vmul.f32 %v1087_v37, %v376_v36  ;;  %v1167_v12 = vmul.f32 %v1087_v37, %v359_v3 }
 0x35d   : > { %v1103_v41 = vmul.f32 %v1071_v13, %v359_v3  ;;  %v1151_v42 = vmul.f32 %v1071_v13, %v376_v36  ;;  %v1047_v5 = vpop.f32.mrb[60].mxu1  ;;  %1386 = vmatprep.mubr.f32.mxu0 %v1182_v38 }
 0x35e   : > { %v1088_v44 = vadd.f32 %v1047_v5, %v3057_v17  ;;  %v1049_v45 = vpop.f32.mrb[61].mxu1  ;;  %1387 = vmatmul.mubr.f32.gmra.mrb[56].mxu0 %v1134_v39 }
 0x35f   : > { %v1072_v15 = vsub.f32 %v3055_v16, %v1049_v45  ;;  %v1183_v46 = vadd.f32 %v1167_v12, %v1151_v42  ;;  %v1135_v4 = vsub.f32 %v1103_v41, %v1119_v40 }
 0x360   : > { %v1120_v59 = vmul.f32 %v1088_v44, %v377_v60  ;;  %v1168_v14 = vmul.f32 %v1088_v44, %v360_v43 }
 0x361   : > { %v1104_v47 = vmul.f32 %v1072_v15, %v360_v43  ;;  %v1152_v48 = vmul.f32 %v1072_v15, %v377_v60  ;;  %v1053_v51 = vpop.f32.mrb[62].mxu1  ;;  %1392 = vmatprep.mubr.f32.mxu0 %v1183_v46 }
 0x362   : > { %v1089_v52 = vadd.f32 %v1053_v51, %v3061_v19  ;;  %v1055_v7 = vpop.f32.mrb[63].mxu1  ;;  %1393 = vmatmul.mubr.f32.gmra.mrb[58].mxu0 %v1135_v4  ;;  %v1590_v51 = vld [vmem:[#allocation11 + $0x88] sm:$0xff] }
 0x363   : > { %v1073_v17 = vsub.f32 %v3059_v18, %v1055_v7  ;;  %v1184_v54 = vadd.f32 %v1168_v14, %v1152_v48  ;;  %v1136_v62 = vsub.f32 %v1104_v47, %v1120_v59  ;;  %v1411_v48 = vld [vmem:[#allocation11] sm:$0xff]  ;;  %v1591_v7 = vld [vmem:[#allocation11 + $0x90] sm:$0xff] }
 0x364   : > { %v1121_v53 = vmul.f32 %v1089_v52, %v378_v50  ;;  %v1169_v16 = vmul.f32 %v1089_v52, %v361_v49  ;;  %v1413_v52 = vld [vmem:[#allocation11 + $0x10] sm:$0xff] }
 0x365   : > { %v1105_v6 = vmul.f32 %v1073_v17, %v361_v49  ;;  %v1153_v20 = vmul.f32 %v1073_v17, %v378_v50  ;;  %1398 = vmatprep.mubr.f32.mxu0 %v1184_v54  ;;  %v1589_v49 = vld [vmem:[#allocation11 + $0x80] sm:$0xff]  ;;  %v1412_v50 = vld [vmem:[#allocation11 + $0x8] sm:$0xff]  ;;  %v1414_v17 = vld [vmem:[#allocation11 + $0x18] sm:$0xff] }
 0x366   : > { %1399 = vmatmul.mubr.f32.gmra.mrb[60].mxu0 %v1136_v62  ;;  %v1592_v54 = vld [vmem:[#allocation11 + $0x98] sm:$0xff]  ;;  %v1415_v62 = vld [vmem:[#allocation11 + $0x20] sm:$0xff] }
 0x367   : > { %v1185_v21 = vadd.f32 %v1169_v16, %v1153_v20  ;;  %v1137_v61 = vsub.f32 %v1105_v6, %v1121_v53  ;;  %v1593_v53 = vld [vmem:[#allocation11 + $0xa0] sm:$0xff]  ;;  %v1416_v16 = vld [vmem:[#allocation11 + $0x28] sm:$0xff]  ;;  %v1417_v20 = vld [vmem:[#allocation11 + $0x30] sm:$0xff] }
 0x368   : > { %v1594_v6 = vld [vmem:[#allocation11 + $0xa8] sm:$0xff] }
 0x369   : > { %1404 = vmatprep.mubr.f32.mxu0 %v1185_v21  ;;  %v1595_v21 = vld [vmem:[#allocation11 + $0xb0] sm:$0xff] }
 0x36a   : > { %1405 = vmatmul.mubr.f32.gmra.mrb[62].mxu0 %v1137_v61  ;;  %v1418_v61 = vld [vmem:[#allocation11 + $0x38] sm:$0xff] }
 0x36b   : > { %1669 = vmatprep.mubr.f32.mxu0 %v2634_v0 }
 0x401   : > { %v1316_v22 = vpop.f32.mrb[32].mxu0 }
 0x402   : > { %v1318_v19 = vpop.f32.mrb[33].mxu0 }
 0x405   : > { %v1322_v23 = vpop.f32.mrb[34].mxu0 }
 0x406   : > { %v3090_v24 = vpack.c.bf16 %v1322_v23, %v1316_v22  ;;  %v1324_v18 = vpop.f32.mrb[35].mxu0  ;;  %v1596_v22 = vld [vmem:[#allocation11 + $0xb8] sm:$0xff]  ;;  %v1597_v23 = vld [vmem:[#allocation11 + $0xc0] sm:$0xff] }
 0x407   : > { %v3092_v56 = vpack.c.bf16 %v1324_v18, %v1318_v19  ;;  %v1419_v19 = vld [vmem:[#allocation11 + $0x40] sm:$0xff]  ;;  %v1598_v18 = vld [vmem:[#allocation11 + $0xc8] sm:$0xff] }
 0x409   : > { %v1328_v9 = vpop.f32.mrb[36].mxu0  ;;  %2191 = vmatprep.subr.bf16.mxu1 %v3092_v56  ;;  %2223 = vmatprep.subr.bf16.mxu0 %v3092_v56 }
 0x40a   : > { %v1330_v25 = vpop.f32.mrb[37].mxu0  ;;  %2193 = vmatpush1.bf16.msra.mxu1 %v3090_v24  ;;  %2225 = vmatpush1.bf16.msra.mxu0 %v3090_v24 }
 0x40d   : > { %v1334_v26 = vpop.f32.mrb[38].mxu0 }
 0x40e   : > { %v3098_v55 = vpack.c.bf16 %v1334_v26, %v1328_v9  ;;  %v1336_v8 = vpop.f32.mrb[39].mxu0  ;;  %v1599_v9 = vld [vmem:[#allocation11 + $0xd0] sm:$0xff]  ;;  %v1600_v26 = vld [vmem:[#allocation11 + $0xd8] sm:$0xff] }
 0x40f   : > { %v3100_v1 = vpack.c.bf16 %v1336_v8, %v1330_v25  ;;  %v1422_v25 = vld [vmem:[#allocation11 + $0x58] sm:$0xff]  ;;  %v1424_v8 = vld [vmem:[#allocation11 + $0x68] sm:$0xff] }
 0x411   : > { %v1340_v27 = vpop.f32.mrb[40].mxu0  ;;  %2195 = vmatprep.subr.bf16.mxu1 %v3100_v1  ;;  %2227 = vmatprep.subr.bf16.mxu0 %v3100_v1 }
 0x412   : > { %v1342_v28 = vpop.f32.mrb[41].mxu0  ;;  %2197 = vmatpush1.bf16.msra.mxu1 %v3098_v55  ;;  %2229 = vmatpush1.bf16.msra.mxu0 %v3098_v55 }
 0x415   : > { %v1346_v29 = vpop.f32.mrb[42].mxu0 }
 0x416   : > { %v3106_v63 = vpack.c.bf16 %v1346_v29, %v1340_v27  ;;  %v1348_v30 = vpop.f32.mrb[43].mxu0  ;;  %v1426_v27 = vld [vmem:[#allocation11 + $0x78] sm:$0xff]  ;;  %v1602_v29 = vld [vmem:[#allocation11 + $0xe8] sm:$0xff] }
 0x417   : > { %v3108_v31 = vpack.c.bf16 %v1348_v30, %v1342_v28  ;;  %v1601_v28 = vld [vmem:[#allocation11 + $0xe0] sm:$0xff]  ;;  %v1604_v30 = vld [vmem:[#allocation11 + $0xf8] sm:$0xff] }
 0x419   : > { %v1352_v11 = vpop.f32.mrb[44].mxu0  ;;  %2199 = vmatprep.subr.bf16.mxu1 %v3108_v31  ;;  %2231 = vmatprep.subr.bf16.mxu0 %v3108_v31 }
 0x41a   : > { %v1354_v32 = vpop.f32.mrb[45].mxu0  ;;  %2201 = vmatpush1.bf16.msra.mxu1 %v3106_v63  ;;  %2233 = vmatpush1.bf16.msra.mxu0 %v3106_v63 }
 0x41d   : > { %v1358_v33 = vpop.f32.mrb[46].mxu0 }
 0x41e   : > { %v3114_v58 = vpack.c.bf16 %v1358_v33, %v1352_v11  ;;  %v1360_v10 = vpop.f32.mrb[47].mxu0 }
 0x41f   : > { %v3116_v34 = vpack.c.bf16 %v1360_v10, %v1354_v32 }
 0x421   : > { %v1364_v35 = vpop.f32.mrb[48].mxu0  ;;  %2203 = vmatprep.subr.bf16.mxu1 %v3116_v34  ;;  %2235 = vmatprep.subr.bf16.mxu0 %v3116_v34 }
 0x422   : > { %v1366_v3 = vpop.f32.mrb[49].mxu0  ;;  %2205 = vmatpush1.bf16.msra.mxu1 %v3114_v58  ;;  %2237 = vmatpush1.bf16.msra.mxu0 %v3114_v58 }
 0x425   : > { %v1370_v36 = vpop.f32.mrb[50].mxu0 }
 0x426   : > { %v3122_v57 = vpack.c.bf16 %v1370_v36, %v1364_v35  ;;  %v1372_v37 = vpop.f32.mrb[51].mxu0 }
 0x427   : > { %v3124_v2 = vpack.c.bf16 %v1372_v37, %v1366_v3 }
 0x429   : > { %v1376_v13 = vpop.f32.mrb[52].mxu0  ;;  %2207 = vmatprep.subr.bf16.mxu1 %v3124_v2  ;;  %2239 = vmatprep.subr.bf16.mxu0 %v3124_v2 }
 0x42a   : > { %v1378_v38 = vpop.f32.mrb[53].mxu0  ;;  %2209 = vmatpush1.bf16.msra.mxu1 %v3122_v57  ;;  %2241 = vmatpush1.bf16.msra.mxu0 %v3122_v57 }
 0x42d   : > { %v1382_v39 = vpop.f32.mrb[54].mxu0 }
 0x42e   : > { %v3130_v40 = vpack.c.bf16 %v1382_v39, %v1376_v13  ;;  %v1384_v12 = vpop.f32.mrb[55].mxu0 }
 0x42f   : > { %v3132_v41 = vpack.c.bf16 %v1384_v12, %v1378_v38 }
 0x431   : > { %v1388_v42 = vpop.f32.mrb[56].mxu0  ;;  %2211 = vmatprep.subr.bf16.mxu1 %v3132_v41  ;;  %2243 = vmatprep.subr.bf16.mxu0 %v3132_v41 }
 0x432   : > { %v1390_v43 = vpop.f32.mrb[57].mxu0  ;;  %2213 = vmatpush1.bf16.msra.mxu1 %v3130_v40  ;;  %2245 = vmatpush1.bf16.msra.mxu0 %v3130_v40 }
 0x435   : > { %v1394_v60 = vpop.f32.mrb[58].mxu0 }
 0x436   : > { %v3138_v5 = vpack.c.bf16 %v1394_v60, %v1388_v42  ;;  %v1396_v44 = vpop.f32.mrb[59].mxu0 }
 0x437   : > { %v3140_v45 = vpack.c.bf16 %v1396_v44, %v1390_v43 }
 0x439   : > { %v1400_v15 = vpop.f32.mrb[60].mxu0  ;;  %2215 = vmatprep.subr.bf16.mxu1 %v3140_v45  ;;  %2247 = vmatprep.subr.bf16.mxu0 %v3140_v45 }
 0x43a   : > { %v1402_v46 = vpop.f32.mrb[61].mxu0  ;;  %2217 = vmatpush1.bf16.msra.mxu1 %v3138_v5  ;;  %2249 = vmatpush1.bf16.msra.mxu0 %v3138_v5 }
 0x43d   : > { %v1406_v4 = vpop.f32.mrb[62].mxu0 }
 0x43e   : > { %v3146_v59 = vpack.c.bf16 %v1406_v4, %v1400_v15  ;;  %v1408_v14 = vpop.f32.mrb[63].mxu0 }
 0x43f   : > { %v2218_v47 = vpack.c.bf16 %v1408_v14, %v1402_v46 }
 0x441   : > { %2219 = vmatprep.subr.bf16.mxu1 %v2218_v47  ;;  %2251 = vmatprep.subr.bf16.mxu0 %v2218_v47 }
 0x442   : > { %2221 = vmatpush1.bf16.msra.mxu1 %v3146_v59  ;;  %2253 = vmatpush1.bf16.msra.mxu0 %v3146_v59 }
 0x443   : > { %2254 = vmatprep.subr.bf16.mxu1 %v3092_v56  ;;  %v1421_v56 = vld [vmem:[#allocation11 + $0x50] sm:$0xff] }
 0x445   : > { %1492 = vmatmul.mubr.f32.vlgmr.msra.gmra.mrb[64].mxu1 %v1411_v48  ;;  %1670 = vmatmul.mubr.f32.vlgmr.msra.gmra.mrb[64].mxu0 %v1589_v49 }
 0x446   : > { %2262 = vmatpush1.bf16.msra.mxu1 %v3090_v24  ;;  %1497 = vmatprep.mubr.f32.mxu1 %v2634_v0  ;;  %v1420_v24 = vld [vmem:[#allocation11 + $0x48] sm:$0xff] }
 0x447   : > { %2255 = vmatprep.subr.bf16.mxu1 %v3100_v1  ;;  %1675 = vmatprep.mubr.f32.mxu0 %v2634_v0  ;;  %v1425_v1 = vld [vmem:[#allocation11 + $0x70] sm:$0xff] }
 0x449   : > { %1498 = vmatmul.mubr.f32.gmra.mrb[66].mxu1 %v1412_v50  ;;  %1676 = vmatmul.mubr.f32.gmra.mrb[66].mxu0 %v1590_v51 }
 0x44a   : > { %2263 = vmatpush1.bf16.msra.mxu1 %v3098_v55  ;;  %1503 = vmatprep.mubr.f32.mxu1 %v2634_v0  ;;  %v1423_v55 = vld [vmem:[#allocation11 + $0x60] sm:$0xff] }
 0x44b   : > { %2256 = vmatprep.subr.bf16.mxu1 %v3108_v31  ;;  %1681 = vmatprep.mubr.f32.mxu0 %v2634_v0 }
 0x44d   : > { %1504 = vmatmul.mubr.f32.gmra.mrb[68].mxu1 %v1413_v52  ;;  %1682 = vmatmul.mubr.f32.gmra.mrb[68].mxu0 %v1591_v7 }
 0x44e   : > { %2264 = vmatpush1.bf16.msra.mxu1 %v3106_v63  ;;  %1509 = vmatprep.mubr.f32.mxu1 %v2634_v0  ;;  %v1603_v63 = vld [vmem:[#allocation11 + $0xf0] sm:$0xff] }
 0x44f   : > { %2257 = vmatprep.subr.bf16.mxu1 %v3116_v34  ;;  %1687 = vmatprep.mubr.f32.mxu0 %v2634_v0 }
 0x451   : > { %1510 = vmatmul.mubr.f32.gmra.mrb[70].mxu1 %v1414_v17  ;;  %1688 = vmatmul.mubr.f32.gmra.mrb[70].mxu0 %v1592_v54 }
 0x452   : > { %2265 = vmatpush1.bf16.msra.mxu1 %v3114_v58  ;;  %1515 = vmatprep.mubr.f32.mxu1 %v2634_v0 }
 0x453   : > { %2258 = vmatprep.subr.bf16.mxu1 %v3124_v2  ;;  %1693 = vmatprep.mubr.f32.mxu0 %v2634_v0 }
 0x455   : > { %1516 = vmatmul.mubr.f32.gmra.mrb[72].mxu1 %v1415_v62  ;;  %1694 = vmatmul.mubr.f32.gmra.mrb[72].mxu0 %v1593_v53 }
 0x456   : > { %2266 = vmatpush1.bf16.msra.mxu1 %v3122_v57  ;;  %1521 = vmatprep.mubr.f32.mxu1 %v2634_v0 }
 0x457   : > { %2259 = vmatprep.subr.bf16.mxu1 %v3132_v41  ;;  %1699 = vmatprep.mubr.f32.mxu0 %v2634_v0 }
 0x459   : > { %1522 = vmatmul.mubr.f32.gmra.mrb[74].mxu1 %v1416_v16  ;;  %1700 = vmatmul.mubr.f32.gmra.mrb[74].mxu0 %v1594_v6 }
 0x45a   : > { %2267 = vmatpush1.bf16.msra.mxu1 %v3130_v40  ;;  %1527 = vmatprep.mubr.f32.mxu1 %v2634_v0 }
 0x45b   : > { %2260 = vmatprep.subr.bf16.mxu1 %v3140_v45  ;;  %1705 = vmatprep.mubr.f32.mxu0 %v2634_v0 }
 0x45d   : > { %1528 = vmatmul.mubr.f32.gmra.mrb[76].mxu1 %v1417_v20  ;;  %1706 = vmatmul.mubr.f32.gmra.mrb[76].mxu0 %v1595_v21 }
 0x45e   : > { %2268 = vmatpush1.bf16.msra.mxu1 %v3138_v5  ;;  %1533 = vmatprep.mubr.f32.mxu1 %v2634_v0 }
 0x45f   : > { %2261 = vmatprep.subr.bf16.mxu1 %v2218_v47  ;;  %1711 = vmatprep.mubr.f32.mxu0 %v2634_v0 }
 0x461   : > { %1534 = vmatmul.mubr.f32.gmra.mrb[78].mxu1 %v1418_v61  ;;  %1712 = vmatmul.mubr.f32.gmra.mrb[78].mxu0 %v1596_v22 }
 0x462   : > { %2269 = vmatpush1.bf16.msra.mxu1 %v3146_v59  ;;  %1539 = vmatprep.mubr.f32.mxu1 %v2634_v0 }
 0x463   : > { %1717 = vmatprep.mubr.f32.mxu0 %v2634_v0 }
 0x465   : > { %1540 = vmatmul.mubr.f32.gmra.mrb[80].mxu1 %v1419_v19  ;;  %1718 = vmatmul.mubr.f32.gmra.mrb[80].mxu0 %v1597_v23 }
 0x466   : > { %1545 = vmatprep.mubr.f32.mxu1 %v2634_v0  ;;  %1723 = vmatprep.mubr.f32.mxu0 %v2634_v0 }
 0x469   : > { %1546 = vmatmul.mubr.f32.gmra.mrb[82].mxu1 %v1420_v24  ;;  %1724 = vmatmul.mubr.f32.gmra.mrb[82].mxu0 %v1598_v18 }
 0x46a   : > { %1551 = vmatprep.mubr.f32.mxu1 %v2634_v0  ;;  %1729 = vmatprep.mubr.f32.mxu0 %v2634_v0 }
 0x46d   : > { %1552 = vmatmul.mubr.f32.gmra.mrb[84].mxu1 %v1421_v56  ;;  %1730 = vmatmul.mubr.f32.gmra.mrb[84].mxu0 %v1599_v9 }
 0x46e   : > { %1557 = vmatprep.mubr.f32.mxu1 %v2634_v0  ;;  %1735 = vmatprep.mubr.f32.mxu0 %v2634_v0 }
 0x471   : > { %1558 = vmatmul.mubr.f32.gmra.mrb[86].mxu1 %v1422_v25  ;;  %1736 = vmatmul.mubr.f32.gmra.mrb[86].mxu0 %v1600_v26 }
 0x472   : > { %1563 = vmatprep.mubr.f32.mxu1 %v2634_v0 }
 0x475   : > { %1564 = vmatmul.mubr.f32.gmra.mrb[88].mxu1 %v1423_v55 }
 0x476   : > { %1569 = vmatprep.mubr.f32.mxu1 %v2634_v0 }
 0x479   : > { %1570 = vmatmul.mubr.f32.gmra.mrb[90].mxu1 %v1424_v8 }
 0x47a   : > { %1575 = vmatprep.mubr.f32.mxu1 %v2634_v0 }
 0x47d   : > { %1576 = vmatmul.mubr.f32.gmra.mrb[92].mxu1 %v1425_v1 }
 0x47e   : > { %1581 = vmatprep.mubr.f32.mxu1 %v2634_v0 }
 0x481   : > { %1582 = vmatmul.mubr.f32.gmra.mrb[94].mxu1 %v1426_v27 }
 0x482   : > { %1741 = vmatprep.mubr.f32.mxu1 %v2634_v0 }
 0x485   : > { %1742 = vmatmul.mubr.f32.vlgmr.msra.gmra.mrb[96].mxu1 %v1601_v28 }
 0x486   : > { %1747 = vmatprep.mubr.f32.mxu1 %v2634_v0 }
 0x489   : > { %1748 = vmatmul.mubr.f32.gmra.mrb[98].mxu1 %v1602_v29 }
 0x48a   : > { %1753 = vmatprep.mubr.f32.mxu1 %v2634_v0 }
 0x48d   : > { %1754 = vmatmul.mubr.f32.gmra.mrb[100].mxu1 %v1603_v63 }
 0x48e   : > { %1759 = vmatprep.mubr.f32.mxu1 %v2634_v0 }
 0x491   : > { %1760 = vmatmul.mubr.f32.gmra.mrb[102].mxu1 %v1604_v30 }
 0x518   : > { %v1493_v31 = vpop.f32.mrb[64].mxu1  ;;  %v1671_v11 = vpop.f32.mrb[64].mxu0 }
 0x519   : > { %v1495_v32 = vpop.f32.mrb[65].mxu1  ;;  %v1673_v33 = vpop.f32.mrb[65].mxu0 }
 0x51a   : > { %v1782_v58 = vadd.f32 %v1671_v11, %v1495_v32  ;;  %v1766_v10 = vsub.f32 %v1493_v31, %v1673_v33 }
 0x51c   : > { %1801 = vst [vmem:[%s3197_s28 + $0x8] sm:$0xff] %v1782_v58  ;;  %1800 = vst [vmem:[%s3197_s28] sm:$0xff] %v1766_v10  ;;  %v1499_v0 = vpop.f32.mrb[66].mxu1  ;;  %v1677_v34 = vpop.f32.mrb[66].mxu0 }
 0x51d   : > { %v1501_v35 = vpop.f32.mrb[67].mxu1  ;;  %v1679_v3 = vpop.f32.mrb[67].mxu0 }
 0x51e   : > { %v1783_v36 = vadd.f32 %v1677_v34, %v1501_v35  ;;  %v1767_v57 = vsub.f32 %v1499_v0, %v1679_v3 }
 0x520   : > { %1803 = vst [vmem:[%s3197_s28 + $0x18] sm:$0xff] %v1783_v36  ;;  %1802 = vst [vmem:[%s3197_s28 + $0x10] sm:$0xff] %v1767_v57  ;;  %v1505_v37 = vpop.f32.mrb[68].mxu1  ;;  %v1683_v2 = vpop.f32.mrb[68].mxu0 }
 0x521   : > { %v1507_v13 = vpop.f32.mrb[69].mxu1  ;;  %v1685_v38 = vpop.f32.mrb[69].mxu0 }
 0x522   : > { %v1784_v39 = vadd.f32 %v1683_v2, %v1507_v13  ;;  %v1768_v40 = vsub.f32 %v1505_v37, %v1685_v38 }
 0x524   : > { %1805 = vst [vmem:[%s3197_s28 + $0x28] sm:$0xff] %v1784_v39  ;;  %1804 = vst [vmem:[%s3197_s28 + $0x20] sm:$0xff] %v1768_v40  ;;  %v1511_v12 = vpop.f32.mrb[70].mxu1  ;;  %v1689_v41 = vpop.f32.mrb[70].mxu0 }
 0x525   : > { %v1513_v42 = vpop.f32.mrb[71].mxu1  ;;  %v1691_v43 = vpop.f32.mrb[71].mxu0 }
 0x526   : > { %v1785_v60 = vadd.f32 %v1689_v41, %v1513_v42  ;;  %v1769_v5 = vsub.f32 %v1511_v12, %v1691_v43 }
 0x528   : > { %1807 = vst [vmem:[%s3197_s28 + $0x38] sm:$0xff] %v1785_v60  ;;  %1806 = vst [vmem:[%s3197_s28 + $0x30] sm:$0xff] %v1769_v5  ;;  %v1517_v44 = vpop.f32.mrb[72].mxu1  ;;  %v1695_v45 = vpop.f32.mrb[72].mxu0 }
 0x529   : > { %v1519_v15 = vpop.f32.mrb[73].mxu1  ;;  %v1697_v46 = vpop.f32.mrb[73].mxu0 }
 0x52a   : > { %v1786_v4 = vadd.f32 %v1695_v45, %v1519_v15  ;;  %v1770_v59 = vsub.f32 %v1517_v44, %v1697_v46 }
 0x52c   : > { %1809 = vst [vmem:[%s3197_s28 + $0x48] sm:$0xff] %v1786_v4  ;;  %1808 = vst [vmem:[%s3197_s28 + $0x40] sm:$0xff] %v1770_v59  ;;  %v1523_v14 = vpop.f32.mrb[74].mxu1  ;;  %v1701_v47 = vpop.f32.mrb[74].mxu0 }
 0x52d   : > { %v1525_v48 = vpop.f32.mrb[75].mxu1  ;;  %v1703_v49 = vpop.f32.mrb[75].mxu0 }
 0x52e   : > { %v1787_v50 = vadd.f32 %v1701_v47, %v1525_v48  ;;  %v1771_v51 = vsub.f32 %v1523_v14, %v1703_v49 }
 0x530   : > { %1811 = vst [vmem:[%s3197_s28 + $0x58] sm:$0xff] %v1787_v50  ;;  %1810 = vst [vmem:[%s3197_s28 + $0x50] sm:$0xff] %v1771_v51  ;;  %v1529_v52 = vpop.f32.mrb[76].mxu1  ;;  %v1707_v7 = vpop.f32.mrb[76].mxu0 }
 0x531   : > { %v1531_v17 = vpop.f32.mrb[77].mxu1  ;;  %v1709_v54 = vpop.f32.mrb[77].mxu0 }
 0x532   : > { %v1788_v62 = vadd.f32 %v1707_v7, %v1531_v17  ;;  %v1772_v53 = vsub.f32 %v1529_v52, %v1709_v54 }
 0x534   : > { %1813 = vst [vmem:[%s3197_s28 + $0x68] sm:$0xff] %v1788_v62  ;;  %1812 = vst [vmem:[%s3197_s28 + $0x60] sm:$0xff] %v1772_v53  ;;  %v1535_v16 = vpop.f32.mrb[78].mxu1  ;;  %v1713_v6 = vpop.f32.mrb[78].mxu0 }
 0x535   : > { %v1537_v20 = vpop.f32.mrb[79].mxu1  ;;  %v1715_v21 = vpop.f32.mrb[79].mxu0 }
 0x536   : > { %v1789_v61 = vadd.f32 %v1713_v6, %v1537_v20  ;;  %v1773_v22 = vsub.f32 %v1535_v16, %v1715_v21 }
 0x538   : > { %1815 = vst [vmem:[%s3197_s28 + $0x78] sm:$0xff] %v1789_v61  ;;  %1814 = vst [vmem:[%s3197_s28 + $0x70] sm:$0xff] %v1773_v22  ;;  %v1541_v19 = vpop.f32.mrb[80].mxu1  ;;  %v1719_v23 = vpop.f32.mrb[80].mxu0 }
 0x539   : > { %v1543_v24 = vpop.f32.mrb[81].mxu1  ;;  %v1721_v18 = vpop.f32.mrb[81].mxu0 }
 0x53a   : > { %v1790_v56 = vadd.f32 %v1719_v23, %v1543_v24  ;;  %v1774_v9 = vsub.f32 %v1541_v19, %v1721_v18 }
 0x53c   : > { %1817 = vst [vmem:[%s3197_s28 + $0x88] sm:$0xff] %v1790_v56  ;;  %1816 = vst [vmem:[%s3197_s28 + $0x80] sm:$0xff] %v1774_v9  ;;  %v1547_v25 = vpop.f32.mrb[82].mxu1  ;;  %v1725_v26 = vpop.f32.mrb[82].mxu0 }
 0x53d   : > { %v1549_v55 = vpop.f32.mrb[83].mxu1  ;;  %v1727_v8 = vpop.f32.mrb[83].mxu0 }
 0x53e   : > { %v1791_v1 = vadd.f32 %v1725_v26, %v1549_v55  ;;  %v1775_v27 = vsub.f32 %v1547_v25, %v1727_v8 }
 0x540   : > { %1819 = vst [vmem:[%s3197_s28 + $0x98] sm:$0xff] %v1791_v1  ;;  %1818 = vst [vmem:[%s3197_s28 + $0x90] sm:$0xff] %v1775_v27  ;;  %v1553_v28 = vpop.f32.mrb[84].mxu1  ;;  %v1731_v29 = vpop.f32.mrb[84].mxu0 }
 0x541   : > { %v1555_v63 = vpop.f32.mrb[85].mxu1  ;;  %v1733_v30 = vpop.f32.mrb[85].mxu0 }
 0x542   : > { %v1792_v31 = vadd.f32 %v1731_v29, %v1555_v63  ;;  %v1776_v11 = vsub.f32 %v1553_v28, %v1733_v30 }
 0x544   : > { %1821 = vst [vmem:[%s3197_s28 + $0xa8] sm:$0xff] %v1792_v31  ;;  %1820 = vst [vmem:[%s3197_s28 + $0xa0] sm:$0xff] %v1776_v11  ;;  %v1559_v32 = vpop.f32.mrb[86].mxu1  ;;  %v1737_v33 = vpop.f32.mrb[86].mxu0 }
 0x545   : > { %v1561_v58 = vpop.f32.mrb[87].mxu1  ;;  %v1739_v10 = vpop.f32.mrb[87].mxu0 }
 0x546   : > { %v1793_v0 = vadd.f32 %v1737_v33, %v1561_v58  ;;  %v1777_v34 = vsub.f32 %v1559_v32, %v1739_v10 }
 0x548   : > { %1823 = vst [vmem:[%s3197_s28 + $0xb8] sm:$0xff] %v1793_v0  ;;  %1822 = vst [vmem:[%s3197_s28 + $0xb0] sm:$0xff] %v1777_v34  ;;  %v1565_v35 = vpop.f32.mrb[88].mxu1 }
 0x549   : > { %v1567_v3 = vpop.f32.mrb[89].mxu1 }
 0x54c   : > { %v1571_v36 = vpop.f32.mrb[90].mxu1 }
 0x54d   : > { %v1573_v57 = vpop.f32.mrb[91].mxu1 }
 0x550   : > { %v1577_v37 = vpop.f32.mrb[92].mxu1 }
 0x551   : > { %v1579_v2 = vpop.f32.mrb[93].mxu1 }
 0x554   : > { %v1583_v13 = vpop.f32.mrb[94].mxu1 }
 0x555   : > { %v1585_v38 = vpop.f32.mrb[95].mxu1 }
 0x558   : > { %v1743_v39 = vpop.f32.mrb[96].mxu1 }
 0x559   : > { %v1794_v40 = vadd.f32 %v1743_v39, %v1567_v3  ;;  %v1745_v12 = vpop.f32.mrb[97].mxu1 }
 0x55a   : > { %v1778_v41 = vsub.f32 %v1565_v35, %v1745_v12 }
 0x55b   : > { %1825 = vst [vmem:[%s3197_s28 + $0xc8] sm:$0xff] %v1794_v40 }
 0x55c   : > { %1824 = vst [vmem:[%s3197_s28 + $0xc0] sm:$0xff] %v1778_v41  ;;  %v1749_v42 = vpop.f32.mrb[98].mxu1 }
 0x55d   : > { %v1795_v43 = vadd.f32 %v1749_v42, %v1573_v57  ;;  %v1751_v60 = vpop.f32.mrb[99].mxu1 }
 0x55e   : > { %v1779_v5 = vsub.f32 %v1571_v36, %v1751_v60 }
 0x55f   : > { %1827 = vst [vmem:[%s3197_s28 + $0xd8] sm:$0xff] %v1795_v43 }
 0x560   : > { %1826 = vst [vmem:[%s3197_s28 + $0xd0] sm:$0xff] %v1779_v5  ;;  %v1755_v44 = vpop.f32.mrb[100].mxu1 }
 0x561   : > { %v1796_v45 = vadd.f32 %v1755_v44, %v1579_v2  ;;  %v1757_v15 = vpop.f32.mrb[101].mxu1 }
 0x562   : > { %v1780_v46 = vsub.f32 %v1577_v37, %v1757_v15 }
 0x563   : > { %1829 = vst [vmem:[%s3197_s28 + $0xe8] sm:$0xff] %v1796_v45 }
 0x564   : > { %1828 = vst [vmem:[%s3197_s28 + $0xe0] sm:$0xff] %v1780_v46  ;;  %v1761_v4 = vpop.f32.mrb[102].mxu1 }
 0x565   : > { %v1797_v59 = vadd.f32 %v1761_v4, %v1585_v38  ;;  %v1763_v14 = vpop.f32.mrb[103].mxu1 }
 0x566   : > { %v1781_v47 = vsub.f32 %v1583_v13, %v1763_v14 }
 0x567   : > { %1831 = vst [vmem:[%s3197_s28 + $0xf8] sm:$0xff] %v1797_v59 }
 0x568   : > { %1830 = vst [vmem:[%s3197_s28 + $0xf0] sm:$0xff] %v1781_v47 }
 0x569   : > { %2557 = shalt.err (!%p2554_p8)
}
 0x56a   : > { %s2558_s30 = scalar_lea.hbm %s3234_s17, 4096  ;;  %s2562_s7 = scalar_lea.hbm %s3288_s6, 8192 }
 0x56b   : > { %p2559_p6 = scmp.ne.s32.totalorder %s3234_s17, %s2558_s30  ;;  %p2563_p3 = scmp.lt.u32.totalorder %s3234_s17, %s3288_s6 }
 0x56c   : > { %p2564_p0 = scmp.lt.u32.totalorder %s2562_s7, %s2558_s30  ;;  %p2566_p2 = scmp.lt.u32.totalorder %s2558_s30, %s3234_s17 }
 0x56d   : > { %p2560_p9 = pnand %p2559_p6, %p3310_p7 }
 0x56e   : > { %p2565_p5 = por %p2564_p0, %p2563_p3 }
 0x56f   : > { %p2561_p4 = pneg %p2560_p9 }
 0x570   : > { %p2567_p10 = por %p2566_p2, %p2565_p5 }
 0x572   : > { %p2568_p1 = pnand %p2567_p10, %p2561_p4 }
 0x574   : > { %2571 = shalt.err (!%p2568_p1)
}
 0x575   : > { %s2636_s13 = smov 256   ;;  %s2637_s9 = smov 16  }
 0x576   : > { %2292 = dma.vmem_to_hbm [thread:$0]  (%p3310_p7), %s3236_s20, 4096, %s3234_s17, %s1833_s27, %s2636_s13, %s2636_s13, %s2637_s9  }
 0x577 PF: > { %s1862_s29 = sand.u32 1, %s2610_s21   ;;  %p3311_p11 = scmp.ne.s32.totalorder %s3301_s25, 0 }
 0x578   : > { %p3312_p12 = scmp.ge.s32.totalorder %s2622_s24, 2  ;;  %s1863_s11 = scalar_lea.sflag [#allocation5], %s1862_s29 }
 0x57a   : > { %p2315_p13 = pnand %p3312_p12, %p3311_p11 }
 0x57c   : > { %2605 = dma.done.wait (!%p2315_p13), %s1863_s11, 4096  }
 0x57d   : > { %2607 = vsyncadd (!%p2315_p13), %s1863_s11, 4294963200  ;;  %p22_p8 = scmp.ge.s32.totalorder %s2842_s15, 4   ;;  %s3313_s21 = smov %s2614_s22 }
 0x57e   : > { %s3314_s22 = smov %s2618_s23  ;;  %s3315_s23 = smov %s2854_s12 }
 0x57f   : > { %s3316_s24 = smov %s2842_s15  ;;  %24 = sbr.rel (!%p22_p8) target bundleno = 8 (0x8), region = 114 }
 0x586   :  { %1868 = vsyncpa [#allocation4], 1 }
 0x587   :  { %1870 = vsyncpa [#allocation4 + $0x1], 1 }
 0x588   :  { %1871 = vsyncpa [#allocation7], 1 }
 0x589   :  { %1872 = vsyncpa [#allocation10], 1 }
 0x58a   :  { %1873 = vsyncpa [#allocation13], 1 }
 0x58b   :  { %1874 = vsyncpa [#allocation5], 1 }
 0x58c   :  { %1876 = vsyncpa [#allocation5 + $0x1], 1 }

</bundles_post_ra>
